<compile_context>
chip_gen: v7x
topology: tpu7x:2x2x1
jax: 0.10.0
libtpu: 0.0.40
codegen_flags: <defaults>
</compile_context>

<pallas_src>
import math

import jax
import jax.numpy as jnp
from jax.experimental import pallas as pl
from jax.experimental.pallas import tpu as pltpu

_MAX_ROW_TILE = 512     # large row tile; actual tile is padding-aware (multiple of 8)
_SCA_LEAKY = 0.01       # nn.LeakyReLU() default
_VN_LEAKY = 0.2         # VNLeakyReLU negative_slope
_VN_EPS = 1e-6


def _round_up(x, m):
    return ((x + m - 1) // m) * m


def _pick_tile(n, max_tile=_MAX_ROW_TILE):
    """Padding-aware row tile: tile ~= ceil(n/blocks), multiple of 8.
    Keeps >= 2 grid steps once n is large enough so both v7x TensorCores get work."""
    n8 = max(_round_up(n, 8), 8)
    nblk = max(1, -(-n8 // max_tile))
    if nblk == 1 and n8 >= 128:
        nblk = 2
    tile = _round_up(-(-n8 // nblk), 8)
    return tile, tile * nblk


# ----------------------------------------------------------------------------
# Pallas kernel: fused / chained GDBLinear / GDBPerceptronVN weight-sets applied
# to one (scalar, vector) input block.  Each set is:
#   inter = vec @ wv1 ; norm = |inter| ; osca = norm @ ws_norm + sca @ ws_sca
#   gate  = sigmoid(osca @ wg + bg)    ; ovec = (inter @ wv2) * gate
#   [activation: scalar LeakyReLU + VN-LeakyReLU with direction weight wd]
# A set's input is either the kernel input (src=None) or a previous set's output.
# ----------------------------------------------------------------------------
def _make_gdb_kernel(set_meta, n_weights_total):
    def kernel(*refs):
        sca_ref, vec_ref = refs[0], refs[1]
        w_refs = refs[2:2 + n_weights_total]
        sca_out_ref = refs[2 + n_weights_total]
        vec_out_ref = refs[3 + n_weights_total]
        f32, bf16 = jnp.float32, jnp.bfloat16

        t = sca_ref.shape[0]
        vin = vec_ref.shape[2]
        sca_in = sca_ref[...]                                   # (T, Sin)  f32
        v_in = vec_ref[...].reshape(3 * t, vin)                 # (3T, Vin) f32 (free reshape)
        sca_in_bf = sca_in.astype(bf16)                         # hoisted casts (shared by sets)
        v_in_bf = v_in.astype(bf16)

        set_outputs = []            # per set: (osca f32 (T,Sout), ovec f32 (3T,Vout))
        sca_parts, vec_parts = [], []
        wi = 0
        for meta in set_meta:
            wv1 = w_refs[wi + 0][...]                           # (Vin, H)    bf16
            ws_norm = w_refs[wi + 1][...]                       # (H, Sout)   bf16
            ws_sca = w_refs[wi + 2][...]                        # (Sin, Sout) bf16
            wg = w_refs[wi + 3][...]                            # (Sout,Vout) bf16
            bg = w_refs[wi + 4][...]                            # (1, Vout)   f32
            wv2 = w_refs[wi + 5][...]                           # (H, Vout)   bf16
            wd = w_refs[wi + 6][...] if meta["activation"] else None
            wi += meta["n_w"]

            if meta["src"] is None:
                sca_bf, vflat_bf = sca_in_bf, v_in_bf
            else:
                src_sca, src_vec = set_outputs[meta["src"]]     # chained set (e.g. root_lin -> q)
                sca_bf, vflat_bf = src_sca.astype(bf16), src_vec.astype(bf16)

            inter = jnp.dot(vflat_bf, wv1, preferred_element_type=f32)       # (3T, H)
            ix, iy, iz = inter[:t], inter[t:2 * t], inter[2 * t:]
            norm = jnp.sqrt(ix * ix + iy * iy + iz * iz)                     # (T, H)

            osca = (jnp.dot(norm.astype(bf16), ws_norm, preferred_element_type=f32)
                    + jnp.dot(sca_bf, ws_sca, preferred_element_type=f32))   # (T, Sout)

            gate = jax.nn.sigmoid(
                jnp.dot(osca.astype(bf16), wg, preferred_element_type=f32) + bg)  # (T, Vout)

            ovf = jnp.dot(inter.astype(bf16), wv2, preferred_element_type=f32)    # (3T, Vout)
            ovec = ovf * jnp.concatenate([gate, gate, gate], axis=0)              # sublane bcast

            if meta["activation"]:
                # scalar LeakyReLU
                osca = jnp.where(osca >= 0.0, osca, _SCA_LEAKY * osca)
                # VN LeakyReLU: single stacked direction matmul, exact divide
                d = jnp.dot(ovec.astype(bf16), wd, preferred_element_type=f32)    # (3T, Vout)
                ox, oy, oz = ovec[:t], ovec[t:2 * t], ovec[2 * t:]
                dx, dy, dz = d[:t], d[t:2 * t], d[2 * t:]
                dotp = ox * dx + oy * dy + oz * dz
                dsq = dx * dx + dy * dy + dz * dz
                coef = dotp / (dsq + _VN_EPS)
                keep = dotp >= 0.0
                px = jnp.where(keep, ox, ox - coef * dx)
                py = jnp.where(keep, oy, oy - coef * dy)
                pz = jnp.where(keep, oz, oz - coef * dz)
                ox = _VN_LEAKY * ox + (1.0 - _VN_LEAKY) * px
                oy = _VN_LEAKY * oy + (1.0 - _VN_LEAKY) * py
                oz = _VN_LEAKY * oz + (1.0 - _VN_LEAKY) * pz
                ovec = jnp.concatenate([ox, oy, oz], axis=0)

            set_outputs.append((osca, ovec))
            sca_parts.append(osca)
            vec_parts.append(ovec)

        sca_slab = sca_parts[0] if len(sca_parts) == 1 else jnp.concatenate(sca_parts, axis=-1)
        vec_slab = vec_parts[0] if len(vec_parts) == 1 else jnp.concatenate(vec_parts, axis=-1)
        sca_out_ref[...] = sca_slab                                          # (T, sum_Sout)
        vec_out_ref[...] = vec_slab.reshape(3, t, vec_slab.shape[-1])        # (3, T, sum_Vout)

    return kernel


# ----------------------------------------------------------------------------
# Pallas wrapper: independent (fused) or chained GDB weight-sets in one call.
#   specs: list of {"params": ..., "activation": bool, "src": None | set index}
#   sca: (N, Sin)   vec: (3, N, Vin)   ->   list of ((N, Sout), (3, N, Vout))
# ----------------------------------------------------------------------------
def gdb_apply_multi(specs, sca, vec):
    n, sin = sca.shape
    vin = vec.shape[2]
    souts = [sp["params"]["ws_sca"].shape[1] for sp in specs]
    vouts = [sp["params"]["wv2"].shape[1] for sp in specs]
    if n == 0:
        return [(jnp.zeros((0, s), jnp.float32), jnp.zeros((3, 0, v), jnp.float32))
                for s, v in zip(souts, vouts)]

    tile, n_pad = _pick_tile(n)
    pad = n_pad - n
    sca_p = jnp.pad(jnp.asarray(sca, jnp.float32), ((0, pad), (0, 0)))
    vec_p = jnp.pad(jnp.asarray(vec, jnp.float32), ((0, 0), (0, pad), (0, 0)))

    keys_base = ("wv1", "ws_norm", "ws_sca", "wg", "bg", "wv2")
    bf16_keys = {"wv1", "ws_norm", "ws_sca", "wg", "wv2", "wd"}

    weights, set_meta = [], []
    flops, trans = 0, 0
    for sp in specs:
        p, act = sp["params"], sp["activation"]
        keys = keys_base + (("wd",) if act else ())
        for k in keys:
            w = p[k]
            weights.append(w.astype(jnp.bfloat16) if k in bf16_keys else w.astype(jnp.float32))
        vin_s, hid = p["wv1"].shape
        sin_s, sout = p["ws_sca"].shape
        vout = p["wv2"].shape[1]
        flops += 2 * n_pad * (3 * vin_s * hid + hid * sout + sin_s * sout
                              + sout * vout + 3 * hid * vout
                              + (3 * vout * vout if act else 0))
        trans += n_pad * (hid + vout)
        set_meta.append({"n_w": len(keys), "activation": act, "src": sp.get("src")})

    sum_sout, sum_vout = sum(souts), sum(vouts)
    in_specs = [pl.BlockSpec((tile, sin), lambda i: (i, 0)),
                pl.BlockSpec((3, tile, vin), lambda i: (0, i, 0))]
    in_specs += [pl.BlockSpec(w.shape, lambda i, nd=w.ndim: (0,) * nd) for w in weights]
    out_specs = (pl.BlockSpec((tile, sum_sout), lambda i: (i, 0)),
                 pl.BlockSpec((3, tile, sum_vout), lambda i: (0, i, 0)))
    out_shape = (jax.ShapeDtypeStruct((n_pad, sum_sout), jnp.float32),
                 jax.ShapeDtypeStruct((3, n_pad, sum_vout), jnp.float32))

    w_bytes = sum(int(w.size) * w.dtype.itemsize for w in weights)
    bytes_accessed = (sca_p.size * 4 + vec_p.size * 4 + w_bytes
                      + n_pad * sum_sout * 4 + 3 * n_pad * sum_vout * 4)
    cost = pl.CostEstimate(flops=int(flops), transcendentals=int(trans),
                           bytes_accessed=int(bytes_accessed))

    sca_slab, vec_slab = pl.pallas_call(
        _make_gdb_kernel(tuple(set_meta), len(weights)),
        grid=(n_pad // tile,),
        in_specs=in_specs,
        out_specs=out_specs,
        out_shape=out_shape,
        compiler_params=pltpu.CompilerParams(dimension_semantics=("parallel",)),
        cost_estimate=cost,
    )(sca_p, vec_p, *weights)

    results, so, vo = [], 0, 0
    for sout, vout in zip(souts, vouts):
        results.append((sca_slab[:n, so:so + sout], vec_slab[:, :n, vo:vo + vout]))
        so += sout
        vo += vout
    return results


def gdb_apply(params, sca, vec, activation=False):
    return gdb_apply_multi([{"params": params, "activation": activation, "src": None}],
                           sca, vec)[0]


# ----------------------------------------------------------------------------
# Parameter init (deterministic, synthetic)
# ----------------------------------------------------------------------------
def _split(key, n):
    return list(jax.random.split(key, n))


def _normal(key, shape, fan_in):
    return jax.random.normal(key, shape, jnp.float32) / math.sqrt(max(fan_in, 1))


def init_gdb(key, in_sca, in_vec, out_sca, out_vec, activation=False, bottleneck=1):
    hid = max(in_vec, out_vec) if bottleneck == 1 else in_vec // bottleneck
    ks = _split(key, 6)
    p = {"wv1": _normal(ks[0], (in_vec, hid), in_vec),
         # fused scalar Linear on concat([norm, sca]) split into two weights so the
         # kernel never lane-concatenates; bias-free as in the GVLinear reference.
         "ws_norm": _normal(ks[1], (hid, out_sca), hid + in_sca),
         "ws_sca": _normal(ks[5], (in_sca, out_sca), hid + in_sca),
         "wg": _normal(ks[2], (out_sca, out_vec), out_sca),
         "bg": jnp.zeros((1, out_vec), jnp.float32),
         "wv2": _normal(ks[3], (hid, out_vec), hid)}
    if activation:
        p["wd"] = _normal(ks[4], (out_vec, out_vec), out_vec)
    return p


def init_linear(key, din, dout, bias=True):
    k1, k2 = jax.random.split(key)
    p = {"w": _normal(k1, (din, dout), din)}
    p["b"] = (jax.random.normal(k2, (dout,), jnp.float32) * 0.01) if bias else None
    return p


def linear_apply(p, x):
    y = x @ p["w"]
    if p["b"] is not None:
        y = y + p["b"]
    return y


def init_edge_expansion(key, channels):
    return {"w": jax.random.normal(key, (channels,), jnp.float32)}


def edge_expansion_apply(p, vec):
    # vec: (N, 3)  ->  (3, N, C) canonical layout
    v = vec / (jnp.linalg.norm(vec, axis=-1, keepdims=True) + 1e-7)
    return v.T[:, :, None] * p["w"][None, None, :]


def gaussian_smearing(dist, start, stop, num_gaussians):
    offset = jnp.linspace(start, stop, num_gaussians)
    coeff = -0.5 / (offset[1] - offset[0]) ** 2
    d = dist.reshape(-1, 1) - offset.reshape(1, -1)
    return jnp.exp(coeff * d * d)


def layer_norm(x, axes):
    mu = x.mean(axes, keepdims=True)
    var = x.var(axes, keepdims=True)
    return (x - mu) / jnp.sqrt(var + 1e-5)


def scatter_softmax(logits, index, num_segments):
    m = jax.ops.segment_max(logits, index, num_segments=num_segments)
    m = jnp.where(jnp.isfinite(m), m, 0.0)
    ex = jnp.exp(logits - m[index])
    den = jax.ops.segment_sum(ex, index, num_segments=num_segments)
    return ex / (den[index] + 1e-16)


# ----------------------------------------------------------------------------
# Module reconstructions (vector features are (3, N, C) everywhere below)
# ----------------------------------------------------------------------------
def init_message_module(key, node_sca, node_vec, edge_sca, edge_vec, out_sca, out_vec):
    ks = _split(key, 7)
    return {"node_gvlinear": init_gdb(ks[0], node_sca, node_vec, out_sca, out_vec),
            "edge_gvp": init_gdb(ks[1], edge_sca, edge_vec, edge_sca, edge_vec, activation=True),
            "sca_linear": init_linear(ks[2], edge_sca, out_sca),
            "e2n_linear": init_linear(ks[3], edge_sca, out_vec),
            "n2e_linear": init_linear(ks[4], out_sca, out_vec),
            "edge_vnlinear": {"w": _normal(ks[5], (edge_vec, out_vec), edge_vec)},
            "out_gvlinear": init_gdb(ks[6], out_sca, out_vec, out_sca, out_vec)}


def message_module_apply(p, node_attr, edge_attr, edge_index_node, dist_ij,
                         cutoff=10.0, annealing=False):
    nsca, nvec = gdb_apply(p["node_gvlinear"], node_attr[0], node_attr[1])
    nsca, nvec = nsca[edge_index_node], nvec[:, edge_index_node]
    esca, evec = gdb_apply(p["edge_gvp"], edge_attr[0], edge_attr[1], activation=True)
    y_sca = nsca * linear_apply(p["sca_linear"], esca)
    y_vec = (linear_apply(p["e2n_linear"], esca)[None, :, :] * nvec
             + linear_apply(p["n2e_linear"], nsca)[None, :, :] * (evec @ p["edge_vnlinear"]["w"]))
    osca, ovec = gdb_apply(p["out_gvlinear"], y_sca, y_vec)
    if annealing:
        c = 0.5 * (jnp.cos(dist_ij * jnp.pi / cutoff) + 1.0)
        c = c * (dist_ij <= cutoff) * (dist_ij >= 0.0)
        osca = osca * c
        ovec = ovec * c[None, :, :]
    return osca, ovec


def init_message_attention(key, in_sca, in_vec, out_sca, out_vec, num_heads=1):
    ks = _split(key, 3)
    return {"q": init_gdb(ks[0], in_sca, in_vec, out_sca, out_vec),
            "k": init_gdb(ks[1], in_sca, in_vec, out_sca, out_vec),
            "v": init_gdb(ks[2], in_sca, in_vec, out_sca, out_vec),
            "heads": num_heads}


def message_attention_apply(p, x, q, msg, index, num_nodes):
    h = p["heads"]
    qs, qv = q                                                       # precomputed (fused w/ root_lin)
    # k and v operate on the same rows -> one fused pallas_call
    (ks_, kv), (vs, vv) = gdb_apply_multi(
        [{"params": p["k"], "activation": False, "src": None},
         {"params": p["v"], "activation": False, "src": None}], msg[0], msg[1])
    e = ks_.shape[0]
    s, v = qs.shape[1], qv.shape[2]
    a_s = scatter_softmax((qs[index].reshape(e, h, s // h) * ks_.reshape(e, h, s // h)).sum(-1),
                          index, num_nodes)
    a_v = scatter_softmax((qv[:, index] * kv).reshape(3, e, h, v // h).sum(-1).sum(0),
                          index, num_nodes)
    out_s = jax.ops.segment_sum((a_s[..., None] * vs.reshape(e, h, s // h)).reshape(e, s),
                                index, num_segments=num_nodes)
    wv_ = (a_v[None, :, :, None] * vv.reshape(3, e, h, v // h)).reshape(3, e, v)
    out_v = jax.vmap(lambda d: jax.ops.segment_sum(d, index, num_segments=num_nodes))(wv_)
    return layer_norm(x[0] + out_s, (-1,)), layer_norm(x[1] + out_v, (0, 2))


def init_position_encoder(key, in_sca, in_vec, edge_channels, num_filters,
                          cutoff=10.0, num_heads=1):
    ks = _split(key, 5)
    return {"message_module": init_message_module(ks[0], in_sca, in_vec, edge_channels,
                                                  edge_channels, num_filters[0], num_filters[1]),
            "message_att": init_message_attention(ks[1], num_filters[0], num_filters[1],
                                                  num_filters[0], num_filters[1], num_heads),
            "vector_expansion": init_edge_expansion(ks[2], edge_channels),
            "root_lin": init_gdb(ks[3], in_sca, in_vec, num_filters[0], num_filters[1]),
            "root_vector_expansion": init_edge_expansion(ks[4], edge_channels),
            "cutoff": cutoff, "edge_channels": edge_channels}


def position_encoder_apply(p, pos_query, knn_index, cpx_pos, node_attr_compose,
                           atom_type_emb, annealing=False):
    # single transpose at the input boundary -> canonical (3, N, C) layout inside
    node_vec = jnp.transpose(jnp.asarray(node_attr_compose[1], jnp.float32), (1, 0, 2))
    vec_ij = pos_query[knn_index[0]] - cpx_pos[knn_index[1]]
    dist_ij = jnp.linalg.norm(vec_ij, axis=-1).reshape(-1, 1)
    edge_ij = (gaussian_smearing(dist_ij, 0.0, p["cutoff"], p["edge_channels"]),
               edge_expansion_apply(p["vector_expansion"], vec_ij))
    root_vec_ij = edge_expansion_apply(p["root_vector_expansion"], pos_query)
    # root_lin and the attention q-projection chained inside ONE pallas_call
    (y_root_sca, y_root_vec), (q_sca, q_vec) = gdb_apply_multi(
        [{"params": p["root_lin"], "activation": False, "src": None},
         {"params": p["message_att"]["q"], "activation": False, "src": 0}],
        atom_type_emb, root_vec_ij)
    h_q = message_module_apply(p["message_module"], (node_attr_compose[0], node_vec),
                               edge_ij, knn_index[1], dist_ij,
                               cutoff=p["cutoff"], annealing=annealing)
    out_sca, out_vec = message_attention_apply(p["message_att"], (y_root_sca, y_root_vec),
                                               (q_sca, q_vec), h_q,
                                               knn_index[0], pos_query.shape[0])
    # back to external (N, 3, C) layout at the output boundary
    return out_sca, jnp.transpose(out_vec, (1, 0, 2))


# ----------------------------------------------------------------------------
# Main
# ----------------------------------------------------------------------------
if __name__ == "__main__":
    key = jax.random.PRNGKey(0)
    in_sca, in_vec, edge_channels = 16, 16, 16
    num_filters = (32, 8)
    nq, nc, knn = 8, 16, 6

    kparam, kdata = jax.random.split(key)
    params = init_position_encoder(kparam, in_sca, in_vec, edge_channels, num_filters,
                                   cutoff=10.0, num_heads=1)

    dk = _split(kdata, 6)
    pos_query = jax.random.normal(dk[0], (nq, 3)) * 2.0
    cpx_pos = jax.random.normal(dk[1], (nc, 3)) * 2.0
    node_attr_compose = (jax.random.normal(dk[2], (nc, in_sca)),
                         jax.random.normal(dk[3], (nc, 3, in_vec)))
    atom_type_emb = jax.random.normal(dk[4], (nq, in_sca))

    knn_q = jnp.repeat(jnp.arange(nq, dtype=jnp.int32), knn)
    knn_c = jax.random.randint(dk[5], (nq * knn,), 0, nc, dtype=jnp.int32)
    edge_index_q_cps_knn = jnp.stack([knn_q, knn_c])

    fwd = jax.jit(lambda pq, knn_idx, cpos, nattr, emb: position_encoder_apply(
        params, pq, knn_idx, cpos, nattr, emb, annealing=False))

    y_sca, y_vec = fwd(pos_query, edge_index_q_cps_knn, cpx_pos,
                       node_attr_compose, atom_type_emb)
    jax.block_until_ready((y_sca, y_vec))

    assert y_sca.shape == (nq, num_filters[0])
    assert y_vec.shape == (nq, 3, num_filters[1])
    assert bool(jnp.all(jnp.isfinite(y_sca))) and bool(jnp.all(jnp.isfinite(y_vec)))
    print("KERNEL_OK")
</pallas_src>

<mosaic_0001>
module attributes {stable_mosaic.version = 11 : i64} {
  func.func private @main(%arg0: i32) attributes {dimension_semantics = [#tpu.dimension_semantics<core_parallel>], iteration_bounds = array<i64: 2>, tpu.core_type = #tpu.core_type<sc_scalar_subcore>, window_params = []} {
    return
  }
}

module attributes {stable_mosaic.version = 11 : i64} {
  func.func private @main(%arg0: i32) attributes {dimension_semantics = [#tpu.dimension_semantics<core_parallel>], iteration_bounds = array<i64: 2>, tpu.core_type = #tpu.core_type<sc_scalar_subcore>, window_params = []} {
    return
  }
}

module attributes {stable_mosaic.version = 11 : i64} {
  func.func @kernel(%arg0: i32, %arg1: memref<16x16xf32, #tpu.memory_space<vmem>>, %arg2: memref<3x16x16xf32, #tpu.memory_space<vmem>>, %arg3: memref<16x16xbf16, #tpu.memory_space<vmem>>, %arg4: memref<16x32xbf16, #tpu.memory_space<vmem>>, %arg5: memref<16x32xbf16, #tpu.memory_space<vmem>>, %arg6: memref<32x8xbf16, #tpu.memory_space<vmem>>, %arg7: memref<1x8xf32, #tpu.memory_space<vmem>>, %arg8: memref<16x8xbf16, #tpu.memory_space<vmem>>, %arg9: memref<16x32xf32, #tpu.memory_space<vmem>>, %arg10: memref<3x16x8xf32, #tpu.memory_space<vmem>>) attributes {dimension_semantics = [#tpu.dimension_semantics<parallel>], iteration_bounds = array<i64: 1>, scalar_prefetch = 0 : i64, scratch_operands = 0 : i64, tpu.core_type = #tpu.core_type<tc>, window_params = [{transform_indices = @transform_0, window_bounds = array<i64: 16, 16>}, {transform_indices = @transform_1, window_bounds = array<i64: 3, 16, 16>}, {pipeline_mode = #tpu.pipeline_mode<synchronous>, transform_indices = @transform_2, window_bounds = array<i64: 16, 16>}, {pipeline_mode = #tpu.pipeline_mode<synchronous>, transform_indices = @transform_3, window_bounds = array<i64: 16, 32>}, {pipeline_mode = #tpu.pipeline_mode<synchronous>, transform_indices = @transform_4, window_bounds = array<i64: 16, 32>}, {pipeline_mode = #tpu.pipeline_mode<synchronous>, transform_indices = @transform_5, window_bounds = array<i64: 32, 8>}, {pipeline_mode = #tpu.pipeline_mode<synchronous>, transform_indices = @transform_6, window_bounds = array<i64: 1, 8>}, {pipeline_mode = #tpu.pipeline_mode<synchronous>, transform_indices = @transform_7, window_bounds = array<i64: 16, 8>}, {transform_indices = @transform_8, window_bounds = array<i64: 16, 32>}, {transform_indices = @transform_9, window_bounds = array<i64: 3, 16, 8>}]} {
    %c0 = arith.constant 0 : index
    %c0_0 = arith.constant 0 : index
    %0 = vector.load %arg1[%c0, %c0_0] : memref<16x16xf32, #tpu.memory_space<vmem>>, vector<16x16xf32>
    %c0_1 = arith.constant 0 : index
    %c0_2 = arith.constant 0 : index
    %c0_3 = arith.constant 0 : index
    %1 = vector.load %arg2[%c0_1, %c0_2, %c0_3] : memref<3x16x16xf32, #tpu.memory_space<vmem>>, vector<3x16x16xf32>
    %2 = vector.shape_cast %1 : vector<3x16x16xf32> to vector<48x16xf32>
    %3 = arith.truncf %0 : vector<16x16xf32> to vector<16x16xbf16>
    %4 = arith.truncf %2 : vector<48x16xf32> to vector<48x16xbf16>
    %c0_4 = arith.constant 0 : index
    %c0_5 = arith.constant 0 : index
    %5 = vector.load %arg3[%c0_4, %c0_5] : memref<16x16xbf16, #tpu.memory_space<vmem>>, vector<16x16xbf16>
    %c0_6 = arith.constant 0 : index
    %c0_7 = arith.constant 0 : index
    %6 = vector.load %arg4[%c0_6, %c0_7] : memref<16x32xbf16, #tpu.memory_space<vmem>>, vector<16x32xbf16>
    %c0_8 = arith.constant 0 : index
    %c0_9 = arith.constant 0 : index
    %7 = vector.load %arg5[%c0_8, %c0_9] : memref<16x32xbf16, #tpu.memory_space<vmem>>, vector<16x32xbf16>
    %c0_10 = arith.constant 0 : index
    %c0_11 = arith.constant 0 : index
    %8 = vector.load %arg6[%c0_10, %c0_11] : memref<32x8xbf16, #tpu.memory_space<vmem>>, vector<32x8xbf16>
    %c0_12 = arith.constant 0 : index
    %c0_13 = arith.constant 0 : index
    %9 = vector.load %arg7[%c0_12, %c0_13] : memref<1x8xf32, #tpu.memory_space<vmem>>, vector<1x8xf32>
    %c0_14 = arith.constant 0 : index
    %c0_15 = arith.constant 0 : index
    %10 = vector.load %arg8[%c0_14, %c0_15] : memref<16x8xbf16, #tpu.memory_space<vmem>>, vector<16x8xbf16>
    %cst = arith.constant dense<0.000000e+00> : vector<48x16xf32>
    %11 = tpu.matmul %4, %5, %cst {dimension_numbers = #tpu.dot_dimension_numbers<[1], [0], [0], [1], [0, 0, 1, 1], [], []>} : vector<48x16xbf16>, vector<16x16xbf16>, vector<48x16xf32> -> vector<48x16xf32>
    %12 = vector.extract_strided_slice %11 {offsets = [0, 0], sizes = [16, 16], strides = [1, 1]} : vector<48x16xf32> to vector<16x16xf32>
    %13 = vector.extract_strided_slice %11 {offsets = [16, 0], sizes = [16, 16], strides = [1, 1]} : vector<48x16xf32> to vector<16x16xf32>
    %14 = vector.extract_strided_slice %11 {offsets = [32, 0], sizes = [16, 16], strides = [1, 1]} : vector<48x16xf32> to vector<16x16xf32>
    %15 = arith.mulf %12, %12 : vector<16x16xf32>
    %16 = arith.mulf %13, %13 : vector<16x16xf32>
    %17 = arith.addf %15, %16 : vector<16x16xf32>
    %18 = arith.mulf %14, %14 : vector<16x16xf32>
    %19 = arith.addf %17, %18 : vector<16x16xf32>
    %20 = math.sqrt %19 : vector<16x16xf32>
    %21 = arith.truncf %20 : vector<16x16xf32> to vector<16x16xbf16>
    %cst_16 = arith.constant dense<0.000000e+00> : vector<16x32xf32>
    %22 = tpu.matmul %21, %6, %cst_16 {dimension_numbers = #tpu.dot_dimension_numbers<[1], [0], [0], [1], [0, 0, 1, 1], [], []>} : vector<16x16xbf16>, vector<16x32xbf16>, vector<16x32xf32> -> vector<16x32xf32>
    %cst_17 = arith.constant dense<0.000000e+00> : vector<16x32xf32>
    %23 = tpu.matmul %3, %7, %cst_17 {dimension_numbers = #tpu.dot_dimension_numbers<[1], [0], [0], [1], [0, 0, 1, 1], [], []>} : vector<16x16xbf16>, vector<16x32xbf16>, vector<16x32xf32> -> vector<16x32xf32>
    %24 = arith.addf %22, %23 : vector<16x32xf32>
    %25 = arith.truncf %24 : vector<16x32xf32> to vector<16x32xbf16>
    %cst_18 = arith.constant dense<0.000000e+00> : vector<16x8xf32>
    %26 = tpu.matmul %25, %8, %cst_18 {dimension_numbers = #tpu.dot_dimension_numbers<[1], [0], [0], [1], [0, 0, 1, 1], [], []>} : vector<16x32xbf16>, vector<32x8xbf16>, vector<16x8xf32> -> vector<16x8xf32>
    %27 = vector.broadcast %9 : vector<1x8xf32> to vector<16x8xf32>
    %28 = arith.addf %26, %27 : vector<16x8xf32>
    %29 = arith.negf %28 : vector<16x8xf32>
    %30 = math.exp %29 : vector<16x8xf32>
    %cst_19 = arith.constant 1.000000e+00 : f32
    %31 = vector.broadcast %cst_19 : f32 to vector<16x8xf32>
    %32 = arith.addf %31, %30 : vector<16x8xf32>
    %33 = arith.divf %31, %32 : vector<16x8xf32>
    %34 = arith.truncf %11 : vector<48x16xf32> to vector<48x16xbf16>
    %cst_20 = arith.constant dense<0.000000e+00> : vector<48x8xf32>
    %35 = tpu.matmul %34, %10, %cst_20 {dimension_numbers = #tpu.dot_dimension_numbers<[1], [0], [0], [1], [0, 0, 1, 1], [], []>} : vector<48x16xbf16>, vector<16x8xbf16>, vector<48x8xf32> -> vector<48x8xf32>
    %36 = tpu.concatenate %33, %33, %33 in 0 : vector<16x8xf32>, vector<16x8xf32>, vector<16x8xf32> -> vector<48x8xf32>
    %37 = arith.mulf %35, %36 : vector<48x8xf32>
    %c0_21 = arith.constant 0 : index
    %c0_22 = arith.constant 0 : index
    %38 = vector.load %arg9[%c0_21, %c0_22] : memref<16x32xf32, #tpu.memory_space<vmem>>, vector<16x32xf32>
    tpu.vector_store %arg9[%c0_21, %c0_22], %24 {strides = array<i32>} : memref<16x32xf32, #tpu.memory_space<vmem>>, vector<16x32xf32>,
    %39 = vector.shape_cast %37 : vector<48x8xf32> to vector<3x16x8xf32>
    %c0_23 = arith.constant 0 : index
    %c0_24 = arith.constant 0 : index
    %c0_25 = arith.constant 0 : index
    %40 = vector.load %arg10[%c0_23, %c0_24, %c0_25] : memref<3x16x8xf32, #tpu.memory_space<vmem>>, vector<3x16x8xf32>
    tpu.vector_store %arg10[%c0_23, %c0_24, %c0_25], %39 {strides = array<i32>} : memref<3x16x8xf32, #tpu.memory_space<vmem>>, vector<3x16x8xf32>,
    return
  }
  func.func @transform_0(%arg0: i32) -> (i32, i32) {
    %c0_i32 = arith.constant 0 : i32
    %c0_i32_0 = arith.constant 0 : i32
    return %arg0, %c0_i32 : i32, i32
  }
  func.func @transform_1(%arg0: i32) -> (i32, i32, i32) {
    %c0_i32 = arith.constant 0 : i32
    %c0_i32_0 = arith.constant 0 : i32
    %c0_i32_1 = arith.constant 0 : i32
    return %c0_i32, %arg0, %c0_i32_0 : i32, i32, i32
  }
  func.func @transform_2(%arg0: i32) -> (i32, i32) {
    %c0_i32 = arith.constant 0 : i32
    %c0_i32_0 = arith.constant 0 : i32
    %c0_i32_1 = arith.constant 0 : i32
    return %c0_i32, %c0_i32_0 : i32, i32
  }
  func.func @transform_3(%arg0: i32) -> (i32, i32) {
    %c0_i32 = arith.constant 0 : i32
    %c0_i32_0 = arith.constant 0 : i32
    %c0_i32_1 = arith.constant 0 : i32
    return %c0_i32, %c0_i32_0 : i32, i32
  }
  func.func @transform_4(%arg0: i32) -> (i32, i32) {
    %c0_i32 = arith.constant 0 : i32
    %c0_i32_0 = arith.constant 0 : i32
    %c0_i32_1 = arith.constant 0 : i32
    return %c0_i32, %c0_i32_0 : i32, i32
  }
  func.func @transform_5(%arg0: i32) -> (i32, i32) {
    %c0_i32 = arith.constant 0 : i32
    %c0_i32_0 = arith.constant 0 : i32
    %c0_i32_1 = arith.constant 0 : i32
    return %c0_i32, %c0_i32_0 : i32, i32
  }
  func.func @transform_6(%arg0: i32) -> (i32, i32) {
    %c0_i32 = arith.constant 0 : i32
    %c0_i32_0 = arith.constant 0 : i32
    %c0_i32_1 = arith.constant 0 : i32
    return %c0_i32, %c0_i32_0 : i32, i32
  }
  func.func @transform_7(%arg0: i32) -> (i32, i32) {
    %c0_i32 = arith.constant 0 : i32
    %c0_i32_0 = arith.constant 0 : i32
    %c0_i32_1 = arith.constant 0 : i32
    return %c0_i32, %c0_i32_0 : i32, i32
  }
  func.func @transform_8(%arg0: i32) -> (i32, i32) {
    %c0_i32 = arith.constant 0 : i32
    %c0_i32_0 = arith.constant 0 : i32
    return %arg0, %c0_i32 : i32, i32
  }
  func.func @transform_9(%arg0: i32) -> (i32, i32, i32) {
    %c0_i32 = arith.constant 0 : i32
    %c0_i32_0 = arith.constant 0 : i32
    %c0_i32_1 = arith.constant 0 : i32
    return %c0_i32, %arg0, %c0_i32_0 : i32, i32, i32
  }
}

module attributes {stable_mosaic.version = 11 : i64} {
  func.func @kernel(%arg0: i32, %arg1: memref<8x16xf32, #tpu.memory_space<vmem>>, %arg2: memref<3x8x16xf32, #tpu.memory_space<vmem>>, %arg3: memref<16x16xbf16, #tpu.memory_space<vmem>>, %arg4: memref<16x32xbf16, #tpu.memory_space<vmem>>, %arg5: memref<16x32xbf16, #tpu.memory_space<vmem>>, %arg6: memref<32x8xbf16, #tpu.memory_space<vmem>>, %arg7: memref<1x8xf32, #tpu.memory_space<vmem>>, %arg8: memref<16x8xbf16, #tpu.memory_space<vmem>>, %arg9: memref<8x8xbf16, #tpu.memory_space<vmem>>, %arg10: memref<8x32xbf16, #tpu.memory_space<vmem>>, %arg11: memref<32x32xbf16, #tpu.memory_space<vmem>>, %arg12: memref<32x8xbf16, #tpu.memory_space<vmem>>, %arg13: memref<1x8xf32, #tpu.memory_space<vmem>>, %arg14: memref<8x8xbf16, #tpu.memory_space<vmem>>, %arg15: memref<8x64xf32, #tpu.memory_space<vmem>>, %arg16: memref<3x8x16xf32, #tpu.memory_space<vmem>>) attributes {dimension_semantics = [#tpu.dimension_semantics<parallel>], iteration_bounds = array<i64: 1>, scalar_prefetch = 0 : i64, scratch_operands = 0 : i64, tpu.core_type = #tpu.core_type<tc>, window_params = [{transform_indices = @transform_0, window_bounds = array<i64: 8, 16>}, {transform_indices = @transform_1, window_bounds = array<i64: 3, 8, 16>}, {pipeline_mode = #tpu.pipeline_mode<synchronous>, transform_indices = @transform_2, window_bounds = array<i64: 16, 16>}, {pipeline_mode = #tpu.pipeline_mode<synchronous>, transform_indices = @transform_3, window_bounds = array<i64: 16, 32>}, {pipeline_mode = #tpu.pipeline_mode<synchronous>, transform_indices = @transform_4, window_bounds = array<i64: 16, 32>}, {pipeline_mode = #tpu.pipeline_mode<synchronous>, transform_indices = @transform_5, window_bounds = array<i64: 32, 8>}, {pipeline_mode = #tpu.pipeline_mode<synchronous>, transform_indices = @transform_6, window_bounds = array<i64: 1, 8>}, {pipeline_mode = #tpu.pipeline_mode<synchronous>, transform_indices = @transform_7, window_bounds = array<i64: 16, 8>}, {pipeline_mode = #tpu.pipeline_mode<synchronous>, transform_indices = @transform_8, window_bounds = array<i64: 8, 8>}, {pipeline_mode = #tpu.pipeline_mode<synchronous>, transform_indices = @transform_9, window_bounds = array<i64: 8, 32>}, {pipeline_mode = #tpu.pipeline_mode<synchronous>, transform_indices = @transform_10, window_bounds = array<i64: 32, 32>}, {pipeline_mode = #tpu.pipeline_mode<synchronous>, transform_indices = @transform_11, window_bounds = array<i64: 32, 8>}, {pipeline_mode = #tpu.pipeline_mode<synchronous>, transform_indices = @transform_12, window_bounds = array<i64: 1, 8>}, {pipeline_mode = #tpu.pipeline_mode<synchronous>, transform_indices = @transform_13, window_bounds = array<i64: 8, 8>}, {transform_indices = @transform_14, window_bounds = array<i64: 8, 64>}, {transform_indices = @transform_15, window_bounds = array<i64: 3, 8, 16>}]} {
    %c0 = arith.constant 0 : index
    %c0_0 = arith.constant 0 : index
    %0 = vector.load %arg1[%c0, %c0_0] : memref<8x16xf32, #tpu.memory_space<vmem>>, vector<8x16xf32>
    %c0_1 = arith.constant 0 : index
    %c0_2 = arith.constant 0 : index
    %c0_3 = arith.constant 0 : index
    %1 = vector.load %arg2[%c0_1, %c0_2, %c0_3] : memref<3x8x16xf32, #tpu.memory_space<vmem>>, vector<3x8x16xf32>
    %2 = vector.shape_cast %1 : vector<3x8x16xf32> to vector<24x16xf32>
    %3 = arith.truncf %0 : vector<8x16xf32> to vector<8x16xbf16>
    %4 = arith.truncf %2 : vector<24x16xf32> to vector<24x16xbf16>
    %c0_4 = arith.constant 0 : index
    %c0_5 = arith.constant 0 : index
    %5 = vector.load %arg3[%c0_4, %c0_5] : memref<16x16xbf16, #tpu.memory_space<vmem>>, vector<16x16xbf16>
    %c0_6 = arith.constant 0 : index
    %c0_7 = arith.constant 0 : index
    %6 = vector.load %arg4[%c0_6, %c0_7] : memref<16x32xbf16, #tpu.memory_space<vmem>>, vector<16x32xbf16>
    %c0_8 = arith.constant 0 : index
    %c0_9 = arith.constant 0 : index
    %7 = vector.load %arg5[%c0_8, %c0_9] : memref<16x32xbf16, #tpu.memory_space<vmem>>, vector<16x32xbf16>
    %c0_10 = arith.constant 0 : index
    %c0_11 = arith.constant 0 : index
    %8 = vector.load %arg6[%c0_10, %c0_11] : memref<32x8xbf16, #tpu.memory_space<vmem>>, vector<32x8xbf16>
    %c0_12 = arith.constant 0 : index
    %c0_13 = arith.constant 0 : index
    %9 = vector.load %arg7[%c0_12, %c0_13] : memref<1x8xf32, #tpu.memory_space<vmem>>, vector<1x8xf32>
    %c0_14 = arith.constant 0 : index
    %c0_15 = arith.constant 0 : index
    %10 = vector.load %arg8[%c0_14, %c0_15] : memref<16x8xbf16, #tpu.memory_space<vmem>>, vector<16x8xbf16>
    %cst = arith.constant dense<0.000000e+00> : vector<24x16xf32>
    %11 = tpu.matmul %4, %5, %cst {dimension_numbers = #tpu.dot_dimension_numbers<[1], [0], [0], [1], [0, 0, 1, 1], [], []>} : vector<24x16xbf16>, vector<16x16xbf16>, vector<24x16xf32> -> vector<24x16xf32>
    %12 = vector.extract_strided_slice %11 {offsets = [0, 0], sizes = [8, 16], strides = [1, 1]} : vector<24x16xf32> to vector<8x16xf32>
    %13 = vector.extract_strided_slice %11 {offsets = [8, 0], sizes = [8, 16], strides = [1, 1]} : vector<24x16xf32> to vector<8x16xf32>
    %14 = vector.extract_strided_slice %11 {offsets = [16, 0], sizes = [8, 16], strides = [1, 1]} : vector<24x16xf32> to vector<8x16xf32>
    %15 = arith.mulf %12, %12 : vector<8x16xf32>
    %16 = arith.mulf %13, %13 : vector<8x16xf32>
    %17 = arith.addf %15, %16 : vector<8x16xf32>
    %18 = arith.mulf %14, %14 : vector<8x16xf32>
    %19 = arith.addf %17, %18 : vector<8x16xf32>
    %20 = math.sqrt %19 : vector<8x16xf32>
    %21 = arith.truncf %20 : vector<8x16xf32> to vector<8x16xbf16>
    %cst_16 = arith.constant dense<0.000000e+00> : vector<8x32xf32>
    %22 = tpu.matmul %21, %6, %cst_16 {dimension_numbers = #tpu.dot_dimension_numbers<[1], [0], [0], [1], [0, 0, 1, 1], [], []>} : vector<8x16xbf16>, vector<16x32xbf16>, vector<8x32xf32> -> vector<8x32xf32>
    %cst_17 = arith.constant dense<0.000000e+00> : vector<8x32xf32>
    %23 = tpu.matmul %3, %7, %cst_17 {dimension_numbers = #tpu.dot_dimension_numbers<[1], [0], [0], [1], [0, 0, 1, 1], [], []>} : vector<8x16xbf16>, vector<16x32xbf16>, vector<8x32xf32> -> vector<8x32xf32>
    %24 = arith.addf %22, %23 : vector<8x32xf32>
    %25 = arith.truncf %24 : vector<8x32xf32> to vector<8x32xbf16>
    %cst_18 = arith.constant dense<0.000000e+00> : vector<8x8xf32>
    %26 = tpu.matmul %25, %8, %cst_18 {dimension_numbers = #tpu.dot_dimension_numbers<[1], [0], [0], [1], [0, 0, 1, 1], [], []>} : vector<8x32xbf16>, vector<32x8xbf16>, vector<8x8xf32> -> vector<8x8xf32>
    %27 = vector.broadcast %9 : vector<1x8xf32> to vector<8x8xf32>
    %28 = arith.addf %26, %27 : vector<8x8xf32>
    %29 = arith.negf %28 : vector<8x8xf32>
    %30 = math.exp %29 : vector<8x8xf32>
    %cst_19 = arith.constant 1.000000e+00 : f32
    %31 = vector.broadcast %cst_19 : f32 to vector<8x8xf32>
    %32 = arith.addf %31, %30 : vector<8x8xf32>
    %33 = arith.divf %31, %32 : vector<8x8xf32>
    %34 = arith.truncf %11 : vector<24x16xf32> to vector<24x16xbf16>
    %cst_20 = arith.constant dense<0.000000e+00> : vector<24x8xf32>
    %35 = tpu.matmul %34, %10, %cst_20 {dimension_numbers = #tpu.dot_dimension_numbers<[1], [0], [0], [1], [0, 0, 1, 1], [], []>} : vector<24x16xbf16>, vector<16x8xbf16>, vector<24x8xf32> -> vector<24x8xf32>
    %36 = tpu.concatenate %33, %33, %33 in 0 : vector<8x8xf32>, vector<8x8xf32>, vector<8x8xf32> -> vector<24x8xf32>
    %37 = arith.mulf %35, %36 : vector<24x8xf32>
    %c0_21 = arith.constant 0 : index
    %c0_22 = arith.constant 0 : index
    %38 = vector.load %arg9[%c0_21, %c0_22] : memref<8x8xbf16, #tpu.memory_space<vmem>>, vector<8x8xbf16>
    %c0_23 = arith.constant 0 : index
    %c0_24 = arith.constant 0 : index
    %39 = vector.load %arg10[%c0_23, %c0_24] : memref<8x32xbf16, #tpu.memory_space<vmem>>, vector<8x32xbf16>
    %c0_25 = arith.constant 0 : index
    %c0_26 = arith.constant 0 : index
    %40 = vector.load %arg11[%c0_25, %c0_26] : memref<32x32xbf16, #tpu.memory_space<vmem>>, vector<32x32xbf16>
    %c0_27 = arith.constant 0 : index
    %c0_28 = arith.constant 0 : index
    %41 = vector.load %arg12[%c0_27, %c0_28] : memref<32x8xbf16, #tpu.memory_space<vmem>>, vector<32x8xbf16>
    %c0_29 = arith.constant 0 : index
    %c0_30 = arith.constant 0 : index
    %42 = vector.load %arg13[%c0_29, %c0_30] : memref<1x8xf32, #tpu.memory_space<vmem>>, vector<1x8xf32>
    %c0_31 = arith.constant 0 : index
    %c0_32 = arith.constant 0 : index
    %43 = vector.load %arg14[%c0_31, %c0_32] : memref<8x8xbf16, #tpu.memory_space<vmem>>, vector<8x8xbf16>
    %44 = arith.truncf %24 : vector<8x32xf32> to vector<8x32xbf16>
    %45 = arith.truncf %37 : vector<24x8xf32> to vector<24x8xbf16>
    %cst_33 = arith.constant dense<0.000000e+00> : vector<24x8xf32>
    %46 = tpu.matmul %45, %38, %cst_33 {dimension_numbers = #tpu.dot_dimension_numbers<[1], [0], [0], [1], [0, 0, 1, 1], [], []>} : vector<24x8xbf16>, vector<8x8xbf16>, vector<24x8xf32> -> vector<24x8xf32>
    %47 = vector.extract_strided_slice %46 {offsets = [0, 0], sizes = [8, 8], strides = [1, 1]} : vector<24x8xf32> to vector<8x8xf32>
    %48 = vector.extract_strided_slice %46 {offsets = [8, 0], sizes = [8, 8], strides = [1, 1]} : vector<24x8xf32> to vector<8x8xf32>
    %49 = vector.extract_strided_slice %46 {offsets = [16, 0], sizes = [8, 8], strides = [1, 1]} : vector<24x8xf32> to vector<8x8xf32>
    %50 = arith.mulf %47, %47 : vector<8x8xf32>
    %51 = arith.mulf %48, %48 : vector<8x8xf32>
    %52 = arith.addf %50, %51 : vector<8x8xf32>
    %53 = arith.mulf %49, %49 : vector<8x8xf32>
    %54 = arith.addf %52, %53 : vector<8x8xf32>
    %55 = math.sqrt %54 : vector<8x8xf32>
    %56 = arith.truncf %55 : vector<8x8xf32> to vector<8x8xbf16>
    %cst_34 = arith.constant dense<0.000000e+00> : vector<8x32xf32>
    %57 = tpu.matmul %56, %39, %cst_34 {dimension_numbers = #tpu.dot_dimension_numbers<[1], [0], [0], [1], [0, 0, 1, 1], [], []>} : vector<8x8xbf16>, vector<8x32xbf16>, vector<8x32xf32> -> vector<8x32xf32>
    %cst_35 = arith.constant dense<0.000000e+00> : vector<8x32xf32>
    %58 = tpu.matmul %44, %40, %cst_35 {dimension_numbers = #tpu.dot_dimension_numbers<[1], [0], [0], [1], [0, 0, 1, 1], [], []>} : vector<8x32xbf16>, vector<32x32xbf16>, vector<8x32xf32> -> vector<8x32xf32>
    %59 = arith.addf %57, %58 : vector<8x32xf32>
    %60 = arith.truncf %59 : vector<8x32xf32> to vector<8x32xbf16>
    %cst_36 = arith.constant dense<0.000000e+00> : vector<8x8xf32>
    %61 = tpu.matmul %60, %41, %cst_36 {dimension_numbers = #tpu.dot_dimension_numbers<[1], [0], [0], [1], [0, 0, 1, 1], [], []>} : vector<8x32xbf16>, vector<32x8xbf16>, vector<8x8xf32> -> vector<8x8xf32>
    %62 = vector.broadcast %42 : vector<1x8xf32> to vector<8x8xf32>
    %63 = arith.addf %61, %62 : vector<8x8xf32>
    %64 = arith.negf %63 : vector<8x8xf32>
    %65 = math.exp %64 : vector<8x8xf32>
    %cst_37 = arith.constant 1.000000e+00 : f32
    %66 = vector.broadcast %cst_37 : f32 to vector<8x8xf32>
    %67 = arith.addf %66, %65 : vector<8x8xf32>
    %68 = arith.divf %66, %67 : vector<8x8xf32>
    %69 = arith.truncf %46 : vector<24x8xf32> to vector<24x8xbf16>
    %cst_38 = arith.constant dense<0.000000e+00> : vector<24x8xf32>
    %70 = tpu.matmul %69, %43, %cst_38 {dimension_numbers = #tpu.dot_dimension_numbers<[1], [0], [0], [1], [0, 0, 1, 1], [], []>} : vector<24x8xbf16>, vector<8x8xbf16>, vector<24x8xf32> -> vector<24x8xf32>
    %71 = tpu.concatenate %68, %68, %68 in 0 : vector<8x8xf32>, vector<8x8xf32>, vector<8x8xf32> -> vector<24x8xf32>
    %72 = arith.mulf %70, %71 : vector<24x8xf32>
    %73 = tpu.concatenate %24, %59 in 1 : vector<8x32xf32>, vector<8x32xf32> -> vector<8x64xf32>
    %74 = tpu.concatenate %37, %72 in 1 : vector<24x8xf32>, vector<24x8xf32> -> vector<24x16xf32>
    %c0_39 = arith.constant 0 : index
    %c0_40 = arith.constant 0 : index
    %75 = vector.load %arg15[%c0_39, %c0_40] : memref<8x64xf32, #tpu.memory_space<vmem>>, vector<8x64xf32>
    tpu.vector_store %arg15[%c0_39, %c0_40], %73 {strides = array<i32>} : memref<8x64xf32, #tpu.memory_space<vmem>>, vector<8x64xf32>,
    %76 = vector.shape_cast %74 : vector<24x16xf32> to vector<3x8x16xf32>
    %c0_41 = arith.constant 0 : index
    %c0_42 = arith.constant 0 : index
    %c0_43 = arith.constant 0 : index
    %77 = vector.load %arg16[%c0_41, %c0_42, %c0_43] : memref<3x8x16xf32, #tpu.memory_space<vmem>>, vector<3x8x16xf32>
    tpu.vector_store %arg16[%c0_41, %c0_42, %c0_43], %76 {strides = array<i32>} : memref<3x8x16xf32, #tpu.memory_space<vmem>>, vector<3x8x16xf32>,
    return
  }
  func.func @transform_0(%arg0: i32) -> (i32, i32) {
    %c0_i32 = arith.constant 0 : i32
    %c0_i32_0 = arith.constant 0 : i32
    return %arg0, %c0_i32 : i32, i32
  }
  func.func @transform_1(%arg0: i32) -> (i32, i32, i32) {
    %c0_i32 = arith.constant 0 : i32
    %c0_i32_0 = arith.constant 0 : i32
    %c0_i32_1 = arith.constant 0 : i32
    return %c0_i32, %arg0, %c0_i32_0 : i32, i32, i32
  }
  func.func @transform_2(%arg0: i32) -> (i32, i32) {
    %c0_i32 = arith.constant 0 : i32
    %c0_i32_0 = arith.constant 0 : i32
    %c0_i32_1 = arith.constant 0 : i32
    return %c0_i32, %c0_i32_0 : i32, i32
  }
  func.func @transform_3(%arg0: i32) -> (i32, i32) {
    %c0_i32 = arith.constant 0 : i32
    %c0_i32_0 = arith.constant 0 : i32
    %c0_i32_1 = arith.constant 0 : i32
    return %c0_i32, %c0_i32_0 : i32, i32
  }
  func.func @transform_4(%arg0: i32) -> (i32, i32) {
    %c0_i32 = arith.constant 0 : i32
    %c0_i32_0 = arith.constant 0 : i32
    %c0_i32_1 = arith.constant 0 : i32
    return %c0_i32, %c0_i32_0 : i32, i32
  }
  func.func @transform_5(%arg0: i32) -> (i32, i32) {
    %c0_i32 = arith.constant 0 : i32
    %c0_i32_0 = arith.constant 0 : i32
    %c0_i32_1 = arith.constant 0 : i32
    return %c0_i32, %c0_i32_0 : i32, i32
  }
  func.func @transform_6(%arg0: i32) -> (i32, i32) {
    %c0_i32 = arith.constant 0 : i32
    %c0_i32_0 = arith.constant 0 : i32
    %c0_i32_1 = arith.constant 0 : i32
    return %c0_i32, %c0_i32_0 : i32, i32
  }
  func.func @transform_7(%arg0: i32) -> (i32, i32) {
    %c0_i32 = arith.constant 0 : i32
    %c0_i32_0 = arith.constant 0 : i32
    %c0_i32_1 = arith.constant 0 : i32
    return %c0_i32, %c0_i32_0 : i32, i32
  }
  func.func @transform_8(%arg0: i32) -> (i32, i32) {
    %c0_i32 = arith.constant 0 : i32
    %c0_i32_0 = arith.constant 0 : i32
    %c0_i32_1 = arith.constant 0 : i32
    return %c0_i32, %c0_i32_0 : i32, i32
  }
  func.func @transform_9(%arg0: i32) -> (i32, i32) {
    %c0_i32 = arith.constant 0 : i32
    %c0_i32_0 = arith.constant 0 : i32
    %c0_i32_1 = arith.constant 0 : i32
    return %c0_i32, %c0_i32_0 : i32, i32
  }
  func.func @transform_10(%arg0: i32) -> (i32, i32) {
    %c0_i32 = arith.constant 0 : i32
    %c0_i32_0 = arith.constant 0 : i32
    %c0_i32_1 = arith.constant 0 : i32
    return %c0_i32, %c0_i32_0 : i32, i32
  }
  func.func @transform_11(%arg0: i32) -> (i32, i32) {
    %c0_i32 = arith.constant 0 : i32
    %c0_i32_0 = arith.constant 0 : i32
    %c0_i32_1 = arith.constant 0 : i32
    return %c0_i32, %c0_i32_0 : i32, i32
  }
  func.func @transform_12(%arg0: i32) -> (i32, i32) {
    %c0_i32 = arith.constant 0 : i32
    %c0_i32_0 = arith.constant 0 : i32
    %c0_i32_1 = arith.constant 0 : i32
    return %c0_i32, %c0_i32_0 : i32, i32
  }
  func.func @transform_13(%arg0: i32) -> (i32, i32) {
    %c0_i32 = arith.constant 0 : i32
    %c0_i32_0 = arith.constant 0 : i32
    %c0_i32_1 = arith.constant 0 : i32
    return %c0_i32, %c0_i32_0 : i32, i32
  }
  func.func @transform_14(%arg0: i32) -> (i32, i32) {
    %c0_i32 = arith.constant 0 : i32
    %c0_i32_0 = arith.constant 0 : i32
    return %arg0, %c0_i32 : i32, i32
  }
  func.func @transform_15(%arg0: i32) -> (i32, i32, i32) {
    %c0_i32 = arith.constant 0 : i32
    %c0_i32_0 = arith.constant 0 : i32
    %c0_i32_1 = arith.constant 0 : i32
    return %c0_i32, %arg0, %c0_i32_0 : i32, i32, i32
  }
}

module attributes {stable_mosaic.version = 11 : i64} {
  func.func @kernel(%arg0: i32, %arg1: memref<48x16xf32, #tpu.memory_space<vmem>>, %arg2: memref<3x48x16xf32, #tpu.memory_space<vmem>>, %arg3: memref<16x16xbf16, #tpu.memory_space<vmem>>, %arg4: memref<16x16xbf16, #tpu.memory_space<vmem>>, %arg5: memref<16x16xbf16, #tpu.memory_space<vmem>>, %arg6: memref<16x16xbf16, #tpu.memory_space<vmem>>, %arg7: memref<1x16xf32, #tpu.memory_space<vmem>>, %arg8: memref<16x16xbf16, #tpu.memory_space<vmem>>, %arg9: memref<16x16xbf16, #tpu.memory_space<vmem>>, %arg10: memref<48x16xf32, #tpu.memory_space<vmem>>, %arg11: memref<3x48x16xf32, #tpu.memory_space<vmem>>) attributes {dimension_semantics = [#tpu.dimension_semantics<parallel>], iteration_bounds = array<i64: 1>, scalar_prefetch = 0 : i64, scratch_operands = 0 : i64, tpu.core_type = #tpu.core_type<tc>, window_params = [{transform_indices = @transform_0, window_bounds = array<i64: 48, 16>}, {transform_indices = @transform_1, window_bounds = array<i64: 3, 48, 16>}, {pipeline_mode = #tpu.pipeline_mode<synchronous>, transform_indices = @transform_2, window_bounds = array<i64: 16, 16>}, {pipeline_mode = #tpu.pipeline_mode<synchronous>, transform_indices = @transform_3, window_bounds = array<i64: 16, 16>}, {pipeline_mode = #tpu.pipeline_mode<synchronous>, transform_indices = @transform_4, window_bounds = array<i64: 16, 16>}, {pipeline_mode = #tpu.pipeline_mode<synchronous>, transform_indices = @transform_5, window_bounds = array<i64: 16, 16>}, {pipeline_mode = #tpu.pipeline_mode<synchronous>, transform_indices = @transform_6, window_bounds = array<i64: 1, 16>}, {pipeline_mode = #tpu.pipeline_mode<synchronous>, transform_indices = @transform_7, window_bounds = array<i64: 16, 16>}, {pipeline_mode = #tpu.pipeline_mode<synchronous>, transform_indices = @transform_8, window_bounds = array<i64: 16, 16>}, {transform_indices = @transform_9, window_bounds = array<i64: 48, 16>}, {transform_indices = @transform_10, window_bounds = array<i64: 3, 48, 16>}]} {
    %c0 = arith.constant 0 : index
    %c0_0 = arith.constant 0 : index
    %0 = vector.load %arg1[%c0, %c0_0] : memref<48x16xf32, #tpu.memory_space<vmem>>, vector<48x16xf32>
    %c0_1 = arith.constant 0 : index
    %c0_2 = arith.constant 0 : index
    %c0_3 = arith.constant 0 : index
    %1 = vector.load %arg2[%c0_1, %c0_2, %c0_3] : memref<3x48x16xf32, #tpu.memory_space<vmem>>, vector<3x48x16xf32>
    %2 = vector.shape_cast %1 : vector<3x48x16xf32> to vector<144x16xf32>
    %3 = arith.truncf %0 : vector<48x16xf32> to vector<48x16xbf16>
    %4 = arith.truncf %2 : vector<144x16xf32> to vector<144x16xbf16>
    %c0_4 = arith.constant 0 : index
    %c0_5 = arith.constant 0 : index
    %5 = vector.load %arg3[%c0_4, %c0_5] : memref<16x16xbf16, #tpu.memory_space<vmem>>, vector<16x16xbf16>
    %c0_6 = arith.constant 0 : index
    %c0_7 = arith.constant 0 : index
    %6 = vector.load %arg4[%c0_6, %c0_7] : memref<16x16xbf16, #tpu.memory_space<vmem>>, vector<16x16xbf16>
    %c0_8 = arith.constant 0 : index
    %c0_9 = arith.constant 0 : index
    %7 = vector.load %arg5[%c0_8, %c0_9] : memref<16x16xbf16, #tpu.memory_space<vmem>>, vector<16x16xbf16>
    %c0_10 = arith.constant 0 : index
    %c0_11 = arith.constant 0 : index
    %8 = vector.load %arg6[%c0_10, %c0_11] : memref<16x16xbf16, #tpu.memory_space<vmem>>, vector<16x16xbf16>
    %c0_12 = arith.constant 0 : index
    %c0_13 = arith.constant 0 : index
    %9 = vector.load %arg7[%c0_12, %c0_13] : memref<1x16xf32, #tpu.memory_space<vmem>>, vector<1x16xf32>
    %c0_14 = arith.constant 0 : index
    %c0_15 = arith.constant 0 : index
    %10 = vector.load %arg8[%c0_14, %c0_15] : memref<16x16xbf16, #tpu.memory_space<vmem>>, vector<16x16xbf16>
    %c0_16 = arith.constant 0 : index
    %c0_17 = arith.constant 0 : index
    %11 = vector.load %arg9[%c0_16, %c0_17] : memref<16x16xbf16, #tpu.memory_space<vmem>>, vector<16x16xbf16>
    %cst = arith.constant dense<0.000000e+00> : vector<144x16xf32>
    %12 = tpu.matmul %4, %5, %cst {dimension_numbers = #tpu.dot_dimension_numbers<[1], [0], [0], [1], [0, 0, 1, 1], [], []>} : vector<144x16xbf16>, vector<16x16xbf16>, vector<144x16xf32> -> vector<144x16xf32>
    %13 = vector.extract_strided_slice %12 {offsets = [0, 0], sizes = [48, 16], strides = [1, 1]} : vector<144x16xf32> to vector<48x16xf32>
    %14 = vector.extract_strided_slice %12 {offsets = [48, 0], sizes = [48, 16], strides = [1, 1]} : vector<144x16xf32> to vector<48x16xf32>
    %15 = vector.extract_strided_slice %12 {offsets = [96, 0], sizes = [48, 16], strides = [1, 1]} : vector<144x16xf32> to vector<48x16xf32>
    %16 = arith.mulf %13, %13 : vector<48x16xf32>
    %17 = arith.mulf %14, %14 : vector<48x16xf32>
    %18 = arith.addf %16, %17 : vector<48x16xf32>
    %19 = arith.mulf %15, %15 : vector<48x16xf32>
    %20 = arith.addf %18, %19 : vector<48x16xf32>
    %21 = math.sqrt %20 : vector<48x16xf32>
    %22 = arith.truncf %21 : vector<48x16xf32> to vector<48x16xbf16>
    %cst_18 = arith.constant dense<0.000000e+00> : vector<48x16xf32>
    %23 = tpu.matmul %22, %6, %cst_18 {dimension_numbers = #tpu.dot_dimension_numbers<[1], [0], [0], [1], [0, 0, 1, 1], [], []>} : vector<48x16xbf16>, vector<16x16xbf16>, vector<48x16xf32> -> vector<48x16xf32>
    %cst_19 = arith.constant dense<0.000000e+00> : vector<48x16xf32>
    %24 = tpu.matmul %3, %7, %cst_19 {dimension_numbers = #tpu.dot_dimension_numbers<[1], [0], [0], [1], [0, 0, 1, 1], [], []>} : vector<48x16xbf16>, vector<16x16xbf16>, vector<48x16xf32> -> vector<48x16xf32>
    %25 = arith.addf %23, %24 : vector<48x16xf32>
    %26 = arith.truncf %25 : vector<48x16xf32> to vector<48x16xbf16>
    %cst_20 = arith.constant dense<0.000000e+00> : vector<48x16xf32>
    %27 = tpu.matmul %26, %8, %cst_20 {dimension_numbers = #tpu.dot_dimension_numbers<[1], [0], [0], [1], [0, 0, 1, 1], [], []>} : vector<48x16xbf16>, vector<16x16xbf16>, vector<48x16xf32> -> vector<48x16xf32>
    %28 = vector.broadcast %9 : vector<1x16xf32> to vector<48x16xf32>
    %29 = arith.addf %27, %28 : vector<48x16xf32>
    %30 = arith.negf %29 : vector<48x16xf32>
    %31 = math.exp %30 : vector<48x16xf32>
    %cst_21 = arith.constant 1.000000e+00 : f32
    %32 = vector.broadcast %cst_21 : f32 to vector<48x16xf32>
    %33 = arith.addf %32, %31 : vector<48x16xf32>
    %34 = arith.divf %32, %33 : vector<48x16xf32>
    %35 = arith.truncf %12 : vector<144x16xf32> to vector<144x16xbf16>
    %cst_22 = arith.constant dense<0.000000e+00> : vector<144x16xf32>
    %36 = tpu.matmul %35, %10, %cst_22 {dimension_numbers = #tpu.dot_dimension_numbers<[1], [0], [0], [1], [0, 0, 1, 1], [], []>} : vector<144x16xbf16>, vector<16x16xbf16>, vector<144x16xf32> -> vector<144x16xf32>
    %37 = tpu.concatenate %34, %34, %34 in 0 : vector<48x16xf32>, vector<48x16xf32>, vector<48x16xf32> -> vector<144x16xf32>
    %38 = arith.mulf %36, %37 : vector<144x16xf32>
    %cst_23 = arith.constant 0.000000e+00 : f32
    %39 = vector.broadcast %cst_23 : f32 to vector<48x16xf32>
    %40 = arith.cmpf oge, %25, %39 : vector<48x16xf32>
    %cst_24 = arith.constant 0.00999999977 : f32
    %41 = vector.broadcast %cst_24 : f32 to vector<48x16xf32>
    %42 = arith.mulf %41, %25 : vector<48x16xf32>
    %43 = arith.select %40, %25, %42 : vector<48x16xi1>, vector<48x16xf32>
    %44 = arith.truncf %38 : vector<144x16xf32> to vector<144x16xbf16>
    %cst_25 = arith.constant dense<0.000000e+00> : vector<144x16xf32>
    %45 = tpu.matmul %44, %11, %cst_25 {dimension_numbers = #tpu.dot_dimension_numbers<[1], [0], [0], [1], [0, 0, 1, 1], [], []>} : vector<144x16xbf16>, vector<16x16xbf16>, vector<144x16xf32> -> vector<144x16xf32>
    %46 = vector.extract_strided_slice %38 {offsets = [0, 0], sizes = [48, 16], strides = [1, 1]} : vector<144x16xf32> to vector<48x16xf32>
    %47 = vector.extract_strided_slice %38 {offsets = [48, 0], sizes = [48, 16], strides = [1, 1]} : vector<144x16xf32> to vector<48x16xf32>
    %48 = vector.extract_strided_slice %38 {offsets = [96, 0], sizes = [48, 16], strides = [1, 1]} : vector<144x16xf32> to vector<48x16xf32>
    %49 = vector.extract_strided_slice %45 {offsets = [0, 0], sizes = [48, 16], strides = [1, 1]} : vector<144x16xf32> to vector<48x16xf32>
    %50 = vector.extract_strided_slice %45 {offsets = [48, 0], sizes = [48, 16], strides = [1, 1]} : vector<144x16xf32> to vector<48x16xf32>
    %51 = vector.extract_strided_slice %45 {offsets = [96, 0], sizes = [48, 16], strides = [1, 1]} : vector<144x16xf32> to vector<48x16xf32>
    %52 = arith.mulf %46, %49 : vector<48x16xf32>
    %53 = arith.mulf %47, %50 : vector<48x16xf32>
    %54 = arith.addf %52, %53 : vector<48x16xf32>
    %55 = arith.mulf %48, %51 : vector<48x16xf32>
    %56 = arith.addf %54, %55 : vector<48x16xf32>
    %57 = arith.mulf %49, %49 : vector<48x16xf32>
    %58 = arith.mulf %50, %50 : vector<48x16xf32>
    %59 = arith.addf %57, %58 : vector<48x16xf32>
    %60 = arith.mulf %51, %51 : vector<48x16xf32>
    %61 = arith.addf %59, %60 : vector<48x16xf32>
    %cst_26 = arith.constant 9.99999997E-7 : f32
    %62 = vector.broadcast %cst_26 : f32 to vector<48x16xf32>
    %63 = arith.addf %61, %62 : vector<48x16xf32>
    %64 = arith.divf %56, %63 : vector<48x16xf32>
    %cst_27 = arith.constant 0.000000e+00 : f32
    %65 = vector.broadcast %cst_27 : f32 to vector<48x16xf32>
    %66 = arith.cmpf oge, %56, %65 : vector<48x16xf32>
    %67 = arith.mulf %64, %49 : vector<48x16xf32>
    %68 = arith.subf %46, %67 : vector<48x16xf32>
    %69 = arith.select %66, %46, %68 : vector<48x16xi1>, vector<48x16xf32>
    %70 = arith.mulf %64, %50 : vector<48x16xf32>
    %71 = arith.subf %47, %70 : vector<48x16xf32>
    %72 = arith.select %66, %47, %71 : vector<48x16xi1>, vector<48x16xf32>
    %73 = arith.mulf %64, %51 : vector<48x16xf32>
    %74 = arith.subf %48, %73 : vector<48x16xf32>
    %75 = arith.select %66, %48, %74 : vector<48x16xi1>, vector<48x16xf32>
    %cst_28 = arith.constant 2.000000e-01 : f32
    %76 = vector.broadcast %cst_28 : f32 to vector<48x16xf32>
    %77 = arith.mulf %76, %46 : vector<48x16xf32>
    %cst_29 = arith.constant 8.000000e-01 : f32
    %78 = vector.broadcast %cst_29 : f32 to vector<48x16xf32>
    %79 = arith.mulf %78, %69 : vector<48x16xf32>
    %80 = arith.addf %77, %79 : vector<48x16xf32>
    %cst_30 = arith.constant 2.000000e-01 : f32
    %81 = vector.broadcast %cst_30 : f32 to vector<48x16xf32>
    %82 = arith.mulf %81, %47 : vector<48x16xf32>
    %cst_31 = arith.constant 8.000000e-01 : f32
    %83 = vector.broadcast %cst_31 : f32 to vector<48x16xf32>
    %84 = arith.mulf %83, %72 : vector<48x16xf32>
    %85 = arith.addf %82, %84 : vector<48x16xf32>
    %cst_32 = arith.constant 2.000000e-01 : f32
    %86 = vector.broadcast %cst_32 : f32 to vector<48x16xf32>
    %87 = arith.mulf %86, %48 : vector<48x16xf32>
    %cst_33 = arith.constant 8.000000e-01 : f32
    %88 = vector.broadcast %cst_33 : f32 to vector<48x16xf32>
    %89 = arith.mulf %88, %75 : vector<48x16xf32>
    %90 = arith.addf %87, %89 : vector<48x16xf32>
    %91 = tpu.concatenate %80, %85, %90 in 0 : vector<48x16xf32>, vector<48x16xf32>, vector<48x16xf32> -> vector<144x16xf32>
    %c0_34 = arith.constant 0 : index
    %c0_35 = arith.constant 0 : index
    %92 = vector.load %arg10[%c0_34, %c0_35] : memref<48x16xf32, #tpu.memory_space<vmem>>, vector<48x16xf32>
    tpu.vector_store %arg10[%c0_34, %c0_35], %43 {strides = array<i32>} : memref<48x16xf32, #tpu.memory_space<vmem>>, vector<48x16xf32>,
    %93 = vector.shape_cast %91 : vector<144x16xf32> to vector<3x48x16xf32>
    %c0_36 = arith.constant 0 : index
    %c0_37 = arith.constant 0 : index
    %c0_38 = arith.constant 0 : index
    %94 = vector.load %arg11[%c0_36, %c0_37, %c0_38] : memref<3x48x16xf32, #tpu.memory_space<vmem>>, vector<3x48x16xf32>
    tpu.vector_store %arg11[%c0_36, %c0_37, %c0_38], %93 {strides = array<i32>} : memref<3x48x16xf32, #tpu.memory_space<vmem>>, vector<3x48x16xf32>,
    return
  }
  func.func @transform_0(%arg0: i32) -> (i32, i32) {
    %c0_i32 = arith.constant 0 : i32
    %c0_i32_0 = arith.constant 0 : i32
    return %arg0, %c0_i32 : i32, i32
  }
  func.func @transform_1(%arg0: i32) -> (i32, i32, i32) {
    %c0_i32 = arith.constant 0 : i32
    %c0_i32_0 = arith.constant 0 : i32
    %c0_i32_1 = arith.constant 0 : i32
    return %c0_i32, %arg0, %c0_i32_0 : i32, i32, i32
  }
  func.func @transform_2(%arg0: i32) -> (i32, i32) {
    %c0_i32 = arith.constant 0 : i32
    %c0_i32_0 = arith.constant 0 : i32
    %c0_i32_1 = arith.constant 0 : i32
    return %c0_i32, %c0_i32_0 : i32, i32
  }
  func.func @transform_3(%arg0: i32) -> (i32, i32) {
    %c0_i32 = arith.constant 0 : i32
    %c0_i32_0 = arith.constant 0 : i32
    %c0_i32_1 = arith.constant 0 : i32
    return %c0_i32, %c0_i32_0 : i32, i32
  }
  func.func @transform_4(%arg0: i32) -> (i32, i32) {
    %c0_i32 = arith.constant 0 : i32
    %c0_i32_0 = arith.constant 0 : i32
    %c0_i32_1 = arith.constant 0 : i32
    return %c0_i32, %c0_i32_0 : i32, i32
  }
  func.func @transform_5(%arg0: i32) -> (i32, i32) {
    %c0_i32 = arith.constant 0 : i32
    %c0_i32_0 = arith.constant 0 : i32
    %c0_i32_1 = arith.constant 0 : i32
    return %c0_i32, %c0_i32_0 : i32, i32
  }
  func.func @transform_6(%arg0: i32) -> (i32, i32) {
    %c0_i32 = arith.constant 0 : i32
    %c0_i32_0 = arith.constant 0 : i32
    %c0_i32_1 = arith.constant 0 : i32
    return %c0_i32, %c0_i32_0 : i32, i32
  }
  func.func @transform_7(%arg0: i32) -> (i32, i32) {
    %c0_i32 = arith.constant 0 : i32
    %c0_i32_0 = arith.constant 0 : i32
    %c0_i32_1 = arith.constant 0 : i32
    return %c0_i32, %c0_i32_0 : i32, i32
  }
  func.func @transform_8(%arg0: i32) -> (i32, i32) {
    %c0_i32 = arith.constant 0 : i32
    %c0_i32_0 = arith.constant 0 : i32
    %c0_i32_1 = arith.constant 0 : i32
    return %c0_i32, %c0_i32_0 : i32, i32
  }
  func.func @transform_9(%arg0: i32) -> (i32, i32) {
    %c0_i32 = arith.constant 0 : i32
    %c0_i32_0 = arith.constant 0 : i32
    return %arg0, %c0_i32 : i32, i32
  }
  func.func @transform_10(%arg0: i32) -> (i32, i32, i32) {
    %c0_i32 = arith.constant 0 : i32
    %c0_i32_0 = arith.constant 0 : i32
    %c0_i32_1 = arith.constant 0 : i32
    return %c0_i32, %arg0, %c0_i32_0 : i32, i32, i32
  }
}

module attributes {stable_mosaic.version = 11 : i64} {
  func.func @kernel(%arg0: i32, %arg1: memref<48x32xf32, #tpu.memory_space<vmem>>, %arg2: memref<3x48x8xf32, #tpu.memory_space<vmem>>, %arg3: memref<8x8xbf16, #tpu.memory_space<vmem>>, %arg4: memref<8x32xbf16, #tpu.memory_space<vmem>>, %arg5: memref<32x32xbf16, #tpu.memory_space<vmem>>, %arg6: memref<32x8xbf16, #tpu.memory_space<vmem>>, %arg7: memref<1x8xf32, #tpu.memory_space<vmem>>, %arg8: memref<8x8xbf16, #tpu.memory_space<vmem>>, %arg9: memref<8x8xbf16, #tpu.memory_space<vmem>>, %arg10: memref<8x32xbf16, #tpu.memory_space<vmem>>, %arg11: memref<32x32xbf16, #tpu.memory_space<vmem>>, %arg12: memref<32x8xbf16, #tpu.memory_space<vmem>>, %arg13: memref<1x8xf32, #tpu.memory_space<vmem>>, %arg14: memref<8x8xbf16, #tpu.memory_space<vmem>>, %arg15: memref<48x64xf32, #tpu.memory_space<vmem>>, %arg16: memref<3x48x16xf32, #tpu.memory_space<vmem>>) attributes {dimension_semantics = [#tpu.dimension_semantics<parallel>], iteration_bounds = array<i64: 1>, scalar_prefetch = 0 : i64, scratch_operands = 0 : i64, tpu.core_type = #tpu.core_type<tc>, window_params = [{transform_indices = @transform_0, window_bounds = array<i64: 48, 32>}, {transform_indices = @transform_1, window_bounds = array<i64: 3, 48, 8>}, {pipeline_mode = #tpu.pipeline_mode<synchronous>, transform_indices = @transform_2, window_bounds = array<i64: 8, 8>}, {pipeline_mode = #tpu.pipeline_mode<synchronous>, transform_indices = @transform_3, window_bounds = array<i64: 8, 32>}, {pipeline_mode = #tpu.pipeline_mode<synchronous>, transform_indices = @transform_4, window_bounds = array<i64: 32, 32>}, {pipeline_mode = #tpu.pipeline_mode<synchronous>, transform_indices = @transform_5, window_bounds = array<i64: 32, 8>}, {pipeline_mode = #tpu.pipeline_mode<synchronous>, transform_indices = @transform_6, window_bounds = array<i64: 1, 8>}, {pipeline_mode = #tpu.pipeline_mode<synchronous>, transform_indices = @transform_7, window_bounds = array<i64: 8, 8>}, {pipeline_mode = #tpu.pipeline_mode<synchronous>, transform_indices = @transform_8, window_bounds = array<i64: 8, 8>}, {pipeline_mode = #tpu.pipeline_mode<synchronous>, transform_indices = @transform_9, window_bounds = array<i64: 8, 32>}, {pipeline_mode = #tpu.pipeline_mode<synchronous>, transform_indices = @transform_10, window_bounds = array<i64: 32, 32>}, {pipeline_mode = #tpu.pipeline_mode<synchronous>, transform_indices = @transform_11, window_bounds = array<i64: 32, 8>}, {pipeline_mode = #tpu.pipeline_mode<synchronous>, transform_indices = @transform_12, window_bounds = array<i64: 1, 8>}, {pipeline_mode = #tpu.pipeline_mode<synchronous>, transform_indices = @transform_13, window_bounds = array<i64: 8, 8>}, {transform_indices = @transform_14, window_bounds = array<i64: 48, 64>}, {transform_indices = @transform_15, window_bounds = array<i64: 3, 48, 16>}]} {
    %c0 = arith.constant 0 : index
    %c0_0 = arith.constant 0 : index
    %0 = vector.load %arg1[%c0, %c0_0] : memref<48x32xf32, #tpu.memory_space<vmem>>, vector<48x32xf32>
    %c0_1 = arith.constant 0 : index
    %c0_2 = arith.constant 0 : index
    %c0_3 = arith.constant 0 : index
    %1 = vector.load %arg2[%c0_1, %c0_2, %c0_3] : memref<3x48x8xf32, #tpu.memory_space<vmem>>, vector<3x48x8xf32>
    %2 = vector.shape_cast %1 : vector<3x48x8xf32> to vector<144x8xf32>
    %3 = arith.truncf %0 : vector<48x32xf32> to vector<48x32xbf16>
    %4 = arith.truncf %2 : vector<144x8xf32> to vector<144x8xbf16>
    %c0_4 = arith.constant 0 : index
    %c0_5 = arith.constant 0 : index
    %5 = vector.load %arg3[%c0_4, %c0_5] : memref<8x8xbf16, #tpu.memory_space<vmem>>, vector<8x8xbf16>
    %c0_6 = arith.constant 0 : index
    %c0_7 = arith.constant 0 : index
    %6 = vector.load %arg4[%c0_6, %c0_7] : memref<8x32xbf16, #tpu.memory_space<vmem>>, vector<8x32xbf16>
    %c0_8 = arith.constant 0 : index
    %c0_9 = arith.constant 0 : index
    %7 = vector.load %arg5[%c0_8, %c0_9] : memref<32x32xbf16, #tpu.memory_space<vmem>>, vector<32x32xbf16>
    %c0_10 = arith.constant 0 : index
    %c0_11 = arith.constant 0 : index
    %8 = vector.load %arg6[%c0_10, %c0_11] : memref<32x8xbf16, #tpu.memory_space<vmem>>, vector<32x8xbf16>
    %c0_12 = arith.constant 0 : index
    %c0_13 = arith.constant 0 : index
    %9 = vector.load %arg7[%c0_12, %c0_13] : memref<1x8xf32, #tpu.memory_space<vmem>>, vector<1x8xf32>
    %c0_14 = arith.constant 0 : index
    %c0_15 = arith.constant 0 : index
    %10 = vector.load %arg8[%c0_14, %c0_15] : memref<8x8xbf16, #tpu.memory_space<vmem>>, vector<8x8xbf16>
    %cst = arith.constant dense<0.000000e+00> : vector<144x8xf32>
    %11 = tpu.matmul %4, %5, %cst {dimension_numbers = #tpu.dot_dimension_numbers<[1], [0], [0], [1], [0, 0, 1, 1], [], []>} : vector<144x8xbf16>, vector<8x8xbf16>, vector<144x8xf32> -> vector<144x8xf32>
    %12 = vector.extract_strided_slice %11 {offsets = [0, 0], sizes = [48, 8], strides = [1, 1]} : vector<144x8xf32> to vector<48x8xf32>
    %13 = vector.extract_strided_slice %11 {offsets = [48, 0], sizes = [48, 8], strides = [1, 1]} : vector<144x8xf32> to vector<48x8xf32>
    %14 = vector.extract_strided_slice %11 {offsets = [96, 0], sizes = [48, 8], strides = [1, 1]} : vector<144x8xf32> to vector<48x8xf32>
    %15 = arith.mulf %12, %12 : vector<48x8xf32>
    %16 = arith.mulf %13, %13 : vector<48x8xf32>
    %17 = arith.addf %15, %16 : vector<48x8xf32>
    %18 = arith.mulf %14, %14 : vector<48x8xf32>
    %19 = arith.addf %17, %18 : vector<48x8xf32>
    %20 = math.sqrt %19 : vector<48x8xf32>
    %21 = arith.truncf %20 : vector<48x8xf32> to vector<48x8xbf16>
    %cst_16 = arith.constant dense<0.000000e+00> : vector<48x32xf32>
    %22 = tpu.matmul %21, %6, %cst_16 {dimension_numbers = #tpu.dot_dimension_numbers<[1], [0], [0], [1], [0, 0, 1, 1], [], []>} : vector<48x8xbf16>, vector<8x32xbf16>, vector<48x32xf32> -> vector<48x32xf32>
    %cst_17 = arith.constant dense<0.000000e+00> : vector<48x32xf32>
    %23 = tpu.matmul %3, %7, %cst_17 {dimension_numbers = #tpu.dot_dimension_numbers<[1], [0], [0], [1], [0, 0, 1, 1], [], []>} : vector<48x32xbf16>, vector<32x32xbf16>, vector<48x32xf32> -> vector<48x32xf32>
    %24 = arith.addf %22, %23 : vector<48x32xf32>
    %25 = arith.truncf %24 : vector<48x32xf32> to vector<48x32xbf16>
    %cst_18 = arith.constant dense<0.000000e+00> : vector<48x8xf32>
    %26 = tpu.matmul %25, %8, %cst_18 {dimension_numbers = #tpu.dot_dimension_numbers<[1], [0], [0], [1], [0, 0, 1, 1], [], []>} : vector<48x32xbf16>, vector<32x8xbf16>, vector<48x8xf32> -> vector<48x8xf32>
    %27 = vector.broadcast %9 : vector<1x8xf32> to vector<48x8xf32>
    %28 = arith.addf %26, %27 : vector<48x8xf32>
    %29 = arith.negf %28 : vector<48x8xf32>
    %30 = math.exp %29 : vector<48x8xf32>
    %cst_19 = arith.constant 1.000000e+00 : f32
    %31 = vector.broadcast %cst_19 : f32 to vector<48x8xf32>
    %32 = arith.addf %31, %30 : vector<48x8xf32>
    %33 = arith.divf %31, %32 : vector<48x8xf32>
    %34 = arith.truncf %11 : vector<144x8xf32> to vector<144x8xbf16>
    %cst_20 = arith.constant dense<0.000000e+00> : vector<144x8xf32>
    %35 = tpu.matmul %34, %10, %cst_20 {dimension_numbers = #tpu.dot_dimension_numbers<[1], [0], [0], [1], [0, 0, 1, 1], [], []>} : vector<144x8xbf16>, vector<8x8xbf16>, vector<144x8xf32> -> vector<144x8xf32>
    %36 = tpu.concatenate %33, %33, %33 in 0 : vector<48x8xf32>, vector<48x8xf32>, vector<48x8xf32> -> vector<144x8xf32>
    %37 = arith.mulf %35, %36 : vector<144x8xf32>
    %c0_21 = arith.constant 0 : index
    %c0_22 = arith.constant 0 : index
    %38 = vector.load %arg9[%c0_21, %c0_22] : memref<8x8xbf16, #tpu.memory_space<vmem>>, vector<8x8xbf16>
    %c0_23 = arith.constant 0 : index
    %c0_24 = arith.constant 0 : index
    %39 = vector.load %arg10[%c0_23, %c0_24] : memref<8x32xbf16, #tpu.memory_space<vmem>>, vector<8x32xbf16>
    %c0_25 = arith.constant 0 : index
    %c0_26 = arith.constant 0 : index
    %40 = vector.load %arg11[%c0_25, %c0_26] : memref<32x32xbf16, #tpu.memory_space<vmem>>, vector<32x32xbf16>
    %c0_27 = arith.constant 0 : index
    %c0_28 = arith.constant 0 : index
    %41 = vector.load %arg12[%c0_27, %c0_28] : memref<32x8xbf16, #tpu.memory_space<vmem>>, vector<32x8xbf16>
    %c0_29 = arith.constant 0 : index
    %c0_30 = arith.constant 0 : index
    %42 = vector.load %arg13[%c0_29, %c0_30] : memref<1x8xf32, #tpu.memory_space<vmem>>, vector<1x8xf32>
    %c0_31 = arith.constant 0 : index
    %c0_32 = arith.constant 0 : index
    %43 = vector.load %arg14[%c0_31, %c0_32] : memref<8x8xbf16, #tpu.memory_space<vmem>>, vector<8x8xbf16>
    %cst_33 = arith.constant dense<0.000000e+00> : vector<144x8xf32>
    %44 = tpu.matmul %4, %38, %cst_33 {dimension_numbers = #tpu.dot_dimension_numbers<[1], [0], [0], [1], [0, 0, 1, 1], [], []>} : vector<144x8xbf16>, vector<8x8xbf16>, vector<144x8xf32> -> vector<144x8xf32>
    %45 = vector.extract_strided_slice %44 {offsets = [0, 0], sizes = [48, 8], strides = [1, 1]} : vector<144x8xf32> to vector<48x8xf32>
    %46 = vector.extract_strided_slice %44 {offsets = [48, 0], sizes = [48, 8], strides = [1, 1]} : vector<144x8xf32> to vector<48x8xf32>
    %47 = vector.extract_strided_slice %44 {offsets = [96, 0], sizes = [48, 8], strides = [1, 1]} : vector<144x8xf32> to vector<48x8xf32>
    %48 = arith.mulf %45, %45 : vector<48x8xf32>
    %49 = arith.mulf %46, %46 : vector<48x8xf32>
    %50 = arith.addf %48, %49 : vector<48x8xf32>
    %51 = arith.mulf %47, %47 : vector<48x8xf32>
    %52 = arith.addf %50, %51 : vector<48x8xf32>
    %53 = math.sqrt %52 : vector<48x8xf32>
    %54 = arith.truncf %53 : vector<48x8xf32> to vector<48x8xbf16>
    %cst_34 = arith.constant dense<0.000000e+00> : vector<48x32xf32>
    %55 = tpu.matmul %54, %39, %cst_34 {dimension_numbers = #tpu.dot_dimension_numbers<[1], [0], [0], [1], [0, 0, 1, 1], [], []>} : vector<48x8xbf16>, vector<8x32xbf16>, vector<48x32xf32> -> vector<48x32xf32>
    %cst_35 = arith.constant dense<0.000000e+00> : vector<48x32xf32>
    %56 = tpu.matmul %3, %40, %cst_35 {dimension_numbers = #tpu.dot_dimension_numbers<[1], [0], [0], [1], [0, 0, 1, 1], [], []>} : vector<48x32xbf16>, vector<32x32xbf16>, vector<48x32xf32> -> vector<48x32xf32>
    %57 = arith.addf %55, %56 : vector<48x32xf32>
    %58 = arith.truncf %57 : vector<48x32xf32> to vector<48x32xbf16>
    %cst_36 = arith.constant dense<0.000000e+00> : vector<48x8xf32>
    %59 = tpu.matmul %58, %41, %cst_36 {dimension_numbers = #tpu.dot_dimension_numbers<[1], [0], [0], [1], [0, 0, 1, 1], [], []>} : vector<48x32xbf16>, vector<32x8xbf16>, vector<48x8xf32> -> vector<48x8xf32>
    %60 = vector.broadcast %42 : vector<1x8xf32> to vector<48x8xf32>
    %61 = arith.addf %59, %60 : vector<48x8xf32>
    %62 = arith.negf %61 : vector<48x8xf32>
    %63 = math.exp %62 : vector<48x8xf32>
    %cst_37 = arith.constant 1.000000e+00 : f32
    %64 = vector.broadcast %cst_37 : f32 to vector<48x8xf32>
    %65 = arith.addf %64, %63 : vector<48x8xf32>
    %66 = arith.divf %64, %65 : vector<48x8xf32>
    %67 = arith.truncf %44 : vector<144x8xf32> to vector<144x8xbf16>
    %cst_38 = arith.constant dense<0.000000e+00> : vector<144x8xf32>
    %68 = tpu.matmul %67, %43, %cst_38 {dimension_numbers = #tpu.dot_dimension_numbers<[1], [0], [0], [1], [0, 0, 1, 1], [], []>} : vector<144x8xbf16>, vector<8x8xbf16>, vector<144x8xf32> -> vector<144x8xf32>
    %69 = tpu.concatenate %66, %66, %66 in 0 : vector<48x8xf32>, vector<48x8xf32>, vector<48x8xf32> -> vector<144x8xf32>
    %70 = arith.mulf %68, %69 : vector<144x8xf32>
    %71 = tpu.concatenate %24, %57 in 1 : vector<48x32xf32>, vector<48x32xf32> -> vector<48x64xf32>
    %72 = tpu.concatenate %37, %70 in 1 : vector<144x8xf32>, vector<144x8xf32> -> vector<144x16xf32>
    %c0_39 = arith.constant 0 : index
    %c0_40 = arith.constant 0 : index
    %73 = vector.load %arg15[%c0_39, %c0_40] : memref<48x64xf32, #tpu.memory_space<vmem>>, vector<48x64xf32>
    tpu.vector_store %arg15[%c0_39, %c0_40], %71 {strides = array<i32>} : memref<48x64xf32, #tpu.memory_space<vmem>>, vector<48x64xf32>,
    %74 = vector.shape_cast %72 : vector<144x16xf32> to vector<3x48x16xf32>
    %c0_41 = arith.constant 0 : index
    %c0_42 = arith.constant 0 : index
    %c0_43 = arith.constant 0 : index
    %75 = vector.load %arg16[%c0_41, %c0_42, %c0_43] : memref<3x48x16xf32, #tpu.memory_space<vmem>>, vector<3x48x16xf32>
    tpu.vector_store %arg16[%c0_41, %c0_42, %c0_43], %74 {strides = array<i32>} : memref<3x48x16xf32, #tpu.memory_space<vmem>>, vector<3x48x16xf32>,
    return
  }
  func.func @transform_0(%arg0: i32) -> (i32, i32) {
    %c0_i32 = arith.constant 0 : i32
    %c0_i32_0 = arith.constant 0 : i32
    return %arg0, %c0_i32 : i32, i32
  }
  func.func @transform_1(%arg0: i32) -> (i32, i32, i32) {
    %c0_i32 = arith.constant 0 : i32
    %c0_i32_0 = arith.constant 0 : i32
    %c0_i32_1 = arith.constant 0 : i32
    return %c0_i32, %arg0, %c0_i32_0 : i32, i32, i32
  }
  func.func @transform_2(%arg0: i32) -> (i32, i32) {
    %c0_i32 = arith.constant 0 : i32
    %c0_i32_0 = arith.constant 0 : i32
    %c0_i32_1 = arith.constant 0 : i32
    return %c0_i32, %c0_i32_0 : i32, i32
  }
  func.func @transform_3(%arg0: i32) -> (i32, i32) {
    %c0_i32 = arith.constant 0 : i32
    %c0_i32_0 = arith.constant 0 : i32
    %c0_i32_1 = arith.constant 0 : i32
    return %c0_i32, %c0_i32_0 : i32, i32
  }
  func.func @transform_4(%arg0: i32) -> (i32, i32) {
    %c0_i32 = arith.constant 0 : i32
    %c0_i32_0 = arith.constant 0 : i32
    %c0_i32_1 = arith.constant 0 : i32
    return %c0_i32, %c0_i32_0 : i32, i32
  }
  func.func @transform_5(%arg0: i32) -> (i32, i32) {
    %c0_i32 = arith.constant 0 : i32
    %c0_i32_0 = arith.constant 0 : i32
    %c0_i32_1 = arith.constant 0 : i32
    return %c0_i32, %c0_i32_0 : i32, i32
  }
  func.func @transform_6(%arg0: i32) -> (i32, i32) {
    %c0_i32 = arith.constant 0 : i32
    %c0_i32_0 = arith.constant 0 : i32
    %c0_i32_1 = arith.constant 0 : i32
    return %c0_i32, %c0_i32_0 : i32, i32
  }
  func.func @transform_7(%arg0: i32) -> (i32, i32) {
    %c0_i32 = arith.constant 0 : i32
    %c0_i32_0 = arith.constant 0 : i32
    %c0_i32_1 = arith.constant 0 : i32
    return %c0_i32, %c0_i32_0 : i32, i32
  }
  func.func @transform_8(%arg0: i32) -> (i32, i32) {
    %c0_i32 = arith.constant 0 : i32
    %c0_i32_0 = arith.constant 0 : i32
    %c0_i32_1 = arith.constant 0 : i32
    return %c0_i32, %c0_i32_0 : i32, i32
  }
  func.func @transform_9(%arg0: i32) -> (i32, i32) {
    %c0_i32 = arith.constant 0 : i32
    %c0_i32_0 = arith.constant 0 : i32
    %c0_i32_1 = arith.constant 0 : i32
    return %c0_i32, %c0_i32_0 : i32, i32
  }
  func.func @transform_10(%arg0: i32) -> (i32, i32) {
    %c0_i32 = arith.constant 0 : i32
    %c0_i32_0 = arith.constant 0 : i32
    %c0_i32_1 = arith.constant 0 : i32
    return %c0_i32, %c0_i32_0 : i32, i32
  }
  func.func @transform_11(%arg0: i32) -> (i32, i32) {
    %c0_i32 = arith.constant 0 : i32
    %c0_i32_0 = arith.constant 0 : i32
    %c0_i32_1 = arith.constant 0 : i32
    return %c0_i32, %c0_i32_0 : i32, i32
  }
  func.func @transform_12(%arg0: i32) -> (i32, i32) {
    %c0_i32 = arith.constant 0 : i32
    %c0_i32_0 = arith.constant 0 : i32
    %c0_i32_1 = arith.constant 0 : i32
    return %c0_i32, %c0_i32_0 : i32, i32
  }
  func.func @transform_13(%arg0: i32) -> (i32, i32) {
    %c0_i32 = arith.constant 0 : i32
    %c0_i32_0 = arith.constant 0 : i32
    %c0_i32_1 = arith.constant 0 : i32
    return %c0_i32, %c0_i32_0 : i32, i32
  }
  func.func @transform_14(%arg0: i32) -> (i32, i32) {
    %c0_i32 = arith.constant 0 : i32
    %c0_i32_0 = arith.constant 0 : i32
    return %arg0, %c0_i32 : i32, i32
  }
  func.func @transform_15(%arg0: i32) -> (i32, i32, i32) {
    %c0_i32 = arith.constant 0 : i32
    %c0_i32_0 = arith.constant 0 : i32
    %c0_i32_1 = arith.constant 0 : i32
    return %c0_i32, %arg0, %c0_i32_0 : i32, i32, i32
  }
}

module attributes {stable_mosaic.version = 11 : i64} {
  func.func @kernel(%arg0: i32, %arg1: memref<48x32xf32, #tpu.memory_space<vmem>>, %arg2: memref<3x48x8xf32, #tpu.memory_space<vmem>>, %arg3: memref<8x8xbf16, #tpu.memory_space<vmem>>, %arg4: memref<8x32xbf16, #tpu.memory_space<vmem>>, %arg5: memref<32x32xbf16, #tpu.memory_space<vmem>>, %arg6: memref<32x8xbf16, #tpu.memory_space<vmem>>, %arg7: memref<1x8xf32, #tpu.memory_space<vmem>>, %arg8: memref<8x8xbf16, #tpu.memory_space<vmem>>, %arg9: memref<48x32xf32, #tpu.memory_space<vmem>>, %arg10: memref<3x48x8xf32, #tpu.memory_space<vmem>>) attributes {dimension_semantics = [#tpu.dimension_semantics<parallel>], iteration_bounds = array<i64: 1>, scalar_prefetch = 0 : i64, scratch_operands = 0 : i64, tpu.core_type = #tpu.core_type<tc>, window_params = [{transform_indices = @transform_0, window_bounds = array<i64: 48, 32>}, {transform_indices = @transform_1, window_bounds = array<i64: 3, 48, 8>}, {pipeline_mode = #tpu.pipeline_mode<synchronous>, transform_indices = @transform_2, window_bounds = array<i64: 8, 8>}, {pipeline_mode = #tpu.pipeline_mode<synchronous>, transform_indices = @transform_3, window_bounds = array<i64: 8, 32>}, {pipeline_mode = #tpu.pipeline_mode<synchronous>, transform_indices = @transform_4, window_bounds = array<i64: 32, 32>}, {pipeline_mode = #tpu.pipeline_mode<synchronous>, transform_indices = @transform_5, window_bounds = array<i64: 32, 8>}, {pipeline_mode = #tpu.pipeline_mode<synchronous>, transform_indices = @transform_6, window_bounds = array<i64: 1, 8>}, {pipeline_mode = #tpu.pipeline_mode<synchronous>, transform_indices = @transform_7, window_bounds = array<i64: 8, 8>}, {transform_indices = @transform_8, window_bounds = array<i64: 48, 32>}, {transform_indices = @transform_9, window_bounds = array<i64: 3, 48, 8>}]} {
    %c0 = arith.constant 0 : index
    %c0_0 = arith.constant 0 : index
    %0 = vector.load %arg1[%c0, %c0_0] : memref<48x32xf32, #tpu.memory_space<vmem>>, vector<48x32xf32>
    %c0_1 = arith.constant 0 : index
    %c0_2 = arith.constant 0 : index
    %c0_3 = arith.constant 0 : index
    %1 = vector.load %arg2[%c0_1, %c0_2, %c0_3] : memref<3x48x8xf32, #tpu.memory_space<vmem>>, vector<3x48x8xf32>
    %2 = vector.shape_cast %1 : vector<3x48x8xf32> to vector<144x8xf32>
    %3 = arith.truncf %0 : vector<48x32xf32> to vector<48x32xbf16>
    %4 = arith.truncf %2 : vector<144x8xf32> to vector<144x8xbf16>
    %c0_4 = arith.constant 0 : index
    %c0_5 = arith.constant 0 : index
    %5 = vector.load %arg3[%c0_4, %c0_5] : memref<8x8xbf16, #tpu.memory_space<vmem>>, vector<8x8xbf16>
    %c0_6 = arith.constant 0 : index
    %c0_7 = arith.constant 0 : index
    %6 = vector.load %arg4[%c0_6, %c0_7] : memref<8x32xbf16, #tpu.memory_space<vmem>>, vector<8x32xbf16>
    %c0_8 = arith.constant 0 : index
    %c0_9 = arith.constant 0 : index
    %7 = vector.load %arg5[%c0_8, %c0_9] : memref<32x32xbf16, #tpu.memory_space<vmem>>, vector<32x32xbf16>
    %c0_10 = arith.constant 0 : index
    %c0_11 = arith.constant 0 : index
    %8 = vector.load %arg6[%c0_10, %c0_11] : memref<32x8xbf16, #tpu.memory_space<vmem>>, vector<32x8xbf16>
    %c0_12 = arith.constant 0 : index
    %c0_13 = arith.constant 0 : index
    %9 = vector.load %arg7[%c0_12, %c0_13] : memref<1x8xf32, #tpu.memory_space<vmem>>, vector<1x8xf32>
    %c0_14 = arith.constant 0 : index
    %c0_15 = arith.constant 0 : index
    %10 = vector.load %arg8[%c0_14, %c0_15] : memref<8x8xbf16, #tpu.memory_space<vmem>>, vector<8x8xbf16>
    %cst = arith.constant dense<0.000000e+00> : vector<144x8xf32>
    %11 = tpu.matmul %4, %5, %cst {dimension_numbers = #tpu.dot_dimension_numbers<[1], [0], [0], [1], [0, 0, 1, 1], [], []>} : vector<144x8xbf16>, vector<8x8xbf16>, vector<144x8xf32> -> vector<144x8xf32>
    %12 = vector.extract_strided_slice %11 {offsets = [0, 0], sizes = [48, 8], strides = [1, 1]} : vector<144x8xf32> to vector<48x8xf32>
    %13 = vector.extract_strided_slice %11 {offsets = [48, 0], sizes = [48, 8], strides = [1, 1]} : vector<144x8xf32> to vector<48x8xf32>
    %14 = vector.extract_strided_slice %11 {offsets = [96, 0], sizes = [48, 8], strides = [1, 1]} : vector<144x8xf32> to vector<48x8xf32>
    %15 = arith.mulf %12, %12 : vector<48x8xf32>
    %16 = arith.mulf %13, %13 : vector<48x8xf32>
    %17 = arith.addf %15, %16 : vector<48x8xf32>
    %18 = arith.mulf %14, %14 : vector<48x8xf32>
    %19 = arith.addf %17, %18 : vector<48x8xf32>
    %20 = math.sqrt %19 : vector<48x8xf32>
    %21 = arith.truncf %20 : vector<48x8xf32> to vector<48x8xbf16>
    %cst_16 = arith.constant dense<0.000000e+00> : vector<48x32xf32>
    %22 = tpu.matmul %21, %6, %cst_16 {dimension_numbers = #tpu.dot_dimension_numbers<[1], [0], [0], [1], [0, 0, 1, 1], [], []>} : vector<48x8xbf16>, vector<8x32xbf16>, vector<48x32xf32> -> vector<48x32xf32>
    %cst_17 = arith.constant dense<0.000000e+00> : vector<48x32xf32>
    %23 = tpu.matmul %3, %7, %cst_17 {dimension_numbers = #tpu.dot_dimension_numbers<[1], [0], [0], [1], [0, 0, 1, 1], [], []>} : vector<48x32xbf16>, vector<32x32xbf16>, vector<48x32xf32> -> vector<48x32xf32>
    %24 = arith.addf %22, %23 : vector<48x32xf32>
    %25 = arith.truncf %24 : vector<48x32xf32> to vector<48x32xbf16>
    %cst_18 = arith.constant dense<0.000000e+00> : vector<48x8xf32>
    %26 = tpu.matmul %25, %8, %cst_18 {dimension_numbers = #tpu.dot_dimension_numbers<[1], [0], [0], [1], [0, 0, 1, 1], [], []>} : vector<48x32xbf16>, vector<32x8xbf16>, vector<48x8xf32> -> vector<48x8xf32>
    %27 = vector.broadcast %9 : vector<1x8xf32> to vector<48x8xf32>
    %28 = arith.addf %26, %27 : vector<48x8xf32>
    %29 = arith.negf %28 : vector<48x8xf32>
    %30 = math.exp %29 : vector<48x8xf32>
    %cst_19 = arith.constant 1.000000e+00 : f32
    %31 = vector.broadcast %cst_19 : f32 to vector<48x8xf32>
    %32 = arith.addf %31, %30 : vector<48x8xf32>
    %33 = arith.divf %31, %32 : vector<48x8xf32>
    %34 = arith.truncf %11 : vector<144x8xf32> to vector<144x8xbf16>
    %cst_20 = arith.constant dense<0.000000e+00> : vector<144x8xf32>
    %35 = tpu.matmul %34, %10, %cst_20 {dimension_numbers = #tpu.dot_dimension_numbers<[1], [0], [0], [1], [0, 0, 1, 1], [], []>} : vector<144x8xbf16>, vector<8x8xbf16>, vector<144x8xf32> -> vector<144x8xf32>
    %36 = tpu.concatenate %33, %33, %33 in 0 : vector<48x8xf32>, vector<48x8xf32>, vector<48x8xf32> -> vector<144x8xf32>
    %37 = arith.mulf %35, %36 : vector<144x8xf32>
    %c0_21 = arith.constant 0 : index
    %c0_22 = arith.constant 0 : index
    %38 = vector.load %arg9[%c0_21, %c0_22] : memref<48x32xf32, #tpu.memory_space<vmem>>, vector<48x32xf32>
    tpu.vector_store %arg9[%c0_21, %c0_22], %24 {strides = array<i32>} : memref<48x32xf32, #tpu.memory_space<vmem>>, vector<48x32xf32>,
    %39 = vector.shape_cast %37 : vector<144x8xf32> to vector<3x48x8xf32>
    %c0_23 = arith.constant 0 : index
    %c0_24 = arith.constant 0 : index
    %c0_25 = arith.constant 0 : index
    %40 = vector.load %arg10[%c0_23, %c0_24, %c0_25] : memref<3x48x8xf32, #tpu.memory_space<vmem>>, vector<3x48x8xf32>
    tpu.vector_store %arg10[%c0_23, %c0_24, %c0_25], %39 {strides = array<i32>} : memref<3x48x8xf32, #tpu.memory_space<vmem>>, vector<3x48x8xf32>,
    return
  }
  func.func @transform_0(%arg0: i32) -> (i32, i32) {
    %c0_i32 = arith.constant 0 : i32
    %c0_i32_0 = arith.constant 0 : i32
    return %arg0, %c0_i32 : i32, i32
  }
  func.func @transform_1(%arg0: i32) -> (i32, i32, i32) {
    %c0_i32 = arith.constant 0 : i32
    %c0_i32_0 = arith.constant 0 : i32
    %c0_i32_1 = arith.constant 0 : i32
    return %c0_i32, %arg0, %c0_i32_0 : i32, i32, i32
  }
  func.func @transform_2(%arg0: i32) -> (i32, i32) {
    %c0_i32 = arith.constant 0 : i32
    %c0_i32_0 = arith.constant 0 : i32
    %c0_i32_1 = arith.constant 0 : i32
    return %c0_i32, %c0_i32_0 : i32, i32
  }
  func.func @transform_3(%arg0: i32) -> (i32, i32) {
    %c0_i32 = arith.constant 0 : i32
    %c0_i32_0 = arith.constant 0 : i32
    %c0_i32_1 = arith.constant 0 : i32
    return %c0_i32, %c0_i32_0 : i32, i32
  }
  func.func @transform_4(%arg0: i32) -> (i32, i32) {
    %c0_i32 = arith.constant 0 : i32
    %c0_i32_0 = arith.constant 0 : i32
    %c0_i32_1 = arith.constant 0 : i32
    return %c0_i32, %c0_i32_0 : i32, i32
  }
  func.func @transform_5(%arg0: i32) -> (i32, i32) {
    %c0_i32 = arith.constant 0 : i32
    %c0_i32_0 = arith.constant 0 : i32
    %c0_i32_1 = arith.constant 0 : i32
    return %c0_i32, %c0_i32_0 : i32, i32
  }
  func.func @transform_6(%arg0: i32) -> (i32, i32) {
    %c0_i32 = arith.constant 0 : i32
    %c0_i32_0 = arith.constant 0 : i32
    %c0_i32_1 = arith.constant 0 : i32
    return %c0_i32, %c0_i32_0 : i32, i32
  }
  func.func @transform_7(%arg0: i32) -> (i32, i32) {
    %c0_i32 = arith.constant 0 : i32
    %c0_i32_0 = arith.constant 0 : i32
    %c0_i32_1 = arith.constant 0 : i32
    return %c0_i32, %c0_i32_0 : i32, i32
  }
  func.func @transform_8(%arg0: i32) -> (i32, i32) {
    %c0_i32 = arith.constant 0 : i32
    %c0_i32_0 = arith.constant 0 : i32
    return %arg0, %c0_i32 : i32, i32
  }
  func.func @transform_9(%arg0: i32) -> (i32, i32, i32) {
    %c0_i32 = arith.constant 0 : i32
    %c0_i32_0 = arith.constant 0 : i32
    %c0_i32_1 = arith.constant 0 : i32
    return %c0_i32, %arg0, %c0_i32_0 : i32, i32, i32
  }
}

</mosaic_0001>

<bundles_post_ra>
// kernel: _lambda_.6
= control target key start
LH: loop header
LB: loop body
LE: loop exit
PB: predicated region body
PF: predicated region fallthrough
CT: control target
= control target key end

     0   :  { %v536_v0 = vmov 0.0   ;;  %vm537_vm0 = vmmov 0   ;;  %vm63_vm1 = vcmask 130048   ;;  %vm274_vm6 = vcmask 261120   ;;  %s690_s2 = inlined_call_operand.vmem [shape: bf16[16,16], index: 2, kind: input, shape index: {}]   ;;  %s691_s1 = inlined_call_operand.vmem [shape: f32[3,16,16], index: 1, kind: input, shape index: {}]   ;;  %s692_s7 = inlined_call_operand.vmem [shape: bf16[16,8], index: 7, kind: input, shape index: {}]   ;;  %s693_s4 = inlined_call_operand.vmem [shape: bf16[16,32], index: 4, kind: input, shape index: {}]   ;;  %s694_s0 = inlined_call_operand.vmem [shape: f32[16,16], index: 0, kind: input, shape index: {}]   ;;  %s695_s3 = inlined_call_operand.vmem [shape: bf16[16,32], index: 3, kind: input, shape index: {}]   ;;  %s696_s5 = inlined_call_operand.vmem [shape: bf16[32,8], index: 5, kind: input, shape index: {}]   ;;  %s697_s8 = inlined_call_operand.vmem [shape: f32[16,32], index: 8, kind: output, shape index: {0}]   ;;  %s698_s6 = inlined_call_operand.vmem [shape: f32[1,8], index: 6, kind: input, shape index: {}]   ;;  %s699_s9 = inlined_call_operand.vmem [shape: f32[3,16,8], index: 9, kind: output, shape index: {1}]  }
   0x1   :  { %462 = vmatprep.subr.bf16.mxu0 %v536_v0  ;;  %510 = vmatprep.subr.bf16.mxu1 %v536_v0  ;;  %v518_v1 = vld [vmem:[%s690_s2] sm:$0xff]   ;;  %v35_v3 = vld [vmem:[%s691_s1 + $0x8] sm:$0xff]  ;;  %v36_v4 = vld [vmem:[%s691_s1 + $0x10] sm:$0xff]  ;;  %vm414_vm7 = vcmask 64512  }
   0x2   :  { %464 = vmatprep.mubr.msk.bf16.mxu0 %vm537_vm0, %v536_v0  ;;  %468 = vmatprep.mubr.msk.bf16.mxu1 %vm537_vm0, %v536_v0  ;;  %v34_v2 = vld [vmem:[%s691_s1] sm:$0xff]  ;;  %v37_v6 = vld [vmem:[%s691_s1 + $0x18] sm:$0xff]  ;;  %v39_v9 = vld [vmem:[%s691_s1 + $0x28] sm:$0xff] }
   0x3   :  { %463 = vmatpush3.bf16.msra.mxu0 %v518_v1  ;;  %511 = vmatpush3.bf16.msra.mxu1 %v518_v1  ;;  %v41_v5 = vpack.c.bf16 %v35_v3, %v34_v2  ;;  %v42_v7 = vpack.c.bf16 %v37_v6, %v36_v4  ;;  %v38_v8 = vld [vmem:[%s691_s1 + $0x20] sm:$0xff]  ;;  %v33_v14 = vld [vmem:[%s694_s0 + $0x8] sm:$0xff] }
   0x4   :  { %496 = vmatprep.subr.bf16.mxu0 %v536_v0  ;;  %476 = vmatprep.subr.bf16.mxu1 %v536_v0  ;;  %v43_v10 = vpack.c.bf16 %v39_v9, %v38_v8  ;;  %v519_v11 = vld [vmem:[%s692_s7] sm:$0xff]   ;;  %v523_v54 = vld [vmem:[%s696_s5 + $0x8] sm:$0xff]  }
   0x5   :  { %v520_v12 = vld [vmem:[%s693_s4] sm:$0xff]  }
   0x6   :  { %465 = vmatmul.mubr.msk.bf16.vlgmr.msra.gmra.mrb[0].mxu0 %vm63_vm1, %v41_v5  ;;  %469 = vmatmul.mubr.msk.bf16.vlgmr.msra.gmra.mrb[0].mxu1 %vm63_vm1, %v42_v7  ;;  %v32_v13 = vld [vmem:[%s694_s0] sm:$0xff] }
   0x7   :  { %472 = vmatprep.mubr.msk.bf16.mxu1 %vm537_vm0, %v536_v0  ;;  %498 = vmatprep.mubr.msk.bf16.mxu0 %vm537_vm0, %v536_v0  ;;  %v40_v15 = vpack.c.bf16 %v33_v14, %v32_v13  ;;  %v521_v16 = vld [vmem:[%s695_s3] sm:$0xff]  }
   0x8   :  { %497 = vmatpush3.bf16.msra.mxu0 %v519_v11  ;;  %477 = vmatpush3.bf16.msra.mxu1 %v520_v12  ;;  %v522_v53 = vld [vmem:[%s696_s5] sm:$0xff]  }
   0x9   :  { %482 = vmatprep.subr.bf16.mxu1 %v536_v0  ;;  %v437_v8 = vld [vmem:[%s698_s6] ss:$0 sm:$0xff] }
   0xe   :  { %473 = vmatmul.mubr.msk.bf16.gmra.mrb[4].mxu1 %vm63_vm1, %v43_v10 }
   0xf   :  { %478 = vmatprep.mubr.msk.bf16.mxu1 %vm537_vm0, %v536_v0 }
  0x16   :  { %479 = vmatmul.mubr.msk.bf16.vlgmr.msra.gmra.mrb[8].mxu1 %vm63_vm1, %v40_v15 }
  0x17   :  { %483 = vmatpush3.bf16.msra.mxu1 %v521_v16  ;;  %484 = vmatprep.mubr.msk.bf16.mxu1 %vm537_vm0, %v536_v0 }
  0x18   :  { %488 = vmatprep.subr.bf16.mxu1 %v536_v0 }
  0xd9   :  { %v107_v17 = vpop.f32.mrb[0].mxu0  ;;  %v115_v18 = vpop.f32.mrb[0].mxu1 }
  0xda   :  { %v130_v19 = vmul.f32 %v107_v17, %v107_v17  ;;  %v132_v20 = vmul.f32 %v115_v18, %v115_v18  ;;  %v466_v21 = vpop.f32.mrb[1].mxu0  ;;  %v470_v22 = vpop.f32.mrb[1].mxu1 }
  0xdb   :  { %v110_v23 = vpop.f32.mrb[2].mxu0  ;;  %v118_v24 = vpop.f32.mrb[2].mxu1 }
  0xdc   :  { %v134_v25 = vadd.f32 %v132_v20, %v130_v19  ;;  %v131_v26 = vmul.f32 %v110_v23, %v110_v23  ;;  %v331_v27 = vpack.c.bf16 %v110_v23, %v107_v17  ;;  %v133_v28 = vmul.f32 %v118_v24, %v118_v24  ;;  %v471_v29 = vpop.f32.mrb[3].mxu1  ;;  %v467_v30 = vpop.f32.mrb[3].mxu0 }
  0xdd   :  { %v332_v31 = vpack.c.bf16 %v118_v24, %v115_v18 }
  0xde   :  { %v135_v32 = vadd.f32 %v133_v28, %v131_v26  ;;  %499 = vmatmul.mubr.msk.bf16.vlgmr.msra.gmra.mrb[4].mxu0 %vm63_vm1, %v331_v27 }
  0xdf   :  { %502 = vmatprep.mubr.msk.bf16.mxu0 %vm537_vm0, %v536_v0 }
  0xe1   :  { %v123_v33 = vpop.f32.mrb[4].mxu1 }
  0xe2   :  { %v136_v34 = vmul.f32 %v123_v33, %v123_v33  ;;  %v474_v35 = vpop.f32.mrb[5].mxu1 }
  0xe3   :  { %v126_v36 = vpop.f32.mrb[6].mxu1 }
  0xe4   :  { %v138_v37 = vadd.f32 %v136_v34, %v134_v25  ;;  %v137_v38 = vmul.f32 %v126_v36, %v126_v36  ;;  %v333_v39 = vpack.c.bf16 %v126_v36, %v123_v33  ;;  %v475_v40 = vpop.f32.mrb[7].mxu1 }
  0xe6   :  { %524 = vrsqrt.f32 %v138_v37  ;;  %v139_v41 = vadd.f32 %v137_v38, %v135_v32  ;;  %503 = vmatmul.mubr.msk.bf16.gmra.mrb[8].mxu0 %vm63_vm1, %v332_v31  ;;  %vm142_vm2 = vcmp.eq.f32.partialorder %v138_v37, inf  ;;  %v145_v47 = vand.u32 2147483648, %v138_v37 }
  0xe7   :  { %506 = vmatprep.mubr.msk.bf16.mxu0 %vm537_vm0, %v536_v0  ;;  %vm144_vm4 = vcmp.eq.f32.partialorder %v138_v37, 0.0 }
  0xe8   :  { %526 = vrsqrt.f32 %v139_v41  ;;  %vm149_vm3 = vcmp.eq.f32.partialorder %v139_v41, inf  ;;  %v152_v48 = vand.u32 2147483648, %v139_v41  ;;  %vm151_vm5 = vcmp.eq.f32.partialorder %v139_v41, 0.0 }
  0xee   :  { %507 = vmatmul.mubr.msk.bf16.gmra.mrb[12].mxu0 %vm63_vm1, %v333_v39 }
  0xf0   :  { %v525_v42 = vpop.eup %524 }
  0xf1   :  { %v141_v43 = vmul.f32 %v525_v42, %v138_v37 }
  0xf2   :  { %v527_v44 = vpop.eup %526 }
  0xf3   :  { %v143_v45 = vsel %vm142_vm2, %v138_v37, %v141_v43  ;;  %v148_v46 = vmul.f32 %v527_v44, %v139_v41 }
  0xf4   :  { %v146_v50 = vsel %vm144_vm4, %v145_v47, %v143_v45 }
  0xf5   :  { %v150_v49 = vsel %vm149_vm3, %v139_v41, %v148_v46 }
  0xf6   :  { %v153_v51 = vsel %vm151_vm5, %v152_v48, %v150_v49 }
  0xf7   :  { %v154_v52 = vpack.c.bf16 %v153_v51, %v146_v50 }
  0xf9   :  { %485 = vmatmul.mubr.msk.bf16.vlgmr.msra.gmra.mrb[8].mxu1 %vm63_vm1, %v154_v52 }
  0xfa   :  { %492 = vmatprep.mubr.msk.bf16.mxu1 %vm537_vm0, %v536_v0  ;;  %489 = vmatpush3.bf16.msra.mxu1 %v522_v53 }
  0xfb   :  { %490 = vmatprep.subr.bf16.mxu1 %v536_v0 }
  0xfe   :  { %491 = vmatpush3.bf16.msra.mxu1 %v523_v54 }
 0x1b1   :  { %v383_v55 = vpop.f32.mrb[4].mxu0 }
 0x1b2   :  { %v500_v56 = vpop.f32.mrb[5].mxu0 }
 0x1b3   :  { %v386_v57 = vpop.f32.mrb[6].mxu0 }
 0x1b4   :  { %v501_v58 = vpop.f32.mrb[7].mxu0 }
 0x1b9   :  { %v391_v59 = vpop.f32.mrb[8].mxu0 }
 0x1ba   :  { %v504_v60 = vpop.f32.mrb[9].mxu0 }
 0x1bb   :  { %v394_v61 = vpop.f32.mrb[10].mxu0 }
 0x1bc   :  { %v505_v62 = vpop.f32.mrb[11].mxu0 }
 0x1c1   :  { %v399_v63 = vpop.f32.mrb[12].mxu0 }
 0x1c2   :  { %v508_v1 = vpop.f32.mrb[13].mxu0 }
 0x1c3   :  { %v402_v2 = vpop.f32.mrb[14].mxu0 }
 0x1c4   :  { %v509_v3 = vpop.f32.mrb[15].mxu0 }
 0x1cc   :  { %v248_v4 = vpop.f32.mrb[8].mxu1 }
 0x1cd   :  { %412 = vst.msk [vmem:[%s697_s8] sm:$0xff] %vm274_vm6, %v248_v4  ;;  %v486_v0 = vpop.f32.mrb[9].mxu1 }
 0x1ce   :  { %v251_v5 = vpop.f32.mrb[10].mxu1 }
 0x1cf   :  { %v255_v6 = vpack.c.bf16 %v251_v5, %v248_v4  ;;  %413 = vst.msk [vmem:[%s697_s8 + $0x8] sm:$0xff] %vm274_vm6, %v251_v5  ;;  %v487_v7 = vpop.f32.mrb[11].mxu1 }
 0x1d1   :  { %493 = vmatmul.mubr.msk.bf16.vlgmr.msra.gmra.mrb[12].mxu1 %vm274_vm6, %v255_v6 }
 0x2a4   :  { %v312_v9 = vpop.f32.mrb[12].mxu1 }
 0x2a5   :  { %v313_v10 = vadd.f32 %v437_v8, %v312_v9  ;;  %v494_v11 = vpop.f32.mrb[13].mxu1 }
 0x2a6   :  { %v315_v12 = vpop.f32.mrb[14].mxu1 }
 0x2a7   :  { %v441_v13 = vmul.f32 -1.442695, %v313_v10  ;;  %v316_v14 = vadd.f32 %v437_v8, %v315_v12  ;;  %v495_v15 = vpop.f32.mrb[15].mxu1 }
 0x2a9   :  { %528 = vpow2.f32 %v441_v13  ;;  %v442_v16 = vmul.f32 -1.442695, %v316_v14 }
 0x2ab   :  { %530 = vpow2.f32 %v442_v16 }
 0x2b3   :  { %v529_v17 = vpop.eup %528 }
 0x2b4   :  { %v325_v18 = vadd.f32 1.0, %v529_v17 }
 0x2b5   :  { %v531_v19 = vpop.eup %530 }
 0x2b6   :  { %532 = vrcp.f32 %v325_v18  ;;  %v326_v20 = vadd.f32 1.0, %v531_v19 }
 0x2b8   :  { %534 = vrcp.f32 %v326_v20 }
 0x2c0   :  { %v533_v21 = vpop.eup %532 }
 0x2c1   :  { %v406_v22 = vmul.f32 %v533_v21, %v383_v55  ;;  %v408_v23 = vmul.f32 %v533_v21, %v391_v59  ;;  %v410_v24 = vmul.f32 %v533_v21, %v399_v63 }
 0x2c2   :  { %v535_v25 = vpop.eup %534 }
 0x2c3   :  { %415 = vst.msk [vmem:[%s699_s9] sm:$0xff] %vm414_vm7, %v406_v22  ;;  %417 = vst.msk [vmem:[%s699_s9 + $0x10] sm:$0xff] %vm414_vm7, %v408_v23  ;;  %v407_v26 = vmul.f32 %v535_v25, %v386_v57  ;;  %v409_v27 = vmul.f32 %v535_v25, %v394_v61  ;;  %v411_v28 = vmul.f32 %v535_v25, %v402_v2 }
 0x2c4   :  { %419 = vst.msk [vmem:[%s699_s9 + $0x20] sm:$0xff] %vm414_vm7, %v410_v24 }
 0x2c5   :  { %416 = vst.msk [vmem:[%s699_s9 + $0x8] sm:$0xff] %vm414_vm7, %v407_v26  ;;  %418 = vst.msk [vmem:[%s699_s9 + $0x18] sm:$0xff] %vm414_vm7, %v409_v27 }
 0x2c6   :  { %420 = vst.msk [vmem:[%s699_s9 + $0x28] sm:$0xff] %vm414_vm7, %v411_v28 }

// kernel: _lambda_.5
= control target key start
LH: loop header
LB: loop body
LE: loop exit
PB: predicated region body
PF: predicated region fallthrough
CT: control target
= control target key end

     0   :  { %vm76_vm0 = vcmask 130048   ;;  %v880_v7 = vmov 0.0   ;;  %vm881_vm1 = vmmov 0   ;;  %vm261_vm4 = vcmask 261120   ;;  %s882_s26 = smov 32   ;;  %s1098_s2 = inlined_call_operand.vmem [shape: bf16[16,16], index: 2, kind: input, shape index: {}]   ;;  %s1099_s1 = inlined_call_operand.vmem [shape: f32[3,8,16], index: 1, kind: input, shape index: {}]   ;;  %s1100_s4 = inlined_call_operand.vmem [shape: bf16[16,32], index: 4, kind: input, shape index: {}]   ;;  %s1101_s0 = inlined_call_operand.vmem [shape: f32[8,16], index: 0, kind: input, shape index: {}]   ;;  %s1102_s3 = inlined_call_operand.vmem [shape: bf16[16,32], index: 3, kind: input, shape index: {}]   ;;  %s1103_s5 = inlined_call_operand.vmem [shape: bf16[32,8], index: 5, kind: input, shape index: {}]   ;;  %s1104_s7 = inlined_call_operand.vmem [shape: bf16[16,8], index: 7, kind: input, shape index: {}]   ;;  %s1105_s10 = inlined_call_operand.vmem [shape: bf16[32,32], index: 10, kind: input, shape index: {}]   ;;  %s1106_s8 = inlined_call_operand.vmem [shape: bf16[8,8], index: 8, kind: input, shape index: {}]   ;;  %s1107_s6 = inlined_call_operand.vmem [shape: f32[1,8], index: 6, kind: input, shape index: {}, may-alias: {6,12}]   ;;  %s1108_s9 = inlined_call_operand.vmem [shape: bf16[8,32], index: 9, kind: input, shape index: {}]   ;;  %s1109_s11 = inlined_call_operand.vmem [shape: bf16[32,8], index: 11, kind: input, shape index: {}]   ;;  %s1110_s13 = inlined_call_operand.vmem [shape: bf16[8,8], index: 13, kind: input, shape index: {}]   ;;  %s1111_s14 = inlined_call_operand.vmem [shape: f32[8,64], index: 14, kind: output, shape index: {0}]   ;;  %s1112_s12 = inlined_call_operand.vmem [shape: f32[1,8], index: 12, kind: input, shape index: {}, may-alias: {6,12}]   ;;  %s1113_s15 = inlined_call_operand.vmem [shape: f32[3,8,16], index: 15, kind: output, shape index: {1}]  }
   0x1   :  { %v858_v0 = vld [vmem:[%s1098_s2] sm:$0xff]   ;;  %v52_v2 = vld [vmem:[%s1099_s1 + $0x8] sm:$0xff]  ;;  %v53_v3 = vld [vmem:[%s1099_s1 + $0x10] sm:$0xff]  ;;  %784 = vmatprep.subr.bf16.mxu1 %v880_v7  ;;  %786 = vmatprep.mubr.msk.bf16.mxu1 %vm881_vm1, %v880_v7  ;;  %vm397_vm5 = vcmask 1043456   ;;  %vm390_vm6 = vcmask 64512   ;;  %vm710_vm9 = vcmask 523264  }
   0x2   :  { %v51_v1 = vld [vmem:[%s1099_s1] sm:$0xff]  ;;  %778 = vmatprep.subr.bf16.mxu0 %v858_v0  ;;  %v56_v5 = vpack.c.bf16 %v53_v3, %v53_v3  ;;  %v862_v12 = vld [vmem:[%s1103_s5 + $0x8] sm:$0xff]  }
   0x3   :  { %v55_v4 = vpack.c.bf16 %v52_v2, %v51_v1  ;;  %779 = vmatpush3.bf16.msra.mxu0 %v858_v0  ;;  %v859_v6 = vld [vmem:[%s1100_s4] sm:$0xff]   ;;  %v865_v37 = vld [vmem:[%s1105_s10 + $0x8] sm:$0xff]  }
   0x4   :  { %v50_v8 = vld [vmem:[%s1101_s0] sm:$0xff]  ;;  %796 = vmatprep.subr.bf16.mxu0 %v880_v7  ;;  %785 = vmatpush3.bf16.msra.mxu1 %v859_v6  ;;  %v867_v62 = vld [vmem:[%s1109_s11 + $0x8] sm:$0xff]  }
   0x5   :  { %780 = vmatprep.mubr.msk.bf16.mxu0 %vm76_vm0, %v55_v4  ;;  %v54_v9 = vpack.c.bf16 %v50_v8, %v50_v8  ;;  %v860_v10 = vld [vmem:[%s1102_s3] sm:$0xff]   ;;  %790 = vmatprep.subr.bf16.mxu1 %v880_v7 }
   0x6   :  { %781 = vmatmul.mubr.msk.bf16.vlgmr.msra.gmra.mrb[0].mxu0 %vm76_vm0, %v56_v5  ;;  %v861_v11 = vld [vmem:[%s1103_s5] sm:$0xff]  }
   0x7   :  { %800 = vmatprep.mubr.msk.bf16.mxu0 %vm881_vm1, %v880_v7  ;;  %787 = vmatmul.mubr.msk.bf16.vlgmr.msra.gmra.mrb[0].mxu1 %vm76_vm0, %v54_v9  ;;  %v863_v29 = vld [vmem:[%s1104_s7] sm:$0xff]  }
   0x8   :  { %791 = vmatpush3.bf16.msra.mxu1 %v860_v10  ;;  %792 = vmatprep.mubr.msk.bf16.mxu1 %vm881_vm1, %v880_v7  ;;  %v864_v35 = vld [vmem:[%s1105_s10] sm:$0xff]  }
   0x9   :  { %797 = vmatpush3.bf16.msra.mxu0 %v861_v11  ;;  %v376_v38 = vld [vmem:[%s1106_s8] sm:$0xf] }
   0xa   :  { %798 = vmatprep.subr.bf16.mxu0 %v880_v7  ;;  %852 = vmatprep.subr.msk.bf16.mxu1 %vm397_vm5, %v376_v38  ;;  %v399_v39 = vsel %vm397_vm5, %v376_v38, 0  ;;  %v730_v40 = vld [vmem:[%s1107_s6] ss:$0 sm:$0xff] }
   0xb   :  { %v377_v59 = vld [vmem:[%s1108_s9] sm:$0xf] }
   0xc   :  { %v518_v60 = vsel %vm397_vm5, %v377_v59, 0  ;;  %v866_v61 = vld [vmem:[%s1109_s11] sm:$0xff]  }
   0xd   :  { %799 = vmatpush3.bf16.msra.mxu0 %v862_v12 }
   0xe   :  { %804 = vmatprep.subr.bf16.mxu0 %v863_v29 }
  0xd9   :  { %v782_v13 = vpop.f32.mrb[0].mxu0 }
  0xda   :  { %v117_v14 = vpop.f32.mrb[1].mxu0  ;;  %v134_v20 = vmul.f32 %v782_v13, %v782_v13  ;;  %v312_v36 = vpack.c.bf16 %v782_v13, %v782_v13 }
  0xdb   :  { %v783_v15 = vpop.f32.mrb[2].mxu0  ;;  %v131_v17 = vmul.f32 %v117_v14, %v117_v14 }
  0xdc   :  { %v120_v16 = vpop.f32.mrb[3].mxu0  ;;  %v387_v15 = vld [vmem:[%s1110_s13] sm:$0xf] }
  0xdd   :  { %v132_v18 = vmul.f32 %v120_v16, %v120_v16  ;;  %v311_v19 = vpack.c.bf16 %v120_v16, %v117_v14 }
  0xdf   :  { %v133_v21 = vadd.f32 %v132_v18, %v131_v17 }
  0xe1   :  { %v135_v22 = vadd.f32 %v134_v20, %v133_v21 }
  0xe3   :  { %868 = vrsqrt.f32 %v135_v22  ;;  %vm138_vm2 = vcmp.eq.f32.partialorder %v135_v22, inf  ;;  %v141_v25 = vand.u32 2147483648, %v135_v22  ;;  %vm140_vm3 = vcmp.eq.f32.partialorder %v135_v22, 0.0 }
  0xed   :  { %v869_v23 = vpop.eup %868 }
  0xee   :  { %v137_v24 = vmul.f32 %v869_v23, %v135_v22 }
  0xf0   :  { %v139_v26 = vsel %vm138_vm2, %v135_v22, %v137_v24 }
  0xf1   :  { %v142_v27 = vsel %vm140_vm3, %v141_v25, %v139_v26  ;;  %v744_v25 = vld [vmem:[%s1112_s12] ss:$0 sm:$0xff] }
  0xf2   :  { %v143_v28 = vpack.c.bf16 %v142_v27, %v142_v27 }
  0xf4   :  { %793 = vmatmul.mubr.msk.bf16.vlgmr.msra.gmra.mrb[0].mxu1 %vm76_vm0, %v143_v28 }
  0xf5   :  { %811 = vmatpush3.bf16.msra.mxu1 %v399_v39 }
  0xf6   :  { %830 = vmatprep.subr.bf16.mxu1 %v880_v7 }
 0x1c7   :  { %v1008_v30 = vpop.f32.mrb[0].mxu1 }
 0x1c8   :  { %v242_v31 = vpack.c.bf16 %v1008_v30, %v1008_v30  ;;  %v794_v32 = vpop.f32.mrb[1].mxu1 }
 0x1c9   :  { %v239_v33 = vpop.f32.mrb[2].mxu1 }
 0x1ca   :  { %v795_v34 = vpop.f32.mrb[3].mxu1  ;;  %801 = vmatmul.mubr.msk.bf16.vlgmr.msra.gmra.mrb[4].mxu0 %vm261_vm4, %v242_v31 }
 0x1cb   :  { %806 = vmatprep.mubr.msk.bf16.mxu0 %vm76_vm0, %v311_v19  ;;  %805 = vmatpush3.bf16.msra.mxu0 %v863_v29  ;;  %v637_v19 = vsel %vm397_vm5, %v387_v15, 0 }
 0x1cc   :  { %816 = vmatprep.subr.bf16.mxu0 %v880_v7 }
 0x1d2   :  { %807 = vmatmul.mubr.msk.bf16.vlgmr.msra.gmra.mrb[8].mxu0 %vm76_vm0, %v312_v36 }
 0x1d3   :  { %817 = vmatpush3.bf16.msra.mxu0 %v864_v35  ;;  %820 = vmatprep.mubr.msk.bf16.mxu0 %vm881_vm1, %v880_v7 }
 0x1d4   :  { %818 = vmatprep.subr.bf16.mxu0 %v880_v7 }
 0x1d7   :  { %819 = vmatpush3.bf16.msra.mxu0 %v865_v37 }
 0x1d8   :  { %824 = vmatprep.subr.bf16.mxu0 %v880_v7 }
 0x1da   :  { %821 = vmatmul.mubr.msk.bf16.vlgmr.msra.gmra.mrb[12].mxu0 %vm261_vm4, %v242_v31 }
 0x1db   :  { %826 = vmatprep.mubr.msk.bf16.mxu0 %vm881_vm1, %v880_v7  ;;  %825 = vmatpush3.bf16.msra.mxu0 %v518_v60 }
 0x29d   :  { %v299_v41 = vpop.f32.mrb[4].mxu0 }
 0x29e   :  { %v300_v42 = vadd.f32 %v730_v40, %v299_v41  ;;  %v802_v43 = vpop.f32.mrb[5].mxu0 }
 0x29f   :  { %v302_v44 = vpop.f32.mrb[6].mxu0 }
 0x2a0   :  { %v734_v45 = vmul.f32 -1.442695, %v300_v42  ;;  %v803_v46 = vpop.f32.mrb[7].mxu0 }
 0x2a2   :  { %870 = vpow2.f32 %v734_v45 }
 0x2a5   :  { %v808_v47 = vpop.f32.mrb[8].mxu0 }
 0x2a6   :  { %v359_v48 = vpop.f32.mrb[9].mxu0 }
 0x2a7   :  { %v809_v49 = vpop.f32.mrb[10].mxu0 }
 0x2a8   :  { %v362_v50 = vpop.f32.mrb[11].mxu0 }
 0x2ac   :  { %v871_v51 = vpop.eup %870 }
 0x2ad   :  { %v308_v52 = vadd.f32 1.0, %v871_v51 }
 0x2af   :  { %872 = vrcp.f32 %v308_v52 }
 0x2b9   :  { %v873_v53 = vpop.eup %872 }
 0x2ba   :  { %v1038_v54 = vmul.f32 %v873_v53, %v808_v47  ;;  %v1040_v55 = vmul.f32 %v873_v53, %v359_v48  ;;  %v1042_v56 = vmul.f32 %v873_v53, %v362_v50 }
 0x2bc   :  { %v389_v57 = vpack.c.bf16 %v1038_v54, %v1038_v54  ;;  %v388_v58 = vpack.c.bf16 %v1042_v56, %v1040_v55 }
 0x2be   :  { %812 = vmatprep.mubr.msk.bf16.mxu1 %vm390_vm6, %v388_v58 }
 0x2bf   :  { %813 = vmatmul.mubr.msk.bf16.vlgmr.msra.gmra.mrb[4].mxu1 %vm390_vm6, %v389_v57 }
 0x2c0   :  { %834 = vmatprep.mubr.msk.bf16.mxu1 %vm881_vm1, %v880_v7  ;;  %831 = vmatpush3.bf16.msra.mxu1 %v866_v61 }
 0x2c1   :  { %832 = vmatprep.subr.bf16.mxu1 %v880_v7 }
 0x2c4   :  { %833 = vmatpush3.bf16.msra.mxu1 %v867_v62 }
 0x2c5   :  { %853 = vmatprep.subr.msk.bf16.mxu1 %vm397_vm5, %v387_v15 }
 0x392   :  { %v814_v63 = vpop.f32.mrb[4].mxu1 }
 0x393   :  { %v435_v0 = vpop.f32.mrb[5].mxu1  ;;  %v452_v6 = vmul.f32 %v814_v63, %v814_v63  ;;  %v629_v22 = vpack.c.bf16 %v814_v63, %v814_v63 }
 0x394   :  { %v815_v1 = vpop.f32.mrb[6].mxu1  ;;  %v449_v3 = vmul.f32 %v435_v0, %v435_v0 }
 0x395   :  { %v438_v2 = vpop.f32.mrb[7].mxu1 }
 0x396   :  { %v450_v4 = vmul.f32 %v438_v2, %v438_v2  ;;  %v628_v5 = vpack.c.bf16 %v438_v2, %v435_v0 }
 0x398   :  { %v451_v8 = vadd.f32 %v450_v4, %v449_v3 }
 0x39a   :  { %v453_v9 = vadd.f32 %v452_v6, %v451_v8 }
 0x39c   :  { %874 = vrsqrt.f32 %v453_v9  ;;  %vm456_vm7 = vcmp.eq.f32.partialorder %v453_v9, inf  ;;  %v459_v12 = vand.u32 2147483648, %v453_v9  ;;  %vm458_vm8 = vcmp.eq.f32.partialorder %v453_v9, 0.0 }
 0x3a6   :  { %v875_v10 = vpop.eup %874 }
 0x3a7   :  { %v455_v11 = vmul.f32 %v875_v10, %v453_v9 }
 0x3a9   :  { %v457_v13 = vsel %vm456_vm7, %v453_v9, %v455_v11 }
 0x3aa   :  { %v460_v14 = vsel %vm458_vm8, %v459_v12, %v457_v13 }
 0x3ab   :  { %v461_v7 = vpack.c.bf16 %v460_v14, %v460_v14 }
 0x3ad   :  { %827 = vmatmul.mubr.msk.bf16.vlgmr.msra.gmra.mrb[12].mxu0 %vm390_vm6, %v461_v7 }
 0x480   :  { %v554_v16 = vpop.f32.mrb[12].mxu0 }
 0x481   :  { %v560_v17 = vpack.c.bf16 %v554_v16, %v554_v16  ;;  %691 = vrot.lane.b32.xlu0 %v554_v16, %s882_s26  ;;  %v828_v18 = vpop.f32.mrb[13].mxu0 }
 0x482   :  { %v557_v20 = vpop.f32.mrb[14].mxu0 }
 0x483   :  { %v829_v21 = vpop.f32.mrb[15].mxu0  ;;  %835 = vmatmul.mubr.msk.bf16.vlgmr.msra.gmra.mrb[8].mxu1 %vm261_vm4, %v560_v17 }
 0x484   :  { %840 = vmatprep.mubr.msk.bf16.mxu1 %vm390_vm6, %v628_v5  ;;  %839 = vmatpush3.bf16.msra.mxu1 %v637_v19 }
 0x48b   :  { %841 = vmatmul.mubr.msk.bf16.vlgmr.msra.gmra.mrb[12].mxu1 %vm390_vm6, %v629_v22 }
 0x4f3   :  { %v692_v23 = vpop.permute.xlu0 %691 }
 0x4f4   :  { %v694_v24 = vsel %vm261_vm4, %v1008_v30, %v692_v23 }
 0x4f5   :  { %711 = vst.msk [vmem:[%s1111_s14] sm:$0xff] %vm710_vm9, %v694_v24  ;;  %s883_s14 = smov 8  }
 0x556   :  { %v616_v26 = vpop.f32.mrb[8].mxu1 }
 0x557   :  { %v617_v27 = vadd.f32 %v744_v25, %v616_v26  ;;  %v836_v28 = vpop.f32.mrb[9].mxu1 }
 0x558   :  { %v619_v29 = vpop.f32.mrb[10].mxu1 }
 0x559   :  { %v748_v31 = vmul.f32 -1.442695, %v617_v27  ;;  %v837_v32 = vpop.f32.mrb[11].mxu1 }
 0x55b   :  { %876 = vpow2.f32 %v748_v31 }
 0x55e   :  { %v842_v33 = vpop.f32.mrb[12].mxu1 }
 0x55f   :  { %v673_v34 = vpop.f32.mrb[13].mxu1 }
 0x560   :  { %v843_v35 = vpop.f32.mrb[14].mxu1 }
 0x561   :  { %v676_v36 = vpop.f32.mrb[15].mxu1 }
 0x565   :  { %v877_v30 = vpop.eup %876 }
 0x566   :  { %v625_v37 = vadd.f32 1.0, %v877_v30 }
 0x568   :  { %878 = vrcp.f32 %v625_v37 }
 0x572   :  { %v879_v38 = vpop.eup %878 }
 0x573   :  { %v689_v39 = vmul.f32 %v879_v38, %v842_v33  ;;  %v687_v40 = vmul.f32 %v879_v38, %v673_v34  ;;  %v688_v41 = vmul.f32 %v879_v38, %v676_v36 }
 0x575   :  { %698 = vrot.lane.b32.xlu0 %v687_v40, %s883_s14  ;;  %700 = vrot.lane.b32.xlu1 %v688_v41, %s883_s14 }
 0x579   :  { %702 = vrot.lane.b32.xlu1 %v689_v39, %s883_s14 }
 0x5e7   :  { %v699_v42 = vpop.permute.xlu0 %698  ;;  %v701_v43 = vpop.permute.xlu1 %700 }
 0x5e8   :  { %v707_v44 = vsel %vm390_vm6, %v1040_v55, %v699_v42  ;;  %v708_v45 = vsel %vm390_vm6, %v1042_v56, %v701_v43 }
 0x5e9   :  { %712 = vst.msk [vmem:[%s1113_s15] sm:$0xff] %vm76_vm0, %v707_v44  ;;  %713 = vst.msk [vmem:[%s1113_s15 + $0x8] sm:$0xff] %vm76_vm0, %v708_v45 }
 0x5eb   :  { %v703_v46 = vpop.permute.xlu1 %702 }
 0x5ec   :  { %v709_v47 = vsel %vm390_vm6, %v1038_v54, %v703_v46 }
 0x5ed   :  { %714 = vst.msk [vmem:[%s1113_s15 + $0x10] sm:$0xff] %vm76_vm0, %v709_v47 }

// kernel: _lambda_.7
= control target key start
LH: loop header
LB: loop body
LE: loop exit
PB: predicated region body
PF: predicated region fallthrough
CT: control target
= control target key end

     0   :  { %v1428_v0 = vmov 0.0   ;;  %vm1429_vm0 = vmmov 0   ;;  %vm90_vm1 = vcmask 130048   ;;  %s2172_s2 = inlined_call_operand.vmem [shape: bf16[16,16], index: 2, kind: input, shape index: {}]   ;;  %s2173_s1 = inlined_call_operand.vmem [shape: f32[3,48,16], index: 1, kind: input, shape index: {}]   ;;  %s2174_s7 = inlined_call_operand.vmem [shape: bf16[16,16], index: 7, kind: input, shape index: {}]   ;;  %s2175_s4 = inlined_call_operand.vmem [shape: bf16[16,16], index: 4, kind: input, shape index: {}]   ;;  %s2176_s0 = inlined_call_operand.vmem [shape: f32[48,16], index: 0, kind: input, shape index: {}]   ;;  %s2177_s3 = inlined_call_operand.vmem [shape: bf16[16,16], index: 3, kind: input, shape index: {}]   ;;  %s2178_s5 = inlined_call_operand.vmem [shape: bf16[16,16], index: 5, kind: input, shape index: {}]   ;;  %s2179_s9 = inlined_call_operand.vmem [shape: f32[48,16], index: 9, kind: output, shape index: {0}]   ;;  %s2180_s8 = inlined_call_operand.vmem [shape: bf16[16,16], index: 8, kind: input, shape index: {}]   ;;  %s2181_s6 = inlined_call_operand.vmem [shape: f32[1,16], index: 6, kind: input, shape index: {}]   ;;  %s2182_s10 = inlined_call_operand.vmem [shape: f32[3,48,16], index: 10, kind: output, shape index: {1}]  }
   0x1   :  { %1204 = vmatprep.subr.bf16.mxu0 %v1428_v0  ;;  %v1374_v1 = vld [vmem:[%s2172_s2] sm:$0xff]   ;;  %1206 = vmatprep.mubr.msk.bf16.mxu0 %vm1429_vm0, %v1428_v0  ;;  %v42_v3 = vld [vmem:[%s2173_s1 + $0x8] sm:$0xff]  ;;  %v43_v5 = vld [vmem:[%s2173_s1 + $0x10] sm:$0xff] }
   0x2   :  { %v41_v2 = vld [vmem:[%s2173_s1] sm:$0xff]  ;;  %1242 = vmatprep.subr.bf16.mxu1 %v1428_v0  ;;  %1244 = vmatprep.mubr.msk.bf16.mxu1 %vm1429_vm0, %v1428_v0  ;;  %v44_v6 = vld [vmem:[%s2173_s1 + $0x18] sm:$0xff]  ;;  %v46_v9 = vld [vmem:[%s2173_s1 + $0x28] sm:$0xff] }
   0x3   :  { %1205 = vmatpush3.bf16.msra.mxu0 %v1374_v1  ;;  %v62_v4 = vpack.c.bf16 %v42_v3, %v41_v2  ;;  %v63_v7 = vpack.c.bf16 %v44_v6, %v43_v5  ;;  %v45_v8 = vld [vmem:[%s2173_s1 + $0x20] sm:$0xff]  ;;  %v47_v11 = vld [vmem:[%s2173_s1 + $0x30] sm:$0xff]  ;;  %v48_v12 = vld [vmem:[%s2173_s1 + $0x38] sm:$0xff] }
   0x4   :  { %1284 = vmatprep.subr.bf16.mxu0 %v1428_v0  ;;  %v64_v10 = vpack.c.bf16 %v46_v9, %v45_v8  ;;  %v65_v13 = vpack.c.bf16 %v48_v12, %v47_v11  ;;  %v49_v14 = vld [vmem:[%s2173_s1 + $0x40] sm:$0xff]  ;;  %v50_v15 = vld [vmem:[%s2173_s1 + $0x48] sm:$0xff]  ;;  %v51_v17 = vld [vmem:[%s2173_s1 + $0x50] sm:$0xff] }
   0x5   :  { %v66_v16 = vpack.c.bf16 %v50_v15, %v49_v14  ;;  %v52_v18 = vld [vmem:[%s2173_s1 + $0x58] sm:$0xff]  ;;  %v53_v20 = vld [vmem:[%s2173_s1 + $0x60] sm:$0xff]  ;;  %v54_v21 = vld [vmem:[%s2173_s1 + $0x68] sm:$0xff] }
   0x6   :  { %1207 = vmatmul.mubr.msk.bf16.vlgmr.msra.gmra.mrb[0].mxu0 %vm90_vm1, %v62_v4  ;;  %v67_v19 = vpack.c.bf16 %v52_v18, %v51_v17  ;;  %v68_v22 = vpack.c.bf16 %v54_v21, %v53_v20  ;;  %v55_v23 = vld [vmem:[%s2173_s1 + $0x70] sm:$0xff]  ;;  %v56_v24 = vld [vmem:[%s2173_s1 + $0x78] sm:$0xff]  ;;  %v57_v26 = vld [vmem:[%s2173_s1 + $0x80] sm:$0xff] }
   0x7   :  { %1210 = vmatprep.mubr.msk.bf16.mxu0 %vm1429_vm0, %v1428_v0  ;;  %v69_v25 = vpack.c.bf16 %v56_v24, %v55_v23  ;;  %v58_v27 = vld [vmem:[%s2173_s1 + $0x88] sm:$0xff]  ;;  %v1375_v29 = vld [vmem:[%s2174_s7] sm:$0xff]   ;;  %v37_v34 = vld [vmem:[%s2176_s0 + $0x10] sm:$0xff] }
   0x8   :  { %v70_v28 = vpack.c.bf16 %v58_v27, %v57_v26  ;;  %1285 = vmatpush3.bf16.msra.mxu0 %v1375_v29  ;;  %v1376_v30 = vld [vmem:[%s2175_s4] sm:$0xff]   ;;  %v36_v32 = vld [vmem:[%s2176_s0 + $0x8] sm:$0xff]  ;;  %v38_v35 = vld [vmem:[%s2176_s0 + $0x18] sm:$0xff] }
   0x9   :  { %1243 = vmatpush3.bf16.msra.mxu1 %v1376_v30  ;;  %v35_v31 = vld [vmem:[%s2176_s0] sm:$0xff]  ;;  %v60_v36 = vpack.c.bf16 %v38_v35, %v37_v34  ;;  %v40_v38 = vld [vmem:[%s2176_s0 + $0x28] sm:$0xff] }
   0xa   :  { %1256 = vmatprep.subr.bf16.mxu1 %v1428_v0  ;;  %v59_v33 = vpack.c.bf16 %v36_v32, %v35_v31  ;;  %v39_v37 = vld [vmem:[%s2176_s0 + $0x20] sm:$0xff] }
   0xb   :  { %v61_v39 = vpack.c.bf16 %v40_v38, %v39_v37  ;;  %v1377_v40 = vld [vmem:[%s2177_s3] sm:$0xff]  }
   0xc   :  { %1245 = vmatmul.mubr.msk.bf16.vlgmr.msra.gmra.mrb[0].mxu1 %vm90_vm1, %v59_v33 }
   0xd   :  { %1248 = vmatprep.mubr.msk.bf16.mxu1 %vm1429_vm0, %v1428_v0  ;;  %1257 = vmatpush3.bf16.msra.mxu1 %v1377_v40 }
   0xe   :  { %1211 = vmatmul.mubr.msk.bf16.gmra.mrb[4].mxu0 %vm90_vm1, %v63_v7  ;;  %1270 = vmatprep.subr.bf16.mxu1 %v1428_v0 }
   0xf   :  { %1214 = vmatprep.mubr.msk.bf16.mxu0 %vm1429_vm0, %v1428_v0 }
  0x14   :  { %1249 = vmatmul.mubr.msk.bf16.gmra.mrb[4].mxu1 %vm90_vm1, %v60_v36 }
  0x15   :  { %1252 = vmatprep.mubr.msk.bf16.mxu1 %vm1429_vm0, %v1428_v0 }
  0x16   :  { %1215 = vmatmul.mubr.msk.bf16.gmra.mrb[8].mxu0 %vm90_vm1, %v64_v10 }
  0x17   :  { %1218 = vmatprep.mubr.msk.bf16.mxu0 %vm1429_vm0, %v1428_v0 }
  0x1c   :  { %1253 = vmatmul.mubr.msk.bf16.gmra.mrb[8].mxu1 %vm90_vm1, %v61_v39 }
  0x1d   :  { %1258 = vmatprep.mubr.msk.bf16.mxu1 %vm1429_vm0, %v1428_v0 }
  0x1e   :  { %1219 = vmatmul.mubr.msk.bf16.gmra.mrb[12].mxu0 %vm90_vm1, %v65_v13 }
  0x1f   :  { %1222 = vmatprep.mubr.msk.bf16.mxu0 %vm1429_vm0, %v1428_v0 }
  0x26   :  { %1223 = vmatmul.mubr.msk.bf16.gmra.mrb[16].mxu0 %vm90_vm1, %v66_v16 }
  0x27   :  { %1226 = vmatprep.mubr.msk.bf16.mxu0 %vm1429_vm0, %v1428_v0 }
  0x2e   :  { %1227 = vmatmul.mubr.msk.bf16.gmra.mrb[20].mxu0 %vm90_vm1, %v67_v19 }
  0x2f   :  { %1230 = vmatprep.mubr.msk.bf16.mxu0 %vm1429_vm0, %v1428_v0 }
  0x36   :  { %1231 = vmatmul.mubr.msk.bf16.gmra.mrb[24].mxu0 %vm90_vm1, %v68_v22 }
  0x37   :  { %1234 = vmatprep.mubr.msk.bf16.mxu0 %vm1429_vm0, %v1428_v0 }
  0x3e   :  { %1235 = vmatmul.mubr.msk.bf16.gmra.mrb[28].mxu0 %vm90_vm1, %v69_v25 }
  0x3f   :  { %1238 = vmatprep.mubr.msk.bf16.mxu0 %vm1429_vm0, %v1428_v0 }
  0x46   :  { %1239 = vmatmul.mubr.msk.bf16.gmra.mrb[32].mxu0 %vm90_vm1, %v70_v28 }
  0x47   :  { %1286 = vmatprep.mubr.msk.bf16.mxu0 %vm1429_vm0, %v1428_v0 }
  0xd9   :  { %v152_v41 = vpop.f32.mrb[0].mxu0 }
  0xda   :  { %v1208_v42 = vpop.f32.mrb[1].mxu0  ;;  %v223_v57 = vmul.f32 %v152_v41, %v152_v41 }
  0xdb   :  { %v155_v43 = vpop.f32.mrb[2].mxu0 }
  0xdc   :  { %v559_v44 = vpack.c.bf16 %v155_v43, %v152_v41  ;;  %v1209_v45 = vpop.f32.mrb[3].mxu0  ;;  %v224_v61 = vmul.f32 %v155_v43, %v155_v43 }
  0xde   :  { %1287 = vmatmul.mubr.msk.bf16.vlgmr.msra.gmra.mrb[36].mxu0 %vm90_vm1, %v559_v44 }
  0xdf   :  { %1290 = vmatprep.mubr.msk.bf16.mxu0 %vm1429_vm0, %v1428_v0 }
  0xe1   :  { %v160_v46 = vpop.f32.mrb[4].mxu0 }
  0xe2   :  { %v1212_v47 = vpop.f32.mrb[5].mxu0  ;;  %v225_v5 = vmul.f32 %v160_v46, %v160_v46 }
  0xe3   :  { %v163_v48 = vpop.f32.mrb[6].mxu0 }
  0xe4   :  { %v560_v49 = vpack.c.bf16 %v163_v48, %v160_v46  ;;  %v1213_v50 = vpop.f32.mrb[7].mxu0  ;;  %v226_v9 = vmul.f32 %v163_v48, %v163_v48 }
  0xe6   :  { %1291 = vmatmul.mubr.msk.bf16.gmra.mrb[40].mxu0 %vm90_vm1, %v560_v49 }
  0xe7   :  { %1294 = vmatprep.mubr.msk.bf16.mxu0 %vm1429_vm0, %v1428_v0 }
  0xe9   :  { %v168_v51 = vpop.f32.mrb[8].mxu0 }
  0xea   :  { %v1216_v52 = vpop.f32.mrb[9].mxu0  ;;  %v227_v16 = vmul.f32 %v168_v51, %v168_v51 }
  0xeb   :  { %v171_v53 = vpop.f32.mrb[10].mxu0 }
  0xec   :  { %v561_v54 = vpack.c.bf16 %v171_v53, %v168_v51  ;;  %v1217_v55 = vpop.f32.mrb[11].mxu0  ;;  %v228_v20 = vmul.f32 %v171_v53, %v171_v53 }
  0xee   :  { %1295 = vmatmul.mubr.msk.bf16.gmra.mrb[44].mxu0 %vm90_vm1, %v561_v54 }
  0xef   :  { %1298 = vmatprep.mubr.msk.bf16.mxu0 %vm1429_vm0, %v1428_v0 }
  0xf1   :  { %v176_v56 = vpop.f32.mrb[12].mxu0 }
  0xf2   :  { %v229_v58 = vmul.f32 %v176_v56, %v176_v56  ;;  %v1220_v59 = vpop.f32.mrb[13].mxu0 }
  0xf3   :  { %v179_v60 = vpop.f32.mrb[14].mxu0 }
  0xf4   :  { %v235_v62 = vadd.f32 %v229_v58, %v223_v57  ;;  %v230_v63 = vmul.f32 %v179_v60, %v179_v60  ;;  %v562_v1 = vpack.c.bf16 %v179_v60, %v176_v56  ;;  %v1221_v2 = vpop.f32.mrb[15].mxu0 }
  0xf6   :  { %v236_v3 = vadd.f32 %v230_v63, %v224_v61  ;;  %1299 = vmatmul.mubr.msk.bf16.gmra.mrb[48].mxu0 %vm90_vm1, %v562_v1 }
  0xf7   :  { %1302 = vmatprep.mubr.msk.bf16.mxu0 %vm1429_vm0, %v1428_v0 }
  0xf9   :  { %v184_v4 = vpop.f32.mrb[16].mxu0 }
  0xfa   :  { %v231_v6 = vmul.f32 %v184_v4, %v184_v4  ;;  %v1224_v7 = vpop.f32.mrb[17].mxu0 }
  0xfb   :  { %v187_v8 = vpop.f32.mrb[18].mxu0 }
  0xfc   :  { %v237_v10 = vadd.f32 %v231_v6, %v225_v5  ;;  %v232_v11 = vmul.f32 %v187_v8, %v187_v8  ;;  %v563_v12 = vpack.c.bf16 %v187_v8, %v184_v4  ;;  %v1225_v13 = vpop.f32.mrb[19].mxu0 }
  0xfe   :  { %v238_v14 = vadd.f32 %v232_v11, %v226_v9  ;;  %1303 = vmatmul.mubr.msk.bf16.gmra.mrb[52].mxu0 %vm90_vm1, %v563_v12 }
  0xff   :  { %1306 = vmatprep.mubr.msk.bf16.mxu0 %vm1429_vm0, %v1428_v0 }
 0x101   :  { %v192_v15 = vpop.f32.mrb[20].mxu0 }
 0x102   :  { %v233_v17 = vmul.f32 %v192_v15, %v192_v15  ;;  %v1228_v18 = vpop.f32.mrb[21].mxu0 }
 0x103   :  { %v195_v19 = vpop.f32.mrb[22].mxu0 }
 0x104   :  { %v239_v21 = vadd.f32 %v233_v17, %v227_v16  ;;  %v234_v22 = vmul.f32 %v195_v19, %v195_v19  ;;  %v564_v23 = vpack.c.bf16 %v195_v19, %v192_v15  ;;  %v1229_v24 = vpop.f32.mrb[23].mxu0 }
 0x106   :  { %v240_v25 = vadd.f32 %v234_v22, %v228_v20  ;;  %1307 = vmatmul.mubr.msk.bf16.gmra.mrb[56].mxu0 %vm90_vm1, %v564_v23  ;;  %v1378_v23 = vld [vmem:[%s2178_s5] sm:$0xff]  }
 0x107   :  { %1310 = vmatprep.mubr.msk.bf16.mxu0 %vm1429_vm0, %v1428_v0 }
 0x109   :  { %v200_v26 = vpop.f32.mrb[24].mxu0 }
 0x10a   :  { %v241_v27 = vmul.f32 %v200_v26, %v200_v26  ;;  %v1232_v28 = vpop.f32.mrb[25].mxu0 }
 0x10b   :  { %v203_v29 = vpop.f32.mrb[26].mxu0 }
 0x10c   :  { %v247_v30 = vadd.f32 %v241_v27, %v235_v62  ;;  %v242_v31 = vmul.f32 %v203_v29, %v203_v29  ;;  %v565_v32 = vpack.c.bf16 %v203_v29, %v200_v26  ;;  %v1233_v33 = vpop.f32.mrb[27].mxu0 }
 0x10e   :  { %1380 = vrsqrt.f32 %v247_v30  ;;  %v248_v34 = vadd.f32 %v242_v31, %v236_v3  ;;  %1311 = vmatmul.mubr.msk.bf16.gmra.mrb[60].mxu0 %vm90_vm1, %v565_v32  ;;  %vm255_vm2 = vcmp.eq.f32.partialorder %v247_v30, inf  ;;  %v258_v50 = vand.u32 2147483648, %v247_v30 }
 0x10f   :  { %1314 = vmatprep.mubr.msk.bf16.mxu0 %vm1429_vm0, %v1428_v0  ;;  %vm257_vm4 = vcmp.eq.f32.partialorder %v247_v30, 0.0 }
 0x110   :  { %1382 = vrsqrt.f32 %v248_v34  ;;  %vm262_vm3 = vcmp.eq.f32.partialorder %v248_v34, inf  ;;  %v265_v54 = vand.u32 2147483648, %v248_v34  ;;  %vm264_vm5 = vcmp.eq.f32.partialorder %v248_v34, 0.0 }
 0x111   :  { %v208_v35 = vpop.f32.mrb[28].mxu0 }
 0x112   :  { %v243_v36 = vmul.f32 %v208_v35, %v208_v35  ;;  %v1236_v37 = vpop.f32.mrb[29].mxu0 }
 0x113   :  { %v211_v38 = vpop.f32.mrb[30].mxu0 }
 0x114   :  { %v249_v39 = vadd.f32 %v243_v36, %v237_v10  ;;  %v244_v40 = vmul.f32 %v211_v38, %v211_v38  ;;  %v566_v41 = vpack.c.bf16 %v211_v38, %v208_v35  ;;  %v1237_v42 = vpop.f32.mrb[31].mxu0 }
 0x116   :  { %1384 = vrsqrt.f32 %v249_v39  ;;  %v250_v43 = vadd.f32 %v244_v40, %v238_v14  ;;  %1315 = vmatmul.mubr.msk.bf16.gmra.mrb[64].mxu0 %vm90_vm1, %v566_v41  ;;  %vm269_vm6 = vcmp.eq.f32.partialorder %v249_v39, inf  ;;  %v272_v6 = vand.u32 2147483648, %v249_v39 }
 0x117   :  { %1318 = vmatprep.mubr.msk.bf16.mxu0 %vm1429_vm0, %v1428_v0  ;;  %vm271_vm8 = vcmp.eq.f32.partialorder %v249_v39, 0.0 }
 0x118   :  { %v1381_v44 = vpop.eup %1380  ;;  %1386 = vrsqrt.f32 %v250_v43  ;;  %vm276_vm7 = vcmp.eq.f32.partialorder %v250_v43, inf  ;;  %v279_v7 = vand.u32 2147483648, %v250_v43  ;;  %vm278_vm9 = vcmp.eq.f32.partialorder %v250_v43, 0.0 }
 0x119   :  { %v254_v45 = vmul.f32 %v1381_v44, %v247_v30  ;;  %v216_v46 = vpop.f32.mrb[32].mxu0 }
 0x11a   :  { %v1383_v47 = vpop.eup %1382  ;;  %v245_v48 = vmul.f32 %v216_v46, %v216_v46  ;;  %v1240_v49 = vpop.f32.mrb[33].mxu0 }
 0x11b   :  { %v261_v51 = vmul.f32 %v1383_v47, %v248_v34  ;;  %v219_v52 = vpop.f32.mrb[34].mxu0  ;;  %v256_v53 = vsel %vm255_vm2, %v247_v30, %v254_v45 }
 0x11c   :  { %v251_v55 = vadd.f32 %v245_v48, %v239_v21  ;;  %v246_v56 = vmul.f32 %v219_v52, %v219_v52  ;;  %v567_v57 = vpack.c.bf16 %v219_v52, %v216_v46  ;;  %v1241_v58 = vpop.f32.mrb[35].mxu0  ;;  %v259_v61 = vsel %vm257_vm4, %v258_v50, %v256_v53 }
 0x11d   :  { %v263_v59 = vsel %vm262_vm3, %v248_v34, %v261_v51 }
 0x11e   :  { %1388 = vrsqrt.f32 %v251_v55  ;;  %v252_v60 = vadd.f32 %v246_v56, %v240_v25  ;;  %1319 = vmatmul.mubr.msk.bf16.gmra.mrb[68].mxu0 %vm90_vm1, %v567_v57  ;;  %v266_v62 = vsel %vm264_vm5, %v265_v54, %v263_v59  ;;  %vm283_vm10 = vcmp.eq.f32.partialorder %v251_v55, inf }
 0x11f   :  { %v295_v63 = vpack.c.bf16 %v266_v62, %v259_v61  ;;  %v286_v17 = vand.u32 2147483648, %v251_v55  ;;  %vm285_vm12 = vcmp.eq.f32.partialorder %v251_v55, 0.0 }
 0x120   :  { %v1385_v1 = vpop.eup %1384  ;;  %1390 = vrsqrt.f32 %v252_v60  ;;  %vm290_vm11 = vcmp.eq.f32.partialorder %v252_v60, inf  ;;  %v293_v18 = vand.u32 2147483648, %v252_v60  ;;  %vm292_vm13 = vcmp.eq.f32.partialorder %v252_v60, 0.0 }
 0x121   :  { %1259 = vmatmul.mubr.msk.bf16.vlgmr.msra.gmra.mrb[0].mxu1 %vm90_vm1, %v295_v63  ;;  %v268_v2 = vmul.f32 %v1385_v1, %v249_v39 }
 0x122   :  { %v1387_v3 = vpop.eup %1386  ;;  %1262 = vmatprep.mubr.msk.bf16.mxu1 %vm1429_vm0, %v1428_v0  ;;  %1271 = vmatpush3.bf16.msra.mxu1 %v1378_v23 }
 0x123   :  { %v270_v4 = vsel %vm269_vm6, %v249_v39, %v268_v2  ;;  %v275_v5 = vmul.f32 %v1387_v3, %v250_v43  ;;  %1322 = vmatprep.subr.bf16.mxu1 %v1428_v0 }
 0x124   :  { %v273_v9 = vsel %vm271_vm8, %v272_v6, %v270_v4 }
 0x125   :  { %v277_v8 = vsel %vm276_vm7, %v250_v43, %v275_v5 }
 0x126   :  { %v280_v10 = vsel %vm278_vm9, %v279_v7, %v277_v8 }
 0x127   :  { %v296_v11 = vpack.c.bf16 %v280_v10, %v273_v9 }
 0x128   :  { %v1389_v12 = vpop.eup %1388 }
 0x129   :  { %1263 = vmatmul.mubr.msk.bf16.gmra.mrb[4].mxu1 %vm90_vm1, %v296_v11  ;;  %v282_v13 = vmul.f32 %v1389_v12, %v251_v55 }
 0x12a   :  { %v1391_v14 = vpop.eup %1390  ;;  %1266 = vmatprep.mubr.msk.bf16.mxu1 %vm1429_vm0, %v1428_v0 }
 0x12b   :  { %v284_v15 = vsel %vm283_vm10, %v251_v55, %v282_v13  ;;  %v289_v16 = vmul.f32 %v1391_v14, %v252_v60 }
 0x12c   :  { %v287_v20 = vsel %vm285_vm12, %v286_v17, %v284_v15 }
 0x12d   :  { %v291_v19 = vsel %vm290_vm11, %v252_v60, %v289_v16 }
 0x12e   :  { %v294_v21 = vsel %vm292_vm13, %v293_v18, %v291_v19 }
 0x12f   :  { %v297_v22 = vpack.c.bf16 %v294_v21, %v287_v20 }
 0x131   :  { %1267 = vmatmul.mubr.msk.bf16.gmra.mrb[8].mxu1 %vm90_vm1, %v297_v22 }
 0x132   :  { %1272 = vmatprep.mubr.msk.bf16.mxu1 %vm1429_vm0, %v1428_v0 }
 0x1b1   :  { %v1652_v24 = vpop.f32.mrb[36].mxu0 }
 0x1b2   :  { %v1288_v25 = vpop.f32.mrb[37].mxu0 }
 0x1b3   :  { %v1654_v26 = vpop.f32.mrb[38].mxu0  ;;  %v1379_v25 = vld [vmem:[%s2180_s8] sm:$0xff]  }
 0x1b4   :  { %v1289_v27 = vpop.f32.mrb[39].mxu0 }
 0x1b5   :  { %v1131_v27 = vld [vmem:[%s2181_s6] ss:$0 sm:$0xff] }
 0x1b9   :  { %v1656_v28 = vpop.f32.mrb[40].mxu0 }
 0x1ba   :  { %v1292_v29 = vpop.f32.mrb[41].mxu0 }
 0x1bb   :  { %v1658_v30 = vpop.f32.mrb[42].mxu0 }
 0x1bc   :  { %v1293_v31 = vpop.f32.mrb[43].mxu0 }
 0x1c1   :  { %v1660_v32 = vpop.f32.mrb[44].mxu0 }
 0x1c2   :  { %v1296_v33 = vpop.f32.mrb[45].mxu0 }
 0x1c3   :  { %v1662_v34 = vpop.f32.mrb[46].mxu0 }
 0x1c4   :  { %v1297_v35 = vpop.f32.mrb[47].mxu0 }
 0x1c9   :  { %v1664_v36 = vpop.f32.mrb[48].mxu0 }
 0x1ca   :  { %v1300_v37 = vpop.f32.mrb[49].mxu0 }
 0x1cb   :  { %v1666_v38 = vpop.f32.mrb[50].mxu0 }
 0x1cc   :  { %v1301_v39 = vpop.f32.mrb[51].mxu0 }
 0x1d1   :  { %v1668_v40 = vpop.f32.mrb[52].mxu0 }
 0x1d2   :  { %v1304_v41 = vpop.f32.mrb[53].mxu0 }
 0x1d3   :  { %v1670_v42 = vpop.f32.mrb[54].mxu0 }
 0x1d4   :  { %v1305_v43 = vpop.f32.mrb[55].mxu0 }
 0x1d9   :  { %v1672_v44 = vpop.f32.mrb[56].mxu0 }
 0x1da   :  { %v1308_v45 = vpop.f32.mrb[57].mxu0 }
 0x1db   :  { %v1674_v46 = vpop.f32.mrb[58].mxu0 }
 0x1dc   :  { %v1309_v47 = vpop.f32.mrb[59].mxu0 }
 0x1e1   :  { %v1676_v48 = vpop.f32.mrb[60].mxu0 }
 0x1e2   :  { %v1312_v49 = vpop.f32.mrb[61].mxu0 }
 0x1e3   :  { %v1678_v50 = vpop.f32.mrb[62].mxu0 }
 0x1e4   :  { %v1313_v51 = vpop.f32.mrb[63].mxu0 }
 0x1e9   :  { %v1680_v52 = vpop.f32.mrb[64].mxu0 }
 0x1ea   :  { %v1316_v53 = vpop.f32.mrb[65].mxu0 }
 0x1eb   :  { %v1682_v54 = vpop.f32.mrb[66].mxu0 }
 0x1ec   :  { %v1317_v55 = vpop.f32.mrb[67].mxu0 }
 0x1f1   :  { %v1684_v56 = vpop.f32.mrb[68].mxu0 }
 0x1f2   :  { %v1320_v57 = vpop.f32.mrb[69].mxu0 }
 0x1f3   :  { %v1686_v58 = vpop.f32.mrb[70].mxu0 }
 0x1f4   :  { %v419_v59 = vpop.f32.mrb[0].mxu1  ;;  %v1321_v60 = vpop.f32.mrb[71].mxu0 }
 0x1f5   :  { %vm724_vm14 = vcmp.ge.f32.partialorder %v419_v59, 0.0  ;;  %v730_v61 = vmul.f32 0.01, %v419_v59  ;;  %v1260_v62 = vpop.f32.mrb[1].mxu1 }
 0x1f6   :  { %v422_v63 = vpop.f32.mrb[2].mxu1 }
 0x1f7   :  { %v736_v1 = vsel %vm724_vm14, %v419_v59, %v730_v61  ;;  %v442_v2 = vpack.c.bf16 %v422_v63, %v419_v59  ;;  %vm725_vm15 = vcmp.ge.f32.partialorder %v422_v63, 0.0  ;;  %v731_v3 = vmul.f32 0.01, %v422_v63  ;;  %v1261_v4 = vpop.f32.mrb[3].mxu1 }
 0x1f8   :  { %1081 = vst.msk [vmem:[%s2179_s9] sm:$0xff] %vm90_vm1, %v736_v1 }
 0x1f9   :  { %v737_v5 = vsel %vm725_vm15, %v422_v63, %v731_v3  ;;  %1273 = vmatmul.mubr.msk.bf16.vlgmr.msra.gmra.mrb[12].mxu1 %vm90_vm1, %v442_v2 }
 0x1fa   :  { %1082 = vst.msk [vmem:[%s2179_s9 + $0x8] sm:$0xff] %vm90_vm1, %v737_v5  ;;  %1276 = vmatprep.mubr.msk.bf16.mxu1 %vm1429_vm0, %v1428_v0  ;;  %1323 = vmatpush3.bf16.msra.mxu1 %v1379_v25 }
 0x1fc   :  { %v427_v6 = vpop.f32.mrb[4].mxu1 }
 0x1fd   :  { %vm726_vm2 = vcmp.ge.f32.partialorder %v427_v6, 0.0  ;;  %v732_v7 = vmul.f32 0.01, %v427_v6  ;;  %v1264_v8 = vpop.f32.mrb[5].mxu1 }
 0x1fe   :  { %v430_v9 = vpop.f32.mrb[6].mxu1 }
 0x1ff   :  { %v738_v10 = vsel %vm726_vm2, %v427_v6, %v732_v7  ;;  %v443_v11 = vpack.c.bf16 %v430_v9, %v427_v6  ;;  %vm727_vm3 = vcmp.ge.f32.partialorder %v430_v9, 0.0  ;;  %v733_v12 = vmul.f32 0.01, %v430_v9  ;;  %v1265_v13 = vpop.f32.mrb[7].mxu1 }
 0x200   :  { %1083 = vst.msk [vmem:[%s2179_s9 + $0x10] sm:$0xff] %vm90_vm1, %v738_v10 }
 0x201   :  { %v739_v14 = vsel %vm727_vm3, %v430_v9, %v733_v12  ;;  %1277 = vmatmul.mubr.msk.bf16.gmra.mrb[16].mxu1 %vm90_vm1, %v443_v11 }
 0x202   :  { %1084 = vst.msk [vmem:[%s2179_s9 + $0x18] sm:$0xff] %vm90_vm1, %v739_v14  ;;  %1280 = vmatprep.mubr.msk.bf16.mxu1 %vm1429_vm0, %v1428_v0 }
 0x204   :  { %v435_v15 = vpop.f32.mrb[8].mxu1 }
 0x205   :  { %vm728_vm4 = vcmp.ge.f32.partialorder %v435_v15, 0.0  ;;  %v734_v16 = vmul.f32 0.01, %v435_v15  ;;  %v1268_v17 = vpop.f32.mrb[9].mxu1 }
 0x206   :  { %v438_v18 = vpop.f32.mrb[10].mxu1 }
 0x207   :  { %v740_v19 = vsel %vm728_vm4, %v435_v15, %v734_v16  ;;  %v444_v20 = vpack.c.bf16 %v438_v18, %v435_v15  ;;  %vm729_vm5 = vcmp.ge.f32.partialorder %v438_v18, 0.0  ;;  %v735_v21 = vmul.f32 0.01, %v438_v18  ;;  %v1269_v22 = vpop.f32.mrb[11].mxu1 }
 0x208   :  { %1085 = vst.msk [vmem:[%s2179_s9 + $0x20] sm:$0xff] %vm90_vm1, %v740_v19 }
 0x209   :  { %v741_v23 = vsel %vm729_vm5, %v438_v18, %v735_v21  ;;  %1281 = vmatmul.mubr.msk.bf16.gmra.mrb[20].mxu1 %vm90_vm1, %v444_v20 }
 0x20a   :  { %1086 = vst.msk [vmem:[%s2179_s9 + $0x28] sm:$0xff] %vm90_vm1, %v741_v23  ;;  %1324 = vmatprep.mubr.msk.bf16.mxu1 %vm1429_vm0, %v1428_v0 }
 0x2cc   :  { %v500_v29 = vpop.f32.mrb[12].mxu1 }
 0x2cd   :  { %v501_v31 = vadd.f32 %v1131_v27, %v500_v29  ;;  %v1274_v33 = vpop.f32.mrb[13].mxu1 }
 0x2ce   :  { %v503_v35 = vpop.f32.mrb[14].mxu1 }
 0x2cf   :  { %v1136_v37 = vmul.f32 -1.442695, %v501_v31  ;;  %v504_v39 = vadd.f32 %v1131_v27, %v503_v35  ;;  %v1275_v41 = vpop.f32.mrb[15].mxu1 }
 0x2d1   :  { %1392 = vpow2.f32 %v1136_v37  ;;  %v1137_v43 = vmul.f32 -1.442695, %v504_v39 }
 0x2d3   :  { %1394 = vpow2.f32 %v1137_v43 }
 0x2d4   :  { %v508_v45 = vpop.f32.mrb[16].mxu1 }
 0x2d5   :  { %v509_v47 = vadd.f32 %v1131_v27, %v508_v45  ;;  %v1278_v49 = vpop.f32.mrb[17].mxu1 }
 0x2d6   :  { %v511_v51 = vpop.f32.mrb[18].mxu1 }
 0x2d7   :  { %v1138_v53 = vmul.f32 -1.442695, %v509_v47  ;;  %v512_v55 = vadd.f32 %v1131_v27, %v511_v51  ;;  %v1279_v57 = vpop.f32.mrb[19].mxu1 }
 0x2d9   :  { %1396 = vpow2.f32 %v1138_v53  ;;  %v1139_v59 = vmul.f32 -1.442695, %v512_v55 }
 0x2db   :  { %v1393_v60 = vpop.eup %1392  ;;  %1398 = vpow2.f32 %v1139_v59 }
 0x2dc   :  { %v541_v61 = vadd.f32 1.0, %v1393_v60  ;;  %v516_v62 = vpop.f32.mrb[20].mxu1 }
 0x2dd   :  { %v1395_v63 = vpop.eup %1394  ;;  %v517_v1 = vadd.f32 %v1131_v27, %v516_v62  ;;  %v1282_v2 = vpop.f32.mrb[21].mxu1 }
 0x2de   :  { %1400 = vrcp.f32 %v541_v61  ;;  %v542_v3 = vadd.f32 1.0, %v1395_v63  ;;  %v519_v4 = vpop.f32.mrb[22].mxu1 }
 0x2df   :  { %v1140_v5 = vmul.f32 -1.442695, %v517_v1  ;;  %v520_v6 = vadd.f32 %v1131_v27, %v519_v4  ;;  %v1283_v7 = vpop.f32.mrb[23].mxu1 }
 0x2e0   :  { %1402 = vrcp.f32 %v542_v3 }
 0x2e1   :  { %1404 = vpow2.f32 %v1140_v5  ;;  %v1141_v8 = vmul.f32 -1.442695, %v520_v6 }
 0x2e3   :  { %v1397_v9 = vpop.eup %1396  ;;  %1406 = vpow2.f32 %v1141_v8 }
 0x2e4   :  { %v543_v10 = vadd.f32 1.0, %v1397_v9 }
 0x2e5   :  { %v1399_v11 = vpop.eup %1398 }
 0x2e6   :  { %1408 = vrcp.f32 %v543_v10  ;;  %v544_v12 = vadd.f32 1.0, %v1399_v11 }
 0x2e8   :  { %v1401_v13 = vpop.eup %1400  ;;  %1410 = vrcp.f32 %v544_v12 }
 0x2e9   :  { %v1728_v14 = vmul.f32 %v1401_v13, %v1652_v24  ;;  %v1731_v15 = vmul.f32 %v1401_v13, %v1664_v36  ;;  %v1734_v16 = vmul.f32 %v1401_v13, %v1676_v48 }
 0x2ea   :  { %v1403_v17 = vpop.eup %1402 }
 0x2eb   :  { %v1405_v18 = vpop.eup %1404  ;;  %v1737_v19 = vmul.f32 %v1403_v17, %v1654_v26  ;;  %v1740_v20 = vmul.f32 %v1403_v17, %v1666_v38  ;;  %v1743_v21 = vmul.f32 %v1403_v17, %v1678_v50 }
 0x2ec   :  { %v545_v22 = vadd.f32 1.0, %v1405_v18 }
 0x2ed   :  { %v1407_v24 = vpop.eup %1406  ;;  %v742_v36 = vpack.c.bf16 %v1737_v19, %v1728_v14 }
 0x2ee   :  { %1412 = vrcp.f32 %v545_v22  ;;  %v546_v23 = vadd.f32 1.0, %v1407_v24 }
 0x2ef   :  { %1325 = vmatmul.mubr.msk.bf16.vlgmr.msra.gmra.mrb[24].mxu1 %vm90_vm1, %v742_v36 }
 0x2f0   :  { %v1409_v48 = vpop.eup %1408  ;;  %1414 = vrcp.f32 %v546_v23  ;;  %1328 = vmatprep.mubr.msk.bf16.mxu1 %vm1429_vm0, %v1428_v0 }
 0x2f1   :  { %v1751_v26 = vmul.f32 %v1409_v48, %v1656_v28  ;;  %v1754_v38 = vmul.f32 %v1409_v48, %v1668_v40  ;;  %v1757_v50 = vmul.f32 %v1409_v48, %v1680_v52 }
 0x2f2   :  { %v1411_v25 = vpop.eup %1410 }
 0x2f3   :  { %v1760_v27 = vmul.f32 %v1411_v25, %v1658_v30  ;;  %v1763_v29 = vmul.f32 %v1411_v25, %v1670_v42  ;;  %v1766_v31 = vmul.f32 %v1411_v25, %v1682_v54 }
 0x2f5   :  { %v743_v28 = vpack.c.bf16 %v1760_v27, %v1751_v26 }
 0x2f7   :  { %1329 = vmatmul.mubr.msk.bf16.gmra.mrb[28].mxu1 %vm90_vm1, %v743_v28 }
 0x2f8   :  { %v1413_v40 = vpop.eup %1412  ;;  %1332 = vmatprep.mubr.msk.bf16.mxu1 %vm1429_vm0, %v1428_v0 }
 0x2f9   :  { %v1774_v52 = vmul.f32 %v1413_v40, %v1660_v32  ;;  %v1777_v30 = vmul.f32 %v1413_v40, %v1672_v44  ;;  %v1780_v42 = vmul.f32 %v1413_v40, %v1684_v56  ;;  %v745_v44 = vpack.c.bf16 %v1740_v20, %v1731_v15 }
 0x2fa   :  { %v1415_v54 = vpop.eup %1414  ;;  %v748_v56 = vpack.c.bf16 %v1743_v21, %v1734_v16 }
 0x2fb   :  { %2193 = vst [vmem:[#allocation2_spill] sm:$0xff] %v1774_v52  ;;  %2194 = vst [vmem:[#allocation3_spill] sm:$0xff] %v1777_v30  ;;  %v1783_v33 = vmul.f32 %v1415_v54, %v1662_v34  ;;  %v1786_v35 = vmul.f32 %v1415_v54, %v1674_v46  ;;  %v1789_v37 = vmul.f32 %v1415_v54, %v1686_v58 }
 0x2fc   :  { %v746_v34 = vpack.c.bf16 %v1763_v29, %v1754_v38  ;;  %v749_v58 = vpack.c.bf16 %v1766_v31, %v1757_v50 }
 0x2fd   :  { %2195 = vst [vmem:[#allocation4_spill] sm:$0xff] %v1783_v33  ;;  %2196 = vst [vmem:[#allocation5_spill] sm:$0xff] %v1786_v35  ;;  %v744_v32 = vpack.c.bf16 %v1783_v33, %v1774_v52  ;;  %v747_v46 = vpack.c.bf16 %v1786_v35, %v1777_v30  ;;  %v750_v39 = vpack.c.bf16 %v1789_v37, %v1780_v42 }
 0x2ff   :  { %1333 = vmatmul.mubr.msk.bf16.gmra.mrb[32].mxu1 %vm90_vm1, %v744_v32 }
 0x300   :  { %1336 = vmatprep.mubr.msk.bf16.mxu1 %vm1429_vm0, %v1428_v0 }
 0x307   :  { %1337 = vmatmul.mubr.msk.bf16.gmra.mrb[36].mxu1 %vm90_vm1, %v745_v44 }
 0x308   :  { %1340 = vmatprep.mubr.msk.bf16.mxu1 %vm1429_vm0, %v1428_v0 }
 0x30f   :  { %1341 = vmatmul.mubr.msk.bf16.gmra.mrb[40].mxu1 %vm90_vm1, %v746_v34 }
 0x310   :  { %1344 = vmatprep.mubr.msk.bf16.mxu1 %vm1429_vm0, %v1428_v0 }
 0x317   :  { %1345 = vmatmul.mubr.msk.bf16.gmra.mrb[44].mxu1 %vm90_vm1, %v747_v46 }
 0x318   :  { %1348 = vmatprep.mubr.msk.bf16.mxu1 %vm1429_vm0, %v1428_v0 }
 0x31f   :  { %1349 = vmatmul.mubr.msk.bf16.gmra.mrb[48].mxu1 %vm90_vm1, %v748_v56 }
 0x320   :  { %1352 = vmatprep.mubr.msk.bf16.mxu1 %vm1429_vm0, %v1428_v0 }
 0x327   :  { %1353 = vmatmul.mubr.msk.bf16.gmra.mrb[52].mxu1 %vm90_vm1, %v749_v58 }
 0x328   :  { %1356 = vmatprep.mubr.msk.bf16.mxu1 %vm1429_vm0, %v1428_v0 }
 0x32f   :  { %1357 = vmatmul.mubr.msk.bf16.gmra.mrb[56].mxu1 %vm90_vm1, %v750_v39 }
 0x3c2   :  { %v1824_v41 = vpop.f32.mrb[24].mxu1 }
 0x3c3   :  { %v1326_v43 = vpop.f32.mrb[25].mxu1  ;;  %v889_v62 = vmul.f32 %v1824_v41, %v1728_v14  ;;  %v919_v63 = vmul.f32 %v1824_v41, %v1824_v41 }
 0x3c4   :  { %v1826_v45 = vpop.f32.mrb[26].mxu1 }
 0x3c5   :  { %v1327_v47 = vpop.f32.mrb[27].mxu1  ;;  %v890_v4 = vmul.f32 %v1826_v45, %v1737_v19  ;;  %v920_v5 = vmul.f32 %v1826_v45, %v1826_v45 }
 0x3ca   :  { %v1828_v49 = vpop.f32.mrb[28].mxu1 }
 0x3cb   :  { %v1330_v51 = vpop.f32.mrb[29].mxu1  ;;  %v891_v18 = vmul.f32 %v1828_v49, %v1751_v26  ;;  %v921_v22 = vmul.f32 %v1828_v49, %v1828_v49 }
 0x3cc   :  { %v1830_v53 = vpop.f32.mrb[30].mxu1 }
 0x3cd   :  { %v1331_v55 = vpop.f32.mrb[31].mxu1  ;;  %v892_v48 = vmul.f32 %v1830_v53, %v1760_v27  ;;  %v922_v25 = vmul.f32 %v1830_v53, %v1830_v53 }
 0x3d2   :  { %v1832_v57 = vpop.f32.mrb[32].mxu1 }
 0x3d3   :  { %v1334_v0 = vpop.f32.mrb[33].mxu1  ;;  %v893_v39 = vmul.f32 %v1832_v57, %v1774_v52  ;;  %v923_v43 = vmul.f32 %v1832_v57, %v1832_v57 }
 0x3d4   :  { %v1834_v59 = vpop.f32.mrb[34].mxu1 }
 0x3d5   :  { %2197 = vst [vmem:[#allocation6_spill] sm:$0xff] %v1834_v59  ;;  %v1335_v60 = vpop.f32.mrb[35].mxu1  ;;  %v894_v0 = vmul.f32 %v1834_v59, %v1783_v33 }
 0x3d6   :  { %v924_v60 = vmul.f32 %v1834_v59, %v1834_v59 }
 0x3da   :  { %v1836_v61 = vpop.f32.mrb[36].mxu1 }
 0x3db   :  { %v895_v1 = vmul.f32 %v1836_v61, %v1731_v15  ;;  %v925_v2 = vmul.f32 %v1836_v61, %v1836_v61  ;;  %v1338_v3 = vpop.f32.mrb[37].mxu1 }
 0x3dc   :  { %v1850_v6 = vpop.f32.mrb[38].mxu1 }
 0x3dd   :  { %v901_v7 = vadd.f32 %v895_v1, %v889_v62  ;;  %v931_v8 = vadd.f32 %v925_v2, %v919_v63  ;;  %v896_v9 = vmul.f32 %v1850_v6, %v1740_v20  ;;  %v926_v10 = vmul.f32 %v1850_v6, %v1850_v6  ;;  %v1339_v11 = vpop.f32.mrb[39].mxu1 }
 0x3df   :  { %v902_v12 = vadd.f32 %v896_v9, %v890_v4  ;;  %v932_v13 = vadd.f32 %v926_v10, %v920_v5 }
 0x3e2   :  { %v1856_v17 = vpop.f32.mrb[40].mxu1 }
 0x3e3   :  { %v897_v24 = vmul.f32 %v1856_v17, %v1754_v38  ;;  %v927_v36 = vmul.f32 %v1856_v17, %v1856_v17  ;;  %v1342_v23 = vpop.f32.mrb[41].mxu1 }
 0x3e4   :  { %v1870_v28 = vpop.f32.mrb[42].mxu1 }
 0x3e5   :  { %v903_v40 = vadd.f32 %v897_v24, %v891_v18  ;;  %v933_v54 = vadd.f32 %v927_v36, %v921_v22  ;;  %v898_v32 = vmul.f32 %v1870_v28, %v1763_v29  ;;  %v928_v44 = vmul.f32 %v1870_v28, %v1870_v28  ;;  %v1343_v34 = vpop.f32.mrb[43].mxu1 }
 0x3e7   :  { %v904_v46 = vadd.f32 %v898_v32, %v892_v48  ;;  %v934_v56 = vadd.f32 %v928_v44, %v922_v25 }
 0x3ea   :  { %v1876_v58 = vpop.f32.mrb[44].mxu1 }
 0x3eb   :  { %v899_v47 = vmul.f32 %v1876_v58, %v1777_v30  ;;  %v929_v51 = vmul.f32 %v1876_v58, %v1876_v58  ;;  %v1346_v55 = vpop.f32.mrb[45].mxu1 }
 0x3ec   :  { %v1890_v62 = vpop.f32.mrb[46].mxu1 }
 0x3ed   :  { %2198 = vst [vmem:[#allocation7_spill] sm:$0xff] %v1890_v62  ;;  %v905_v63 = vadd.f32 %v899_v47, %v893_v39  ;;  %v935_v1 = vadd.f32 %v929_v51, %v923_v43  ;;  %v900_v2 = vmul.f32 %v1890_v62, %v1786_v35  ;;  %v930_v3 = vmul.f32 %v1890_v62, %v1890_v62  ;;  %v1347_v4 = vpop.f32.mrb[47].mxu1 }
 0x3ee   :  { %v1929_v4 = vmul.f32 0.2, %v1731_v15 }
 0x3ef   :  { %v1896_v5 = vadd.f32 %v900_v2, %v894_v0  ;;  %v1898_v9 = vadd.f32 %v930_v3, %v924_v60  ;;  %v1926_v3 = vmul.f32 0.2, %v1728_v14 }
 0x3f2   :  { %v866_v10 = vpop.f32.mrb[48].mxu1 }
 0x3f3   :  { %v907_v11 = vmul.f32 %v866_v10, %v1734_v16  ;;  %v937_v18 = vmul.f32 %v866_v10, %v866_v10  ;;  %v1350_v22 = vpop.f32.mrb[49].mxu1 }
 0x3f4   :  { %v1901_v24 = vpop.f32.mrb[50].mxu1 }
 0x3f5   :  { %v1903_v36 = vadd.f32 %v907_v11, %v901_v7  ;;  %v943_v23 = vadd.f32 %v937_v18, %v931_v8  ;;  %v908_v48 = vmul.f32 %v1901_v24, %v1743_v21  ;;  %v938_v25 = vmul.f32 %v1901_v24, %v1901_v24  ;;  %v1351_v32 = vpop.f32.mrb[51].mxu1 }
 0x3f6   :  { %v1932_v11 = vmul.f32 0.2, %v1734_v16  ;;  %v1949_v32 = vmul.f32 0.2, %v1754_v38 }
 0x3f7   :  { %v949_v44 = vadd.f32 1e-06, %v943_v23  ;;  %v1909_v34 = vadd.f32 %v908_v48, %v902_v12  ;;  %v944_v39 = vadd.f32 %v938_v25, %v932_v13  ;;  %v1940_v23 = vmul.f32 0.2, %v1740_v20 }
 0x3f8   :  { %v1943_v48 = vmul.f32 0.2, %v1743_v21  ;;  %v1946_v25 = vmul.f32 0.2, %v1751_v26  ;;  %vm967_vm0 = vcmp.ge.f32.partialorder %v1903_v36, 0.0 }
 0x3f9   :  { %1416 = vrcp.f32 %v949_v44  ;;  %v950_v43 = vadd.f32 1e-06, %v944_v39  ;;  %v1952_v44 = vmul.f32 0.2, %v1757_v50  ;;  %vm968_vm6 = vcmp.ge.f32.partialorder %v1909_v34, 0.0 }
 0x3fa   :  { %v1911_v47 = vpop.f32.mrb[52].mxu1 }
 0x3fb   :  { %1418 = vrcp.f32 %v950_v43  ;;  %v909_v7 = vmul.f32 %v1911_v47, %v1757_v50  ;;  %v939_v8 = vmul.f32 %v1911_v47, %v1911_v47  ;;  %v1354_v51 = vpop.f32.mrb[53].mxu1 }
 0x3fc   :  { %v1917_v55 = vpop.f32.mrb[54].mxu1 }
 0x3fd   :  { %v1919_v0 = vadd.f32 %v909_v7, %v903_v40  ;;  %v945_v60 = vadd.f32 %v939_v8, %v933_v54  ;;  %v910_v12 = vmul.f32 %v1917_v55, %v1766_v31  ;;  %v940_v13 = vmul.f32 %v1917_v55, %v1917_v55  ;;  %v1355_v2 = vpop.f32.mrb[55].mxu1 }
 0x3fe   :  { %v1935_v40 = vmul.f32 0.2, %v1737_v19  ;;  %v1963_v8 = vmul.f32 0.2, %v1766_v31  ;;  %v1972_v2 = vmul.f32 0.2, %v1774_v52 }
 0x3ff   :  { %v951_v54 = vadd.f32 1e-06, %v945_v60  ;;  %v1937_v18 = vadd.f32 %v910_v12, %v904_v46  ;;  %v946_v22 = vadd.f32 %v940_v13, %v934_v56  ;;  %v1955_v46 = vmul.f32 0.2, %v1760_v27 }
 0x400   :  { %v1958_v56 = vmul.f32 0.2, %v1763_v29  ;;  %2199 = vst [vmem:[#allocation8_spill] sm:$0xff] %v1972_v2  ;;  %vm969_vm7 = vcmp.ge.f32.partialorder %v1919_v0, 0.0 }
 0x401   :  { %1420 = vrcp.f32 %v951_v54  ;;  %v952_v39 = vadd.f32 1e-06, %v946_v22  ;;  %v1975_v54 = vmul.f32 0.2, %v1777_v30  ;;  %vm970_vm8 = vcmp.ge.f32.partialorder %v1937_v18, 0.0 }
 0x402   :  { %v1960_v43 = vpop.f32.mrb[56].mxu1 }
 0x403   :  { %v1417_v7 = vpop.eup %1416  ;;  %1422 = vrcp.f32 %v952_v39  ;;  %v911_v51 = vmul.f32 %v1960_v43, %v1780_v42  ;;  %v941_v60 = vmul.f32 %v1960_v43, %v1960_v43  ;;  %v1358_v12 = vpop.f32.mrb[57].mxu1  ;;  %2200 = vst [vmem:[#allocation9_spill] sm:$0xff] %v1975_v54 }
 0x404   :  { %v956_v13 = vmul.f32 %v1417_v7, %v1903_v36  ;;  %v1977_v22 = vpop.f32.mrb[58].mxu1 }
 0x405   :  { %v1419_v39 = vpop.eup %1418  ;;  %v1979_v35 = vadd.f32 %v911_v51, %v905_v63  ;;  %v947_v33 = vadd.f32 %v941_v60, %v935_v1  ;;  %v912_v62 = vmul.f32 %v1977_v22, %v1789_v37  ;;  %v942_v7 = vmul.f32 %v1977_v22, %v1977_v22  ;;  %v1359_v12 = vpop.f32.mrb[59].mxu1 }
 0x406   :  { %v973_v59 = vmul.f32 %v956_v13, %v1824_v41  ;;  %v991_v2 = vmul.f32 %v956_v13, %v1836_v61  ;;  %v1009_v52 = vmul.f32 %v956_v13, %v866_v10  ;;  %v958_v54 = vmul.f32 %v1419_v39, %v1909_v34 }
 0x407   :  { %v953_v30 = vadd.f32 1e-06, %v947_v33  ;;  %v1990_v63 = vadd.f32 %v912_v62, %v1896_v5  ;;  %v948_v1 = vadd.f32 %v942_v7, %v1898_v9  ;;  %vm971_vm9 = vcmp.ge.f32.partialorder %v1979_v35, 0.0 }
 0x408   :  { %v979_v51 = vsub.f32 %v1728_v14, %v973_v59  ;;  %v997_v60 = vsub.f32 %v1731_v15, %v991_v2  ;;  %v1015_v12 = vsub.f32 %v1734_v16, %v1009_v52  ;;  %v974_v41 = vmul.f32 %v958_v54, %v1826_v45 }
 0x409   :  { %v992_v61 = vmul.f32 %v958_v54, %v1850_v6  ;;  %v1010_v10 = vmul.f32 %v958_v54, %v1901_v24  ;;  %1424 = vrcp.f32 %v953_v30  ;;  %v954_v13 = vadd.f32 1e-06, %v948_v1 }
 0x40a   :  { %v985_v33 = vsel %vm967_vm0, %v1728_v14, %v979_v51  ;;  %v1003_v59 = vsel %vm967_vm0, %v1731_v15, %v997_v60  ;;  %v1021_v52 = vsel %vm967_vm0, %v1734_v16, %v1015_v12  ;;  %v980_v45 = vsub.f32 %v1737_v19, %v974_v41 }
 0x40b   :  { %v1421_v62 = vpop.eup %1420  ;;  %v1033_v6 = vmul.f32 0.8, %v985_v33  ;;  %v1051_v5 = vmul.f32 0.8, %v1003_v59  ;;  %v1069_v9 = vmul.f32 0.8, %v1021_v52  ;;  %v998_v30 = vsub.f32 %v1740_v20, %v992_v61 }
 0x40c   :  { %v986_v14 = vsel %vm968_vm6, %v1737_v19, %v980_v45  ;;  %v1016_v24 = vsub.f32 %v1743_v21, %v1010_v10  ;;  %v960_v15 = vmul.f32 %v1421_v62, %v1919_v0  ;;  %1426 = vrcp.f32 %v954_v13 }
 0x40d   :  { %v1423_v2 = vpop.eup %1422  ;;  %v1039_v16 = vadd.f32 %v1033_v6, %v1926_v3  ;;  %v1057_v36 = vadd.f32 %v1051_v5, %v1929_v4  ;;  %v1075_v54 = vadd.f32 %v1069_v9, %v1932_v11  ;;  %v1004_v39 = vsel %vm968_vm6, %v1740_v20, %v998_v30 }
 0x40e   :  { %v1022_v19 = vsel %vm968_vm6, %v1743_v21, %v1016_v24  ;;  %v1034_v7 = vmul.f32 0.8, %v986_v14  ;;  %v1052_v1 = vmul.f32 0.8, %v1004_v39  ;;  %v975_v51 = vmul.f32 %v960_v15, %v1828_v49  ;;  %v2201_v14 = vld [vmem:[#allocation2_spill] sm:$0xff]  ;;  %v2204_v39 = vld [vmem:[#allocation7_spill] sm:$0xff] }
 0x40f   :  { %1087 = vst.msk [vmem:[%s2182_s10] sm:$0xff] %vm90_vm1, %v1039_v16  ;;  %1093 = vst.msk [vmem:[%s2182_s10 + $0x30] sm:$0xff] %vm90_vm1, %v1057_v36  ;;  %v1070_v20 = vmul.f32 0.8, %v1022_v19  ;;  %v993_v21 = vmul.f32 %v960_v15, %v1856_v17  ;;  %v1011_v49 = vmul.f32 %v960_v15, %v1911_v47  ;;  %v962_v34 = vmul.f32 %v1423_v2, %v1937_v18  ;;  %v2202_v15 = vld [vmem:[#allocation3_spill] sm:$0xff]  ;;  %v2203_v36 = vld [vmem:[#allocation6_spill] sm:$0xff] }
 0x410   :  { %1099 = vst.msk [vmem:[%s2182_s10 + $0x60] sm:$0xff] %vm90_vm1, %v1075_v54  ;;  %v1040_v3 = vadd.f32 %v1034_v7, %v1935_v40  ;;  %v1058_v4 = vadd.f32 %v1052_v1, %v1940_v23  ;;  %v981_v11 = vsub.f32 %v1751_v26, %v975_v51  ;;  %vm972_vm10 = vcmp.ge.f32.partialorder %v1990_v63, 0.0 }
 0x411   :  { %v1076_v60 = vadd.f32 %v1070_v20, %v1943_v48  ;;  %v999_v12 = vsub.f32 %v1754_v38, %v993_v21  ;;  %v1017_v41 = vsub.f32 %v1757_v50, %v1011_v49  ;;  %v976_v17 = vmul.f32 %v962_v34, %v1830_v53  ;;  %v2206_v49 = vld [vmem:[#allocation5_spill] sm:$0xff] }
 0x412   :  { %1088 = vst.msk [vmem:[%s2182_s10 + $0x8] sm:$0xff] %vm90_vm1, %v1040_v3  ;;  %1094 = vst.msk [vmem:[%s2182_s10 + $0x38] sm:$0xff] %vm90_vm1, %v1058_v4  ;;  %v987_v47 = vsel %vm969_vm7, %v1751_v26, %v981_v11  ;;  %v994_v0 = vmul.f32 %v962_v34, %v1870_v28  ;;  %v1012_v40 = vmul.f32 %v962_v34, %v1917_v55 }
 0x413   :  { %v1425_v23 = vpop.eup %1424  ;;  %1100 = vst.msk [vmem:[%s2182_s10 + $0x68] sm:$0xff] %vm90_vm1, %v1076_v60  ;;  %v1005_v53 = vsel %vm969_vm7, %v1754_v38, %v999_v12  ;;  %v1023_v48 = vsel %vm969_vm7, %v1757_v50, %v1017_v41  ;;  %v1035_v61 = vmul.f32 0.8, %v987_v47  ;;  %v982_v10 = vsub.f32 %v1760_v27, %v976_v17 }
 0x414   :  { %v1053_v26 = vmul.f32 0.8, %v1005_v53  ;;  %v1071_v13 = vmul.f32 0.8, %v1023_v48  ;;  %v1000_v33 = vsub.f32 %v1763_v29, %v994_v0  ;;  %v1018_v28 = vsub.f32 %v1766_v31, %v1012_v40 }
 0x415   :  { %v1041_v55 = vadd.f32 %v1035_v61, %v1946_v25  ;;  %v988_v59 = vsel %vm970_vm8, %v1760_v27, %v982_v10  ;;  %v964_v52 = vmul.f32 %v1425_v23, %v1979_v35  ;;  %v1067_v38 = vmul.f32 0.2, %v1780_v42 }
 0x416   :  { %v1427_v50 = vpop.eup %1426  ;;  %v1059_v45 = vadd.f32 %v1053_v26, %v1949_v32  ;;  %v1077_v62 = vadd.f32 %v1071_v13, %v1952_v44  ;;  %v1006_v6 = vsel %vm970_vm8, %v1763_v29, %v1000_v33  ;;  %v1024_v25 = vsel %vm970_vm8, %v1766_v31, %v1018_v28 }
 0x417   :  { %1089 = vst.msk [vmem:[%s2182_s10 + $0x10] sm:$0xff] %vm90_vm1, %v1041_v55  ;;  %v1036_v27 = vmul.f32 0.8, %v988_v59  ;;  %v1054_v5 = vmul.f32 0.8, %v1006_v6  ;;  %v977_v32 = vmul.f32 %v964_v52, %v1832_v57  ;;  %v995_v29 = vmul.f32 %v964_v52, %v1876_v58 }
 0x418   :  { %v1072_v9 = vmul.f32 0.8, %v1024_v25  ;;  %1095 = vst.msk [vmem:[%s2182_s10 + $0x40] sm:$0xff] %vm90_vm1, %v1059_v45  ;;  %1101 = vst.msk [vmem:[%s2182_s10 + $0x70] sm:$0xff] %vm90_vm1, %v1077_v62  ;;  %v1013_v31 = vmul.f32 %v964_v52, %v1960_v43  ;;  %v966_v18 = vmul.f32 %v1427_v50, %v1990_v63  ;;  %v2205_v43 = vld [vmem:[#allocation4_spill] sm:$0xff] }
 0x419   :  { %v1042_v57 = vadd.f32 %v1036_v27, %v1955_v46  ;;  %v1060_v44 = vadd.f32 %v1054_v5, %v1958_v56  ;;  %v983_v24 = vsub.f32 %v2201_v14, %v977_v32  ;;  %v1001_v2 = vsub.f32 %v2202_v15, %v995_v29 }
 0x41a   :  { %v1078_v30 = vadd.f32 %v1072_v9, %v1963_v8  ;;  %v1019_v16 = vsub.f32 %v1780_v42, %v1013_v31  ;;  %v978_v54 = vmul.f32 %v966_v18, %v2203_v36  ;;  %v996_v58 = vmul.f32 %v966_v18, %v2204_v39 }
 0x41b   :  { %1090 = vst.msk [vmem:[%s2182_s10 + $0x18] sm:$0xff] %vm90_vm1, %v1042_v57  ;;  %1096 = vst.msk [vmem:[%s2182_s10 + $0x48] sm:$0xff] %vm90_vm1, %v1060_v44  ;;  %v989_v46 = vsel %vm971_vm9, %v2201_v14, %v983_v24  ;;  %v1014_v56 = vmul.f32 %v966_v18, %v1977_v22  ;;  %v1032_v8 = vmul.f32 0.2, %v2205_v43  ;;  %v1007_v19 = vsel %vm971_vm9, %v2202_v15, %v1001_v2  ;;  %v2207_v22 = vld [vmem:[#allocation8_spill] sm:$0xff] }
 0x41c   :  { %1102 = vst.msk [vmem:[%s2182_s10 + $0x78] sm:$0xff] %vm90_vm1, %v1078_v30  ;;  %v1025_v7 = vsel %vm971_vm9, %v1780_v42, %v1019_v16  ;;  %v1037_v1 = vmul.f32 0.8, %v989_v46  ;;  %v984_v51 = vsub.f32 %v2205_v43, %v978_v54  ;;  %v1055_v20 = vmul.f32 0.8, %v1007_v19  ;;  %v2208_v42 = vld [vmem:[#allocation9_spill] sm:$0xff] }
 0x41d   :  { %v1073_v21 = vmul.f32 0.8, %v1025_v7  ;;  %v1002_v34 = vsub.f32 %v2206_v49, %v996_v58  ;;  %v1020_v3 = vsub.f32 %v1789_v37, %v1014_v56  ;;  %v1050_v60 = vmul.f32 0.2, %v2206_v49 }
 0x41e   :  { %v1043_v4 = vadd.f32 %v1037_v1, %v2207_v22  ;;  %v990_v11 = vsel %vm972_vm10, %v2205_v43, %v984_v51  ;;  %v1068_v35 = vmul.f32 0.2, %v1789_v37  ;;  %v1061_v12 = vadd.f32 %v1055_v20, %v2208_v42 }
 0x41f   :  { %v1079_v41 = vadd.f32 %v1073_v21, %v1067_v38  ;;  %v1008_v17 = vsel %vm972_vm10, %v2206_v49, %v1002_v34  ;;  %v1026_v47 = vsel %vm972_vm10, %v1789_v37, %v1020_v3  ;;  %v1038_v0 = vmul.f32 0.8, %v990_v11 }
 0x420   :  { %1091 = vst.msk [vmem:[%s2182_s10 + $0x20] sm:$0xff] %vm90_vm1, %v1043_v4  ;;  %v1056_v40 = vmul.f32 0.8, %v1008_v17  ;;  %v1074_v23 = vmul.f32 0.8, %v1026_v47  ;;  %1097 = vst.msk [vmem:[%s2182_s10 + $0x50] sm:$0xff] %vm90_vm1, %v1061_v12 }
 0x421   :  { %1103 = vst.msk [vmem:[%s2182_s10 + $0x80] sm:$0xff] %vm90_vm1, %v1079_v41  ;;  %v1044_v63 = vadd.f32 %v1038_v0, %v1032_v8 }
 0x422   :  { %v1062_v37 = vadd.f32 %v1056_v40, %v1050_v60  ;;  %v1080_v53 = vadd.f32 %v1074_v23, %v1068_v35 }
 0x423   :  { %1092 = vst.msk [vmem:[%s2182_s10 + $0x28] sm:$0xff] %vm90_vm1, %v1044_v63 }
 0x424   :  { %1098 = vst.msk [vmem:[%s2182_s10 + $0x58] sm:$0xff] %vm90_vm1, %v1062_v37  ;;  %1104 = vst.msk [vmem:[%s2182_s10 + $0x88] sm:$0xff] %vm90_vm1, %v1080_v53 }

// kernel: _lambda_.9
= control target key start
LH: loop header
LB: loop body
LE: loop exit
PB: predicated region body
PF: predicated region fallthrough
CT: control target
= control target key end

     0   :  { %vm126_vm0 = vcmask 1043456   ;;  %v2860_v0 = vmov 0.0   ;;  %vm2006_vm1 = vmmov 0   ;;  %vm98_vm2 = vcmask 64512   ;;  %s2844_s2 = inlined_call_operand.vmem [shape: bf16[8,8], index: 2, kind: input, shape index: {}]   ;;  %s2845_s1 = inlined_call_operand.vmem [shape: f32[3,48,8], index: 1, kind: input, shape index: {}]   ;;  %s2846_s4 = inlined_call_operand.vmem [shape: bf16[32,32], index: 4, kind: input, shape index: {}]   ;;  %s2847_s0 = inlined_call_operand.vmem [shape: f32[48,32], index: 0, kind: input, shape index: {}]   ;;  %s2848_s7 = inlined_call_operand.vmem [shape: bf16[8,8], index: 7, kind: input, shape index: {}]   ;;  %s2849_s3 = inlined_call_operand.vmem [shape: bf16[8,32], index: 3, kind: input, shape index: {}]   ;;  %s2850_s5 = inlined_call_operand.vmem [shape: bf16[32,8], index: 5, kind: input, shape index: {}]   ;;  %s2851_s8 = inlined_call_operand.vmem [shape: bf16[8,8], index: 8, kind: input, shape index: {}]   ;;  %s2852_s10 = inlined_call_operand.vmem [shape: bf16[32,32], index: 10, kind: input, shape index: {}]   ;;  %s2853_s9 = inlined_call_operand.vmem [shape: bf16[8,32], index: 9, kind: input, shape index: {}]   ;;  %s2854_s11 = inlined_call_operand.vmem [shape: bf16[32,8], index: 11, kind: input, shape index: {}]   ;;  %s2855_s6 = inlined_call_operand.vmem [shape: f32[1,8], index: 6, kind: input, shape index: {}, may-alias: {6,12}]   ;;  %s2856_s13 = inlined_call_operand.vmem [shape: bf16[8,8], index: 13, kind: input, shape index: {}]   ;;  %s2857_s14 = inlined_call_operand.vmem [shape: f32[48,64], index: 14, kind: output, shape index: {0}]   ;;  %s2858_s12 = inlined_call_operand.vmem [shape: f32[1,8], index: 12, kind: input, shape index: {}, may-alias: {6,12}]   ;;  %s2859_s15 = inlined_call_operand.vmem [shape: f32[3,48,16], index: 15, kind: output, shape index: {1}]  }
   0x1   :  { %1659 = vmatprep.subr.bf16.mxu0 %v2860_v0  ;;  %v86_v1 = vld [vmem:[%s2844_s2] sm:$0xf]  ;;  %1661 = vmatprep.mubr.msk.bf16.mxu0 %vm2006_vm1, %v2860_v0  ;;  %v57_v3 = vld [vmem:[%s2845_s1 + $0x8] sm:$0xff]  ;;  %v58_v6 = vld [vmem:[%s2845_s1 + $0x10] sm:$0xff]  ;;  %vm322_vm3 = vcmask 261120  }
   0x2   :  { %v56_v2 = vld [vmem:[%s2845_s1] sm:$0xff]  ;;  %v128_v4 = vsel %vm126_vm0, %v86_v1, 0  ;;  %1713 = vmatprep.subr.bf16.mxu1 %v2860_v0  ;;  %1715 = vmatprep.mubr.msk.bf16.mxu1 %vm2006_vm1, %v2860_v0  ;;  %v59_v7 = vld [vmem:[%s2845_s1 + $0x18] sm:$0xff]  ;;  %v1926_v10 = vld [vmem:[%s2846_s4 + $0x8] sm:$0xff]  }
   0x3   :  { %v2102_v5 = vpack.c.bf16 %v57_v3, %v56_v2  ;;  %1660 = vmatpush3.bf16.msra.mxu0 %v128_v4  ;;  %v1925_v8 = vld [vmem:[%s2846_s4] sm:$0xff]   ;;  %v2121_v9 = vpack.c.bf16 %v59_v7, %v58_v6  ;;  %v61_v12 = vld [vmem:[%s2845_s1 + $0x28] sm:$0xff]  ;;  %v62_v14 = vld [vmem:[%s2845_s1 + $0x30] sm:$0xff] }
   0x4   :  { %1697 = vmatprep.subr.bf16.mxu0 %v2860_v0  ;;  %v60_v11 = vld [vmem:[%s2845_s1 + $0x20] sm:$0xff]  ;;  %v63_v15 = vld [vmem:[%s2845_s1 + $0x38] sm:$0xff]  ;;  %v65_v18 = vld [vmem:[%s2845_s1 + $0x48] sm:$0xff] }
   0x5   :  { %v2138_v13 = vpack.c.bf16 %v61_v12, %v60_v11  ;;  %v2150_v16 = vpack.c.bf16 %v63_v15, %v62_v14  ;;  %v64_v17 = vld [vmem:[%s2845_s1 + $0x40] sm:$0xff]  ;;  %v66_v20 = vld [vmem:[%s2845_s1 + $0x50] sm:$0xff]  ;;  %v67_v21 = vld [vmem:[%s2845_s1 + $0x58] sm:$0xff] }
   0x6   :  { %1662 = vmatmul.mubr.msk.bf16.vlgmr.msra.gmra.mrb[0].mxu0 %vm98_vm2, %v2102_v5  ;;  %v2162_v19 = vpack.c.bf16 %v65_v18, %v64_v17  ;;  %v2174_v22 = vpack.c.bf16 %v67_v21, %v66_v20  ;;  %v68_v23 = vld [vmem:[%s2845_s1 + $0x60] sm:$0xff]  ;;  %v69_v24 = vld [vmem:[%s2845_s1 + $0x68] sm:$0xff]  ;;  %v70_v26 = vld [vmem:[%s2845_s1 + $0x70] sm:$0xff] }
   0x7   :  { %1665 = vmatprep.mubr.msk.bf16.mxu0 %vm2006_vm1, %v2860_v0  ;;  %1698 = vmatpush3.bf16.msra.mxu0 %v1925_v8  ;;  %v2186_v25 = vpack.c.bf16 %v69_v24, %v68_v23  ;;  %v71_v27 = vld [vmem:[%s2845_s1 + $0x78] sm:$0xff]  ;;  %v72_v29 = vld [vmem:[%s2845_s1 + $0x80] sm:$0xff]  ;;  %v73_v30 = vld [vmem:[%s2845_s1 + $0x88] sm:$0xff] }
   0x8   :  { %1699 = vmatprep.subr.bf16.mxu0 %v2860_v0  ;;  %v2198_v28 = vpack.c.bf16 %v71_v27, %v70_v26  ;;  %v2210_v31 = vpack.c.bf16 %v73_v30, %v72_v29  ;;  %v50_v32 = vld [vmem:[%s2847_s0] sm:$0xff]  ;;  %v51_v33 = vld [vmem:[%s2847_s0 + $0x8] sm:$0xff]  ;;  %v52_v35 = vld [vmem:[%s2847_s0 + $0x10] sm:$0xff] }
   0x9   :  { %v2222_v34 = vpack.c.bf16 %v51_v33, %v50_v32  ;;  %v53_v36 = vld [vmem:[%s2847_s0 + $0x18] sm:$0xff]  ;;  %v54_v38 = vld [vmem:[%s2847_s0 + $0x20] sm:$0xff]  ;;  %v55_v39 = vld [vmem:[%s2847_s0 + $0x28] sm:$0xff] }
   0xa   :  { %v2234_v37 = vpack.c.bf16 %v53_v36, %v52_v35  ;;  %v97_v40 = vld [vmem:[%s2848_s7] sm:$0xf]  ;;  %v2249_v41 = vpack.c.bf16 %v55_v39, %v54_v38 }
   0xb   :  { %1700 = vmatpush3.bf16.msra.mxu0 %v1926_v10  ;;  %v618_v42 = vsel %vm126_vm0, %v97_v40, 0  ;;  %v87_v43 = vld [vmem:[%s2849_s3] sm:$0xf] }
   0xc   :  { %1743 = vmatprep.subr.bf16.mxu0 %v2860_v0  ;;  %v399_v44 = vsel %vm126_vm0, %v87_v43, 0 }
   0xd   :  { %1714 = vmatpush3.bf16.msra.mxu1 %v399_v44 }
   0xe   :  { %1666 = vmatmul.mubr.msk.bf16.gmra.mrb[4].mxu0 %vm98_vm2, %v2121_v9  ;;  %1727 = vmatprep.subr.bf16.mxu1 %v2860_v0 }
   0xf   :  { %1669 = vmatprep.mubr.msk.bf16.mxu0 %vm2006_vm1, %v2860_v0 }
  0x16   :  { %1670 = vmatmul.mubr.msk.bf16.gmra.mrb[8].mxu0 %vm98_vm2, %v2138_v13 }
  0x17   :  { %1673 = vmatprep.mubr.msk.bf16.mxu0 %vm2006_vm1, %v2860_v0 }
  0x1e   :  { %1674 = vmatmul.mubr.msk.bf16.gmra.mrb[12].mxu0 %vm98_vm2, %v2150_v16 }
  0x1f   :  { %1677 = vmatprep.mubr.msk.bf16.mxu0 %vm2006_vm1, %v2860_v0 }
  0x26   :  { %1678 = vmatmul.mubr.msk.bf16.gmra.mrb[16].mxu0 %vm98_vm2, %v2162_v19 }
  0x27   :  { %1681 = vmatprep.mubr.msk.bf16.mxu0 %vm2006_vm1, %v2860_v0 }
  0x2e   :  { %1682 = vmatmul.mubr.msk.bf16.gmra.mrb[20].mxu0 %vm98_vm2, %v2174_v22 }
  0x2f   :  { %1685 = vmatprep.mubr.msk.bf16.mxu0 %vm2006_vm1, %v2860_v0 }
  0x36   :  { %1686 = vmatmul.mubr.msk.bf16.gmra.mrb[24].mxu0 %vm98_vm2, %v2186_v25 }
  0x37   :  { %1689 = vmatprep.mubr.msk.bf16.mxu0 %vm2006_vm1, %v2860_v0 }
  0x3e   :  { %1690 = vmatmul.mubr.msk.bf16.gmra.mrb[28].mxu0 %vm98_vm2, %v2198_v28 }
  0x3f   :  { %1693 = vmatprep.mubr.msk.bf16.mxu0 %vm2006_vm1, %v2860_v0 }
  0x46   :  { %1694 = vmatmul.mubr.msk.bf16.gmra.mrb[32].mxu0 %vm98_vm2, %v2210_v31 }
  0x47   :  { %1701 = vmatprep.mubr.msk.bf16.mxu0 %vm2006_vm1, %v2860_v0 }
  0x4e   :  { %1702 = vmatmul.mubr.msk.bf16.vlgmr.msra.gmra.mrb[36].mxu0 %vm322_vm3, %v2222_v34 }
  0x4f   :  { %1705 = vmatprep.mubr.msk.bf16.mxu0 %vm2006_vm1, %v2860_v0  ;;  %1744 = vmatpush3.bf16.msra.mxu0 %v618_v42 }
  0x50   :  { %1819 = vmatprep.subr.bf16.mxu0 %v2860_v0 }
  0x56   :  { %1706 = vmatmul.mubr.msk.bf16.gmra.mrb[40].mxu0 %vm322_vm3, %v2234_v37 }
  0x57   :  { %1709 = vmatprep.mubr.msk.bf16.mxu0 %vm2006_vm1, %v2860_v0 }
  0x5e   :  { %1710 = vmatmul.mubr.msk.bf16.gmra.mrb[44].mxu0 %vm322_vm3, %v2249_v41 }
  0x5f   :  { %1745 = vmatprep.mubr.msk.bf16.mxu0 %vm2006_vm1, %v2860_v0 }
  0xd9   :  { %v164_v45 = vpop.f32.mrb[0].mxu0 }
  0xda   :  { %v1663_v46 = vpop.f32.mrb[1].mxu0  ;;  %v235_v61 = vmul.f32 %v164_v45, %v164_v45 }
  0xdb   :  { %v167_v47 = vpop.f32.mrb[2].mxu0 }
  0xdc   :  { %v581_v48 = vpack.c.bf16 %v167_v47, %v164_v45  ;;  %v1664_v49 = vpop.f32.mrb[3].mxu0  ;;  %v236_v2 = vmul.f32 %v167_v47, %v167_v47 }
  0xde   :  { %1746 = vmatmul.mubr.msk.bf16.vlgmr.msra.gmra.mrb[48].mxu0 %vm98_vm2, %v581_v48 }
  0xdf   :  { %1749 = vmatprep.mubr.msk.bf16.mxu0 %vm2006_vm1, %v2860_v0 }
  0xe1   :  { %v172_v50 = vpop.f32.mrb[4].mxu0 }
  0xe2   :  { %v1667_v51 = vpop.f32.mrb[5].mxu0  ;;  %v237_v11 = vmul.f32 %v172_v50, %v172_v50 }
  0xe3   :  { %v175_v52 = vpop.f32.mrb[6].mxu0 }
  0xe4   :  { %v582_v53 = vpack.c.bf16 %v175_v52, %v172_v50  ;;  %v1668_v54 = vpop.f32.mrb[7].mxu0  ;;  %v238_v17 = vmul.f32 %v175_v52, %v175_v52 }
  0xe6   :  { %1750 = vmatmul.mubr.msk.bf16.gmra.mrb[52].mxu0 %vm98_vm2, %v582_v53 }
  0xe7   :  { %1753 = vmatprep.mubr.msk.bf16.mxu0 %vm2006_vm1, %v2860_v0 }
  0xe9   :  { %v180_v55 = vpop.f32.mrb[8].mxu0 }
  0xea   :  { %v1671_v56 = vpop.f32.mrb[9].mxu0  ;;  %v239_v27 = vmul.f32 %v180_v55, %v180_v55 }
  0xeb   :  { %v183_v57 = vpop.f32.mrb[10].mxu0 }
  0xec   :  { %v583_v58 = vpack.c.bf16 %v183_v57, %v180_v55  ;;  %v1672_v59 = vpop.f32.mrb[11].mxu0  ;;  %v240_v33 = vmul.f32 %v183_v57, %v183_v57 }
  0xee   :  { %1754 = vmatmul.mubr.msk.bf16.gmra.mrb[56].mxu0 %vm98_vm2, %v583_v58 }
  0xef   :  { %1757 = vmatprep.mubr.msk.bf16.mxu0 %vm2006_vm1, %v2860_v0 }
  0xf1   :  { %v188_v60 = vpop.f32.mrb[12].mxu0 }
  0xf2   :  { %v241_v62 = vmul.f32 %v188_v60, %v188_v60  ;;  %v1675_v63 = vpop.f32.mrb[13].mxu0 }
  0xf3   :  { %v191_v1 = vpop.f32.mrb[14].mxu0 }
  0xf4   :  { %v247_v3 = vadd.f32 %v241_v62, %v235_v61  ;;  %v242_v4 = vmul.f32 %v191_v1, %v191_v1  ;;  %v584_v6 = vpack.c.bf16 %v191_v1, %v188_v60  ;;  %v1676_v7 = vpop.f32.mrb[15].mxu0 }
  0xf6   :  { %v248_v8 = vadd.f32 %v242_v4, %v236_v2  ;;  %1758 = vmatmul.mubr.msk.bf16.gmra.mrb[60].mxu0 %vm98_vm2, %v584_v6 }
  0xf7   :  { %1761 = vmatprep.mubr.msk.bf16.mxu0 %vm2006_vm1, %v2860_v0 }
  0xf9   :  { %v196_v10 = vpop.f32.mrb[16].mxu0 }
  0xfa   :  { %v243_v12 = vmul.f32 %v196_v10, %v196_v10  ;;  %v1679_v14 = vpop.f32.mrb[17].mxu0 }
  0xfb   :  { %v199_v15 = vpop.f32.mrb[18].mxu0 }
  0xfc   :  { %v249_v18 = vadd.f32 %v243_v12, %v237_v11  ;;  %v244_v20 = vmul.f32 %v199_v15, %v199_v15  ;;  %v585_v21 = vpack.c.bf16 %v199_v15, %v196_v10  ;;  %v1680_v23 = vpop.f32.mrb[19].mxu0 }
  0xfe   :  { %v250_v24 = vadd.f32 %v244_v20, %v238_v17  ;;  %1762 = vmatmul.mubr.msk.bf16.gmra.mrb[64].mxu0 %vm98_vm2, %v585_v21 }
  0xff   :  { %1765 = vmatprep.mubr.msk.bf16.mxu0 %vm2006_vm1, %v2860_v0 }
 0x101   :  { %v204_v26 = vpop.f32.mrb[20].mxu0 }
 0x102   :  { %v245_v29 = vmul.f32 %v204_v26, %v204_v26  ;;  %v1683_v30 = vpop.f32.mrb[21].mxu0 }
 0x103   :  { %v207_v32 = vpop.f32.mrb[22].mxu0 }
 0x104   :  { %v251_v35 = vadd.f32 %v245_v29, %v239_v27  ;;  %v246_v36 = vmul.f32 %v207_v32, %v207_v32  ;;  %v586_v38 = vpack.c.bf16 %v207_v32, %v204_v26  ;;  %v1684_v39 = vpop.f32.mrb[23].mxu0 }
 0x106   :  { %v252_v40 = vadd.f32 %v246_v36, %v240_v33  ;;  %1766 = vmatmul.mubr.msk.bf16.gmra.mrb[68].mxu0 %vm98_vm2, %v586_v38 }
 0x107   :  { %1769 = vmatprep.mubr.msk.bf16.mxu0 %vm2006_vm1, %v2860_v0 }
 0x109   :  { %v212_v42 = vpop.f32.mrb[24].mxu0 }
 0x10a   :  { %v253_v43 = vmul.f32 %v212_v42, %v212_v42  ;;  %v1687_v44 = vpop.f32.mrb[25].mxu0 }
 0x10b   :  { %v215_v45 = vpop.f32.mrb[26].mxu0 }
 0x10c   :  { %v259_v46 = vadd.f32 %v253_v43, %v247_v3  ;;  %v254_v47 = vmul.f32 %v215_v45, %v215_v45  ;;  %v587_v48 = vpack.c.bf16 %v215_v45, %v212_v42  ;;  %v1688_v49 = vpop.f32.mrb[27].mxu0 }
 0x10e   :  { %1933 = vrsqrt.f32 %v259_v46  ;;  %v260_v50 = vadd.f32 %v254_v47, %v248_v8  ;;  %1770 = vmatmul.mubr.msk.bf16.gmra.mrb[72].mxu0 %vm98_vm2, %v587_v48  ;;  %vm267_vm4 = vcmp.eq.f32.partialorder %v259_v46, inf  ;;  %v270_v6 = vand.u32 2147483648, %v259_v46 }
 0x10f   :  { %1773 = vmatprep.mubr.msk.bf16.mxu0 %vm2006_vm1, %v2860_v0  ;;  %vm269_vm6 = vcmp.eq.f32.partialorder %v259_v46, 0.0 }
 0x110   :  { %1935 = vrsqrt.f32 %v260_v50  ;;  %vm274_vm5 = vcmp.eq.f32.partialorder %v260_v50, inf  ;;  %v277_v14 = vand.u32 2147483648, %v260_v50  ;;  %vm276_vm7 = vcmp.eq.f32.partialorder %v260_v50, 0.0 }
 0x111   :  { %v220_v51 = vpop.f32.mrb[28].mxu0 }
 0x112   :  { %v255_v52 = vmul.f32 %v220_v51, %v220_v51  ;;  %v1691_v53 = vpop.f32.mrb[29].mxu0 }
 0x113   :  { %v223_v54 = vpop.f32.mrb[30].mxu0 }
 0x114   :  { %v261_v55 = vadd.f32 %v255_v52, %v249_v18  ;;  %v256_v56 = vmul.f32 %v223_v54, %v223_v54  ;;  %v588_v57 = vpack.c.bf16 %v223_v54, %v220_v51  ;;  %v1692_v58 = vpop.f32.mrb[31].mxu0 }
 0x116   :  { %1937 = vrsqrt.f32 %v261_v55  ;;  %v262_v59 = vadd.f32 %v256_v56, %v250_v24  ;;  %1774 = vmatmul.mubr.msk.bf16.gmra.mrb[76].mxu0 %vm98_vm2, %v588_v57  ;;  %vm281_vm8 = vcmp.eq.f32.partialorder %v261_v55, inf  ;;  %vm283_vm10 = vcmp.eq.f32.partialorder %v261_v55, 0.0 }
 0x117   :  { %1777 = vmatprep.mubr.msk.bf16.mxu0 %vm2006_vm1, %v2860_v0 }
 0x118   :  { %v1934_v60 = vpop.eup %1933  ;;  %1939 = vrsqrt.f32 %v262_v59  ;;  %vm288_vm9 = vcmp.eq.f32.partialorder %v262_v59, inf  ;;  %v291_v36 = vand.u32 2147483648, %v262_v59  ;;  %vm290_vm11 = vcmp.eq.f32.partialorder %v262_v59, 0.0 }
 0x119   :  { %v228_v61 = vpop.f32.mrb[32].mxu0  ;;  %v266_v62 = vmul.f32 %v1934_v60, %v259_v46 }
 0x11a   :  { %v1936_v63 = vpop.eup %1935  ;;  %v257_v1 = vmul.f32 %v228_v61, %v228_v61  ;;  %v1695_v2 = vpop.f32.mrb[33].mxu0 }
 0x11b   :  { %v231_v3 = vpop.f32.mrb[34].mxu0  ;;  %v268_v4 = vsel %vm267_vm4, %v259_v46, %v266_v62  ;;  %v273_v7 = vmul.f32 %v1936_v63, %v260_v50  ;;  %v1927_v63 = vld [vmem:[%s2850_s5] sm:$0xff]  }
 0x11c   :  { %v263_v8 = vadd.f32 %v257_v1, %v251_v35  ;;  %v258_v10 = vmul.f32 %v231_v3, %v231_v3  ;;  %v589_v11 = vpack.c.bf16 %v231_v3, %v228_v61  ;;  %v1696_v12 = vpop.f32.mrb[35].mxu0  ;;  %v271_v18 = vsel %vm269_vm6, %v270_v6, %v268_v4  ;;  %v1928_v1 = vld [vmem:[%s2850_s5 + $0x8] sm:$0xff]  }
 0x11d   :  { %v275_v15 = vsel %vm274_vm5, %v260_v50, %v273_v7  ;;  %v284_v35 = vand.u32 2147483648, %v261_v55 }
 0x11e   :  { %1941 = vrsqrt.f32 %v263_v8  ;;  %v264_v17 = vadd.f32 %v258_v10, %v252_v40  ;;  %1778 = vmatmul.mubr.msk.bf16.gmra.mrb[80].mxu0 %vm98_vm2, %v589_v11  ;;  %v278_v20 = vsel %vm276_vm7, %v277_v14, %v275_v15  ;;  %vm295_vm12 = vcmp.eq.f32.partialorder %v263_v8, inf }
 0x11f   :  { %v307_v21 = vpack.c.bf16 %v278_v20, %v271_v18  ;;  %1823 = vmatprep.mubr.msk.bf16.mxu0 %vm2006_vm1, %v2860_v0  ;;  %v298_v52 = vand.u32 2147483648, %v263_v8  ;;  %vm297_vm14 = vcmp.eq.f32.partialorder %v263_v8, 0.0 }
 0x120   :  { %v1938_v23 = vpop.eup %1937  ;;  %1943 = vrsqrt.f32 %v264_v17  ;;  %vm302_vm13 = vcmp.eq.f32.partialorder %v264_v17, inf  ;;  %v305_v53 = vand.u32 2147483648, %v264_v17  ;;  %vm304_vm15 = vcmp.eq.f32.partialorder %v264_v17, 0.0 }
 0x121   :  { %1716 = vmatmul.mubr.msk.bf16.vlgmr.msra.gmra.mrb[0].mxu1 %vm98_vm2, %v307_v21  ;;  %v280_v24 = vmul.f32 %v1938_v23, %v261_v55  ;;  %v2290_v26 = vpop.f32.mrb[36].mxu0 }
 0x122   :  { %v1940_v27 = vpop.eup %1939  ;;  %1719 = vmatprep.mubr.msk.bf16.mxu1 %vm2006_vm1, %v2860_v0  ;;  %v1703_v29 = vpop.f32.mrb[37].mxu0  ;;  %1728 = vmatpush3.bf16.msra.mxu1 %v1927_v63 }
 0x123   :  { %v282_v30 = vsel %vm281_vm8, %v261_v55, %v280_v24  ;;  %v287_v32 = vmul.f32 %v1940_v27, %v262_v59  ;;  %v2294_v33 = vpop.f32.mrb[38].mxu0  ;;  %1729 = vmatprep.subr.bf16.mxu1 %v2860_v0 }
 0x124   :  { %v1704_v38 = vpop.f32.mrb[39].mxu0  ;;  %v285_v40 = vsel %vm283_vm10, %v284_v35, %v282_v30 }
 0x125   :  { %v289_v39 = vsel %vm288_vm9, %v262_v59, %v287_v32 }
 0x126   :  { %v292_v42 = vsel %vm290_vm11, %v291_v36, %v289_v39  ;;  %1730 = vmatpush3.bf16.msra.mxu1 %v1928_v1 }
 0x127   :  { %v308_v43 = vpack.c.bf16 %v292_v42, %v285_v40  ;;  %1781 = vmatprep.subr.bf16.mxu1 %v2860_v0 }
 0x128   :  { %v1942_v44 = vpop.eup %1941 }
 0x129   :  { %1720 = vmatmul.mubr.msk.bf16.gmra.mrb[4].mxu1 %vm98_vm2, %v308_v43  ;;  %v294_v45 = vmul.f32 %v1942_v44, %v263_v8  ;;  %v2297_v46 = vpop.f32.mrb[40].mxu0 }
 0x12a   :  { %v1944_v47 = vpop.eup %1943  ;;  %1723 = vmatprep.mubr.msk.bf16.mxu1 %vm2006_vm1, %v2860_v0  ;;  %v1707_v48 = vpop.f32.mrb[41].mxu0 }
 0x12b   :  { %v296_v49 = vsel %vm295_vm12, %v263_v8, %v294_v45  ;;  %v301_v50 = vmul.f32 %v1944_v47, %v264_v17  ;;  %v2301_v51 = vpop.f32.mrb[42].mxu0 }
 0x12c   :  { %v1708_v54 = vpop.f32.mrb[43].mxu0  ;;  %v299_v56 = vsel %vm297_vm14, %v298_v52, %v296_v49 }
 0x12d   :  { %v303_v55 = vsel %vm302_vm13, %v264_v17, %v301_v50 }
 0x12e   :  { %v306_v57 = vsel %vm304_vm15, %v305_v53, %v303_v55 }
 0x12f   :  { %v309_v58 = vpack.c.bf16 %v306_v57, %v299_v56 }
 0x131   :  { %1724 = vmatmul.mubr.msk.bf16.gmra.mrb[8].mxu1 %vm98_vm2, %v309_v58  ;;  %v2304_v59 = vpop.f32.mrb[44].mxu0  ;;  %v743_v58 = vld [vmem:[%s2851_s8] sm:$0xf] }
 0x132   :  { %v1711_v60 = vpop.f32.mrb[45].mxu0  ;;  %1731 = vmatprep.mubr.msk.bf16.mxu1 %vm2006_vm1, %v2860_v0  ;;  %v756_v1 = vsel %vm126_vm0, %v743_v58, 0 }
 0x133   :  { %v2308_v61 = vpop.f32.mrb[46].mxu0 }
 0x134   :  { %v1712_v62 = vpop.f32.mrb[47].mxu0 }
 0x1b1   :  { %v2318_v2 = vpop.f32.mrb[48].mxu0 }
 0x1b2   :  { %v1747_v3 = vpop.f32.mrb[49].mxu0 }
 0x1b3   :  { %v2320_v4 = vpop.f32.mrb[50].mxu0 }
 0x1b4   :  { %v1748_v6 = vpop.f32.mrb[51].mxu0 }
 0x1b9   :  { %v2322_v7 = vpop.f32.mrb[52].mxu0 }
 0x1ba   :  { %v1751_v8 = vpop.f32.mrb[53].mxu0 }
 0x1bb   :  { %v2324_v10 = vpop.f32.mrb[54].mxu0 }
 0x1bc   :  { %v1752_v11 = vpop.f32.mrb[55].mxu0 }
 0x1c1   :  { %v2326_v12 = vpop.f32.mrb[56].mxu0 }
 0x1c2   :  { %v1755_v14 = vpop.f32.mrb[57].mxu0 }
 0x1c3   :  { %v2328_v15 = vpop.f32.mrb[58].mxu0 }
 0x1c4   :  { %v1756_v17 = vpop.f32.mrb[59].mxu0 }
 0x1c9   :  { %v2330_v18 = vpop.f32.mrb[60].mxu0 }
 0x1ca   :  { %v1759_v20 = vpop.f32.mrb[61].mxu0 }
 0x1cb   :  { %v2332_v21 = vpop.f32.mrb[62].mxu0 }
 0x1cc   :  { %v1760_v23 = vpop.f32.mrb[63].mxu0 }
 0x1d1   :  { %v2334_v24 = vpop.f32.mrb[64].mxu0 }
 0x1d2   :  { %v1763_v27 = vpop.f32.mrb[65].mxu0 }
 0x1d3   :  { %v2336_v29 = vpop.f32.mrb[66].mxu0 }
 0x1d4   :  { %v1764_v30 = vpop.f32.mrb[67].mxu0 }
 0x1d9   :  { %v2338_v32 = vpop.f32.mrb[68].mxu0 }
 0x1da   :  { %v1767_v35 = vpop.f32.mrb[69].mxu0 }
 0x1db   :  { %v2340_v36 = vpop.f32.mrb[70].mxu0 }
 0x1dc   :  { %v1768_v38 = vpop.f32.mrb[71].mxu0 }
 0x1e1   :  { %v2342_v39 = vpop.f32.mrb[72].mxu0 }
 0x1e2   :  { %v1771_v40 = vpop.f32.mrb[73].mxu0 }
 0x1e3   :  { %v2344_v42 = vpop.f32.mrb[74].mxu0 }
 0x1e4   :  { %v1772_v43 = vpop.f32.mrb[75].mxu0 }
 0x1e9   :  { %v2346_v44 = vpop.f32.mrb[76].mxu0 }
 0x1ea   :  { %v1775_v45 = vpop.f32.mrb[77].mxu0 }
 0x1eb   :  { %v2348_v47 = vpop.f32.mrb[78].mxu0 }
 0x1ec   :  { %v1776_v48 = vpop.f32.mrb[79].mxu0 }
 0x1f1   :  { %v2350_v49 = vpop.f32.mrb[80].mxu0 }
 0x1f2   :  { %v1779_v50 = vpop.f32.mrb[81].mxu0 }
 0x1f3   :  { %v2352_v52 = vpop.f32.mrb[82].mxu0 }
 0x1f4   :  { %v435_v53 = vpop.f32.mrb[0].mxu1  ;;  %v1780_v54 = vpop.f32.mrb[83].mxu0 }
 0x1f5   :  { %v2355_v55 = vadd.f32 %v435_v53, %v2290_v26  ;;  %v1717_v56 = vpop.f32.mrb[1].mxu1 }
 0x1f6   :  { %v438_v57 = vpop.f32.mrb[2].mxu1 }
 0x1f7   :  { %v2361_v60 = vadd.f32 %v438_v57, %v2294_v33  ;;  %v1718_v62 = vpop.f32.mrb[3].mxu1 }
 0x1f9   :  { %v458_v63 = vpack.c.bf16 %v2361_v60, %v2355_v55 }
 0x1fb   :  { %1732 = vmatmul.mubr.msk.bf16.vlgmr.msra.gmra.mrb[12].mxu1 %vm322_vm3, %v458_v63 }
 0x1fc   :  { %1782 = vmatpush3.bf16.msra.mxu1 %v756_v1  ;;  %v443_v26 = vpop.f32.mrb[4].mxu1  ;;  %1735 = vmatprep.mubr.msk.bf16.mxu1 %vm2006_vm1, %v2860_v0 }
 0x1fd   :  { %v2370_v3 = vadd.f32 %v443_v26, %v2297_v46  ;;  %v1721_v6 = vpop.f32.mrb[5].mxu1  ;;  %1849 = vmatprep.subr.bf16.mxu1 %v2860_v0 }
 0x1fe   :  { %v446_v33 = vpop.f32.mrb[6].mxu1 }
 0x1ff   :  { %v2374_v8 = vadd.f32 %v446_v33, %v2301_v51  ;;  %v1722_v11 = vpop.f32.mrb[7].mxu1 }
 0x201   :  { %v459_v14 = vpack.c.bf16 %v2374_v8, %v2370_v3 }
 0x203   :  { %1736 = vmatmul.mubr.msk.bf16.gmra.mrb[16].mxu1 %vm322_vm3, %v459_v14 }
 0x204   :  { %v451_v17 = vpop.f32.mrb[8].mxu1  ;;  %1739 = vmatprep.mubr.msk.bf16.mxu1 %vm2006_vm1, %v2860_v0 }
 0x205   :  { %v2382_v46 = vadd.f32 %v451_v17, %v2304_v59  ;;  %v1725_v20 = vpop.f32.mrb[9].mxu1 }
 0x206   :  { %v454_v23 = vpop.f32.mrb[10].mxu1 }
 0x207   :  { %v2385_v27 = vadd.f32 %v454_v23, %v2308_v61  ;;  %v1726_v51 = vpop.f32.mrb[11].mxu1 }
 0x209   :  { %v460_v30 = vpack.c.bf16 %v2385_v27, %v2382_v46 }
 0x20b   :  { %1740 = vmatmul.mubr.msk.bf16.gmra.mrb[20].mxu1 %vm322_vm3, %v460_v30 }
 0x20c   :  { %1783 = vmatprep.mubr.msk.bf16.mxu1 %vm2006_vm1, %v2860_v0 }
 0x213   :  { %1784 = vmatmul.mubr.msk.bf16.vlgmr.msra.gmra.mrb[24].mxu1 %vm98_vm2, %v2102_v5  ;;  %v1929_v5 = vld [vmem:[%s2852_s10] sm:$0xff]  }
 0x214   :  { %1787 = vmatprep.mubr.msk.bf16.mxu1 %vm2006_vm1, %v2860_v0  ;;  %1820 = vmatpush3.bf16.msra.mxu0 %v1929_v5 }
 0x215   :  { %1821 = vmatprep.subr.bf16.mxu0 %v2860_v0 }
 0x21b   :  { %1788 = vmatmul.mubr.msk.bf16.gmra.mrb[28].mxu1 %vm98_vm2, %v2121_v9  ;;  %v1930_v9 = vld [vmem:[%s2852_s10 + $0x8] sm:$0xff]  }
 0x21c   :  { %1791 = vmatprep.mubr.msk.bf16.mxu1 %vm2006_vm1, %v2860_v0  ;;  %1822 = vmatpush3.bf16.msra.mxu0 %v1930_v9 }
 0x21d   :  { %1835 = vmatprep.subr.bf16.mxu0 %v2860_v0 }
 0x21f   :  { %1824 = vmatmul.mubr.msk.bf16.vlgmr.msra.gmra.mrb[84].mxu0 %vm322_vm3, %v2222_v34 }
 0x220   :  { %1827 = vmatprep.mubr.msk.bf16.mxu0 %vm2006_vm1, %v2860_v0 }
 0x223   :  { %1792 = vmatmul.mubr.msk.bf16.gmra.mrb[32].mxu1 %vm98_vm2, %v2138_v13  ;;  %v744_v13 = vld [vmem:[%s2853_s9] sm:$0xf] }
 0x224   :  { %1795 = vmatprep.mubr.msk.bf16.mxu1 %vm2006_vm1, %v2860_v0 }
 0x227   :  { %1828 = vmatmul.mubr.msk.bf16.gmra.mrb[88].mxu0 %vm322_vm3, %v2234_v37 }
 0x228   :  { %1831 = vmatprep.mubr.msk.bf16.mxu0 %vm2006_vm1, %v2860_v0 }
 0x22b   :  { %1796 = vmatmul.mubr.msk.bf16.gmra.mrb[36].mxu1 %vm98_vm2, %v2150_v16  ;;  %v1017_v16 = vsel %vm126_vm0, %v744_v13, 0 }
 0x22c   :  { %1799 = vmatprep.mubr.msk.bf16.mxu1 %vm2006_vm1, %v2860_v0  ;;  %1836 = vmatpush3.bf16.msra.mxu0 %v1017_v16 }
 0x22f   :  { %1832 = vmatmul.mubr.msk.bf16.gmra.mrb[92].mxu0 %vm322_vm3, %v2249_v41 }
 0x230   :  { %1837 = vmatprep.mubr.msk.bf16.mxu0 %vm2006_vm1, %v2860_v0 }
 0x233   :  { %1800 = vmatmul.mubr.msk.bf16.gmra.mrb[40].mxu1 %vm98_vm2, %v2162_v19  ;;  %v1931_v19 = vld [vmem:[%s2854_s11] sm:$0xff]  }
 0x234   :  { %1803 = vmatprep.mubr.msk.bf16.mxu1 %vm2006_vm1, %v2860_v0  ;;  %1850 = vmatpush3.bf16.msra.mxu1 %v1931_v19 }
 0x235   :  { %1851 = vmatprep.subr.bf16.mxu1 %v2860_v0 }
 0x23b   :  { %1804 = vmatmul.mubr.msk.bf16.gmra.mrb[44].mxu1 %vm98_vm2, %v2174_v22  ;;  %v1932_v22 = vld [vmem:[%s2854_s11 + $0x8] sm:$0xff]   ;;  %s2007_s11 = smov 32  }
 0x23c   :  { %1807 = vmatprep.mubr.msk.bf16.mxu1 %vm2006_vm1, %v2860_v0  ;;  %1852 = vmatpush3.bf16.msra.mxu1 %v1932_v22 }
 0x23d   :  { %1865 = vmatprep.subr.bf16.mxu1 %v2860_v0 }
 0x243   :  { %1808 = vmatmul.mubr.msk.bf16.gmra.mrb[48].mxu1 %vm98_vm2, %v2186_v25  ;;  %v1532_v25 = vld [vmem:[%s2855_s6] ss:$0 sm:$0xff] }
 0x244   :  { %1811 = vmatprep.mubr.msk.bf16.mxu1 %vm2006_vm1, %v2860_v0 }
 0x24b   :  { %1812 = vmatmul.mubr.msk.bf16.gmra.mrb[52].mxu1 %vm98_vm2, %v2198_v28 }
 0x24c   :  { %1815 = vmatprep.mubr.msk.bf16.mxu1 %vm2006_vm1, %v2860_v0 }
 0x253   :  { %1816 = vmatmul.mubr.msk.bf16.gmra.mrb[56].mxu1 %vm98_vm2, %v2210_v31 }
 0x254   :  { %1853 = vmatprep.mubr.msk.bf16.mxu1 %vm2006_vm1, %v2860_v0 }
 0x2ce   :  { %v522_v28 = vpop.f32.mrb[12].mxu1 }
 0x2cf   :  { %v523_v31 = vadd.f32 %v1532_v25, %v522_v28  ;;  %v1733_v34 = vpop.f32.mrb[13].mxu1 }
 0x2d0   :  { %v525_v37 = vpop.f32.mrb[14].mxu1 }
 0x2d1   :  { %v1538_v41 = vmul.f32 -1.442695, %v523_v31  ;;  %v526_v59 = vadd.f32 %v1532_v25, %v525_v37  ;;  %v1734_v61 = vpop.f32.mrb[15].mxu1 }
 0x2d3   :  { %1945 = vpow2.f32 %v1538_v41  ;;  %v1539_v35 = vmul.f32 -1.442695, %v526_v59 }
 0x2d5   :  { %1947 = vpow2.f32 %v1539_v35 }
 0x2d6   :  { %v530_v38 = vpop.f32.mrb[16].mxu1 }
 0x2d7   :  { %v531_v40 = vadd.f32 %v1532_v25, %v530_v38  ;;  %v1737_v43 = vpop.f32.mrb[17].mxu1 }
 0x2d8   :  { %v533_v45 = vpop.f32.mrb[18].mxu1 }
 0x2d9   :  { %v1540_v48 = vmul.f32 -1.442695, %v531_v40  ;;  %v534_v50 = vadd.f32 %v1532_v25, %v533_v45  ;;  %v1738_v53 = vpop.f32.mrb[19].mxu1 }
 0x2db   :  { %1949 = vpow2.f32 %v1540_v48  ;;  %v1541_v54 = vmul.f32 -1.442695, %v534_v50 }
 0x2dd   :  { %v1946_v56 = vpop.eup %1945  ;;  %1951 = vpow2.f32 %v1541_v54 }
 0x2de   :  { %v563_v57 = vadd.f32 1.0, %v1946_v56  ;;  %v538_v58 = vpop.f32.mrb[20].mxu1 }
 0x2df   :  { %v1948_v62 = vpop.eup %1947  ;;  %v539_v63 = vadd.f32 %v1532_v25, %v538_v58  ;;  %v1741_v1 = vpop.f32.mrb[21].mxu1 }
 0x2e0   :  { %1953 = vrcp.f32 %v563_v57  ;;  %v564_v26 = vadd.f32 1.0, %v1948_v62  ;;  %v541_v6 = vpop.f32.mrb[22].mxu1 }
 0x2e1   :  { %v1542_v33 = vmul.f32 -1.442695, %v539_v63  ;;  %v542_v11 = vadd.f32 %v1532_v25, %v541_v6  ;;  %v1742_v14 = vpop.f32.mrb[23].mxu1 }
 0x2e2   :  { %1955 = vrcp.f32 %v564_v26 }
 0x2e3   :  { %1957 = vpow2.f32 %v1542_v33  ;;  %v1543_v17 = vmul.f32 -1.442695, %v542_v11 }
 0x2e5   :  { %v1950_v20 = vpop.eup %1949  ;;  %1959 = vpow2.f32 %v1543_v17 }
 0x2e6   :  { %v565_v23 = vadd.f32 1.0, %v1950_v20  ;;  %v2463_v51 = vpop.f32.mrb[24].mxu1 }
 0x2e7   :  { %v1952_v30 = vpop.eup %1951  ;;  %v1785_v5 = vpop.f32.mrb[25].mxu1 }
 0x2e8   :  { %1961 = vrcp.f32 %v565_v23  ;;  %v566_v9 = vadd.f32 1.0, %v1952_v30  ;;  %v2465_v13 = vpop.f32.mrb[26].mxu1 }
 0x2e9   :  { %v1786_v19 = vpop.f32.mrb[27].mxu1 }
 0x2ea   :  { %v1954_v22 = vpop.eup %1953  ;;  %1963 = vrcp.f32 %v566_v9 }
 0x2eb   :  { %v2470_v25 = vmul.f32 %v1954_v22, %v2318_v2  ;;  %v2473_v28 = vmul.f32 %v1954_v22, %v2330_v18  ;;  %v2476_v31 = vmul.f32 %v1954_v22, %v2342_v39 }
 0x2ec   :  { %v1956_v34 = vpop.eup %1955 }
 0x2ed   :  { %v1958_v37 = vpop.eup %1957  ;;  %v2479_v41 = vmul.f32 %v1956_v34, %v2320_v4  ;;  %v2482_v59 = vmul.f32 %v1956_v34, %v2332_v21  ;;  %v2485_v61 = vmul.f32 %v1956_v34, %v2344_v42 }
 0x2ee   :  { %v567_v35 = vadd.f32 1.0, %v1958_v37  ;;  %v2487_v2 = vpop.f32.mrb[28].mxu1 }
 0x2ef   :  { %v1960_v38 = vpop.eup %1959  ;;  %v1789_v18 = vpop.f32.mrb[29].mxu1  ;;  %v865_v30 = vmul.f32 %v2487_v2, %v2487_v2 }
 0x2f0   :  { %1965 = vrcp.f32 %v567_v35  ;;  %v568_v40 = vadd.f32 1.0, %v1960_v38  ;;  %v2489_v39 = vpop.f32.mrb[30].mxu1 }
 0x2f1   :  { %v1790_v4 = vpop.f32.mrb[31].mxu1  ;;  %v866_v22 = vmul.f32 %v2489_v39, %v2489_v39 }
 0x2f2   :  { %v1962_v45 = vpop.eup %1961  ;;  %1967 = vrcp.f32 %v568_v40 }
 0x2f3   :  { %v2494_v21 = vmul.f32 %v1962_v45, %v2322_v7  ;;  %v2497_v42 = vmul.f32 %v1962_v45, %v2334_v24  ;;  %v2500_v48 = vmul.f32 %v1962_v45, %v2346_v44 }
 0x2f4   :  { %v1964_v50 = vpop.eup %1963 }
 0x2f5   :  { %v2503_v53 = vmul.f32 %v1964_v50, %v2324_v10  ;;  %v2506_v54 = vmul.f32 %v1964_v50, %v2336_v29  ;;  %v2509_v56 = vmul.f32 %v1964_v50, %v2348_v47 }
 0x2f6   :  { %v2511_v57 = vpop.f32.mrb[32].mxu1 }
 0x2f7   :  { %v1793_v7 = vpop.f32.mrb[33].mxu1  ;;  %v867_v4 = vmul.f32 %v2511_v57, %v2511_v57 }
 0x2f8   :  { %v2513_v58 = vpop.f32.mrb[34].mxu1 }
 0x2f9   :  { %v1794_v44 = vpop.f32.mrb[35].mxu1 }
 0x2fa   :  { %v1966_v62 = vpop.eup %1965  ;;  %v868_v44 = vmul.f32 %v2513_v58, %v2513_v58 }
 0x2fb   :  { %v2518_v63 = vmul.f32 %v1966_v62, %v2326_v12  ;;  %v2521_v10 = vmul.f32 %v1966_v62, %v2338_v32  ;;  %v2524_v29 = vmul.f32 %v1966_v62, %v2350_v49  ;;  %v863_v12 = vmul.f32 %v2463_v51, %v2463_v51 }
 0x2fc   :  { %v1968_v47 = vpop.eup %1967 }
 0x2fd   :  { %v2527_v1 = vmul.f32 %v1968_v47, %v2328_v15  ;;  %v2530_v26 = vmul.f32 %v1968_v47, %v2340_v36  ;;  %v2533_v6 = vmul.f32 %v1968_v47, %v2352_v52  ;;  %v864_v15 = vmul.f32 %v2465_v13, %v2465_v13 }
 0x2fe   :  { %v2535_v33 = vpop.f32.mrb[36].mxu1 }
 0x2ff   :  { %v869_v32 = vmul.f32 %v2535_v33, %v2535_v33  ;;  %v1797_v49 = vpop.f32.mrb[37].mxu1 }
 0x300   :  { %v2541_v11 = vpop.f32.mrb[38].mxu1 }
 0x301   :  { %v875_v14 = vadd.f32 %v869_v32, %v863_v12  ;;  %v870_v36 = vmul.f32 %v2541_v11, %v2541_v11  ;;  %v1798_v17 = vpop.f32.mrb[39].mxu1 }
 0x303   :  { %v876_v20 = vadd.f32 %v870_v36, %v864_v15 }
 0x306   :  { %v2549_v23 = vpop.f32.mrb[40].mxu1 }
 0x307   :  { %v871_v5 = vmul.f32 %v2549_v23, %v2549_v23  ;;  %v1801_v9 = vpop.f32.mrb[41].mxu1 }
 0x308   :  { %v2555_v19 = vpop.f32.mrb[42].mxu1 }
 0x309   :  { %v877_v34 = vadd.f32 %v871_v5, %v865_v30  ;;  %v872_v37 = vmul.f32 %v2555_v19, %v2555_v19  ;;  %v1802_v38 = vpop.f32.mrb[43].mxu1 }
 0x30b   :  { %v878_v18 = vadd.f32 %v872_v37, %v866_v22 }
 0x30e   :  { %v2563_v40 = vpop.f32.mrb[44].mxu1 }
 0x30f   :  { %v873_v45 = vmul.f32 %v2563_v40, %v2563_v40  ;;  %v1805_v50 = vpop.f32.mrb[45].mxu1 }
 0x310   :  { %v2569_v7 = vpop.f32.mrb[46].mxu1 }
 0x311   :  { %v879_v62 = vadd.f32 %v873_v45, %v867_v4  ;;  %v874_v47 = vmul.f32 %v2569_v7, %v2569_v7  ;;  %v1806_v32 = vpop.f32.mrb[47].mxu1 }
 0x313   :  { %v880_v49 = vadd.f32 %v874_v47, %v868_v44 }
 0x316   :  { %v2577_v15 = vpop.f32.mrb[48].mxu1 }
 0x317   :  { %v881_v36 = vmul.f32 %v2577_v15, %v2577_v15  ;;  %v1809_v17 = vpop.f32.mrb[49].mxu1 }
 0x318   :  { %v2581_v30 = vpop.f32.mrb[50].mxu1 }
 0x319   :  { %v887_v5 = vadd.f32 %v881_v36, %v875_v14  ;;  %v882_v9 = vmul.f32 %v2581_v30, %v2581_v30  ;;  %v1810_v37 = vpop.f32.mrb[51].mxu1 }
 0x31b   :  { %1969 = vrsqrt.f32 %v887_v5  ;;  %v888_v38 = vadd.f32 %v882_v9, %v876_v20  ;;  %vm895_vm4 = vcmp.eq.f32.partialorder %v887_v5, inf  ;;  %vm897_vm6 = vcmp.eq.f32.partialorder %v887_v5, 0.0 }
 0x31d   :  { %1971 = vrsqrt.f32 %v888_v38  ;;  %vm902_vm5 = vcmp.eq.f32.partialorder %v888_v38, inf  ;;  %vm904_vm7 = vcmp.eq.f32.partialorder %v888_v38, 0.0 }
 0x31e   :  { %v2587_v4 = vpop.f32.mrb[52].mxu1 }
 0x31f   :  { %v883_v45 = vmul.f32 %v2587_v4, %v2587_v4  ;;  %v1813_v50 = vpop.f32.mrb[53].mxu1 }
 0x320   :  { %v2591_v44 = vpop.f32.mrb[54].mxu1 }
 0x321   :  { %v889_v47 = vadd.f32 %v883_v45, %v877_v34  ;;  %v884_v14 = vmul.f32 %v2591_v44, %v2591_v44  ;;  %v1814_v36 = vpop.f32.mrb[55].mxu1  ;;  %v898_v45 = vand.u32 2147483648, %v887_v5 }
 0x322   :  { %v905_v36 = vand.u32 2147483648, %v888_v38 }
 0x323   :  { %1973 = vrsqrt.f32 %v889_v47  ;;  %v890_v17 = vadd.f32 %v884_v14, %v878_v18  ;;  %vm909_vm8 = vcmp.eq.f32.partialorder %v889_v47, inf  ;;  %vm911_vm10 = vcmp.eq.f32.partialorder %v889_v47, 0.0 }
 0x325   :  { %v1970_v20 = vpop.eup %1969  ;;  %1975 = vrsqrt.f32 %v890_v17  ;;  %vm916_vm9 = vcmp.eq.f32.partialorder %v890_v17, inf  ;;  %vm918_vm11 = vcmp.eq.f32.partialorder %v890_v17, 0.0 }
 0x326   :  { %v894_v9 = vmul.f32 %v1970_v20, %v887_v5  ;;  %v2597_v37 = vpop.f32.mrb[56].mxu1 }
 0x327   :  { %v1972_v22 = vpop.eup %1971  ;;  %v885_v50 = vmul.f32 %v2597_v37, %v2597_v37  ;;  %v1817_v34 = vpop.f32.mrb[57].mxu1 }
 0x328   :  { %v901_v12 = vmul.f32 %v1972_v22, %v888_v38  ;;  %v2601_v35 = vpop.f32.mrb[58].mxu1  ;;  %v896_v32 = vsel %vm895_vm4, %v887_v5, %v894_v9  ;;  %v912_v5 = vand.u32 2147483648, %v889_v47 }
 0x329   :  { %v891_v52 = vadd.f32 %v885_v50, %v879_v62  ;;  %v886_v18 = vmul.f32 %v2601_v35, %v2601_v35  ;;  %v1818_v20 = vpop.f32.mrb[59].mxu1  ;;  %v899_v43 = vsel %vm897_vm6, %v898_v45, %v896_v32  ;;  %v2862_v50 = vmov 0.0  }
 0x32a   :  { %v903_v24 = vsel %vm902_vm5, %v888_v38, %v901_v12  ;;  %v919_v12 = vand.u32 2147483648, %v890_v17 }
 0x32b   :  { %1977 = vrsqrt.f32 %v891_v52  ;;  %v892_v34 = vadd.f32 %v886_v18, %v880_v49  ;;  %v906_v22 = vsel %vm904_vm7, %v905_v36, %v903_v24  ;;  %vm923_vm12 = vcmp.eq.f32.partialorder %v891_v52, inf }
 0x32c   :  { %v935_v16 = vpack.c.bf16 %v906_v22, %v899_v43  ;;  %v926_v18 = vand.u32 2147483648, %v891_v52  ;;  %vm925_vm14 = vcmp.eq.f32.partialorder %v891_v52, 0.0 }
 0x32d   :  { %v1974_v0 = vpop.eup %1973  ;;  %1979 = vrsqrt.f32 %v892_v34  ;;  %vm930_vm13 = vcmp.eq.f32.partialorder %v892_v34, inf  ;;  %v933_v22 = vand.u32 2147483648, %v892_v34  ;;  %vm932_vm15 = vcmp.eq.f32.partialorder %v892_v34, 0.0 }
 0x32e   :  { %1838 = vmatmul.mubr.msk.bf16.vlgmr.msra.gmra.mrb[84].mxu0 %vm98_vm2, %v935_v16  ;;  %v908_v62 = vmul.f32 %v1974_v0, %v889_v47 }
 0x32f   :  { %v1976_v9 = vpop.eup %1975  ;;  %1841 = vmatprep.mubr.msk.bf16.mxu0 %vm2006_vm1, %v2862_v50 }
 0x330   :  { %v910_v14 = vsel %vm909_vm8, %v889_v47, %v908_v62  ;;  %v915_v20 = vmul.f32 %v1976_v9, %v890_v17 }
 0x331   :  { %v913_v24 = vsel %vm911_vm10, %v912_v5, %v910_v14 }
 0x332   :  { %v917_v49 = vsel %vm916_vm9, %v890_v17, %v915_v20  ;;  %v754_v20 = vld [vmem:[%s2856_s13] sm:$0xf] }
 0x333   :  { %v920_v43 = vsel %vm918_vm11, %v919_v12, %v917_v49 }
 0x334   :  { %v936_v38 = vpack.c.bf16 %v920_v43, %v913_v24 }
 0x335   :  { %v1978_v32 = vpop.eup %1977 }
 0x336   :  { %1842 = vmatmul.mubr.msk.bf16.gmra.mrb[88].mxu0 %vm98_vm2, %v936_v38  ;;  %v922_v0 = vmul.f32 %v1978_v32, %v891_v52 }
 0x337   :  { %v1980_v16 = vpop.eup %1979  ;;  %1845 = vmatprep.mubr.msk.bf16.mxu0 %vm2006_vm1, %v2862_v50 }
 0x338   :  { %v924_v45 = vsel %vm923_vm12, %v891_v52, %v922_v0  ;;  %v929_v36 = vmul.f32 %v1980_v16, %v892_v34  ;;  %v1236_v52 = vsel %vm126_vm0, %v754_v20, 0  ;;  %vm1481_vm0 = vcmask 523264  }
 0x339   :  { %v927_v17 = vsel %vm925_vm14, %v926_v18, %v924_v45 }
 0x33a   :  { %v931_v47 = vsel %vm930_vm13, %v892_v34, %v929_v36 }
 0x33b   :  { %v934_v14 = vsel %vm932_vm15, %v933_v22, %v931_v47  ;;  %v2863_v47 = vpack.c.bf16 %v2465_v13, %v2463_v51  ;;  %v2866_v51 = vpack.c.bf16 %v2541_v11, %v2535_v33  ;;  %v2867_v13 = vpack.c.bf16 %v2555_v19, %v2549_v23 }
 0x33c   :  { %v937_v62 = vpack.c.bf16 %v934_v14, %v927_v17  ;;  %v2864_v17 = vpack.c.bf16 %v2489_v39, %v2487_v2  ;;  %v2865_v14 = vpack.c.bf16 %v2513_v58, %v2511_v57  ;;  %v2868_v2 = vpack.c.bf16 %v2569_v7, %v2563_v40 }
 0x33d   :  { %v2869_v39 = vpack.c.bf16 %v2581_v30, %v2577_v15  ;;  %v2870_v57 = vpack.c.bf16 %v2591_v44, %v2587_v4  ;;  %v2871_v58 = vpack.c.bf16 %v2601_v35, %v2597_v37 }
 0x33e   :  { %1846 = vmatmul.mubr.msk.bf16.gmra.mrb[92].mxu0 %vm98_vm2, %v937_v62 }
 0x401   :  { %v1053_v9 = vpop.f32.mrb[84].mxu0 }
 0x402   :  { %1367 = vrot.lane.b32.xlu0 %v1053_v9, %s2007_s11  ;;  %v1839_v5 = vpop.f32.mrb[85].mxu0 }
 0x403   :  { %v1056_v12 = vpop.f32.mrb[86].mxu0 }
 0x404   :  { %v1076_v49 = vpack.c.bf16 %v1056_v12, %v1053_v9  ;;  %v1840_v24 = vpop.f32.mrb[87].mxu0 }
 0x406   :  { %1369 = vrot.lane.b32.xlu0 %v1056_v12, %s2007_s11  ;;  %1854 = vmatmul.mubr.msk.bf16.vlgmr.msra.gmra.mrb[60].mxu1 %vm322_vm3, %v1076_v49 }
 0x407   :  { %1866 = vmatpush3.bf16.msra.mxu1 %v1236_v52  ;;  %1857 = vmatprep.mubr.msk.bf16.mxu1 %vm2006_vm1, %v2862_v50 }
 0x409   :  { %v1061_v34 = vpop.f32.mrb[88].mxu0 }
 0x40a   :  { %1371 = vrot.lane.b32.xlu1 %v1061_v34, %s2007_s11  ;;  %v1843_v43 = vpop.f32.mrb[89].mxu0 }
 0x40b   :  { %v1064_v38 = vpop.f32.mrb[90].mxu0 }
 0x40c   :  { %v1077_v32 = vpack.c.bf16 %v1064_v38, %v1061_v34  ;;  %v1844_v0 = vpop.f32.mrb[91].mxu0 }
 0x40e   :  { %1373 = vrot.lane.b32.xlu1 %v1064_v38, %s2007_s11  ;;  %1858 = vmatmul.mubr.msk.bf16.gmra.mrb[64].mxu1 %vm322_vm3, %v1077_v32 }
 0x40f   :  { %1861 = vmatprep.mubr.msk.bf16.mxu1 %vm2006_vm1, %v2862_v50 }
 0x411   :  { %v1069_v16 = vpop.f32.mrb[92].mxu0 }
 0x412   :  { %1375 = vrot.lane.b32.xlu0 %v1069_v16, %s2007_s11  ;;  %v1847_v45 = vpop.f32.mrb[93].mxu0 }
 0x413   :  { %v1072_v36 = vpop.f32.mrb[94].mxu0 }
 0x414   :  { %v1078_v18 = vpack.c.bf16 %v1072_v36, %v1069_v16  ;;  %1377 = vrot.lane.b32.xlu1 %v1072_v36, %s2007_s11  ;;  %v1848_v22 = vpop.f32.mrb[95].mxu0 }
 0x416   :  { %1862 = vmatmul.mubr.msk.bf16.gmra.mrb[68].mxu1 %vm322_vm3, %v1078_v18 }
 0x417   :  { %1867 = vmatprep.mubr.msk.bf16.mxu1 %vm2006_vm1, %v2862_v50 }
 0x41e   :  { %1868 = vmatmul.mubr.msk.bf16.vlgmr.msra.gmra.mrb[72].mxu1 %vm98_vm2, %v2863_v47 }
 0x41f   :  { %1871 = vmatprep.mubr.msk.bf16.mxu1 %vm2006_vm1, %v2862_v50 }
 0x426   :  { %1872 = vmatmul.mubr.msk.bf16.gmra.mrb[76].mxu1 %vm98_vm2, %v2864_v17 }
 0x427   :  { %1875 = vmatprep.mubr.msk.bf16.mxu1 %vm2006_vm1, %v2862_v50 }
 0x42e   :  { %1876 = vmatmul.mubr.msk.bf16.gmra.mrb[80].mxu1 %vm98_vm2, %v2865_v14 }
 0x42f   :  { %1879 = vmatprep.mubr.msk.bf16.mxu1 %vm2006_vm1, %v2862_v50 }
 0x436   :  { %1880 = vmatmul.mubr.msk.bf16.gmra.mrb[84].mxu1 %vm98_vm2, %v2866_v51 }
 0x437   :  { %1883 = vmatprep.mubr.msk.bf16.mxu1 %vm2006_vm1, %v2862_v50 }
 0x43e   :  { %1884 = vmatmul.mubr.msk.bf16.gmra.mrb[88].mxu1 %vm98_vm2, %v2867_v13 }
 0x43f   :  { %1887 = vmatprep.mubr.msk.bf16.mxu1 %vm2006_vm1, %v2862_v50 }
 0x446   :  { %1888 = vmatmul.mubr.msk.bf16.gmra.mrb[92].mxu1 %vm98_vm2, %v2868_v2 }
 0x447   :  { %1891 = vmatprep.mubr.msk.bf16.mxu1 %vm2006_vm1, %v2862_v50 }
 0x44e   :  { %1892 = vmatmul.mubr.msk.bf16.gmra.mrb[96].mxu1 %vm98_vm2, %v2869_v39 }
 0x44f   :  { %1895 = vmatprep.mubr.msk.bf16.mxu1 %vm2006_vm1, %v2862_v50 }
 0x456   :  { %1896 = vmatmul.mubr.msk.bf16.gmra.mrb[100].mxu1 %vm98_vm2, %v2870_v57 }
 0x457   :  { %1899 = vmatprep.mubr.msk.bf16.mxu1 %vm2006_vm1, %v2862_v50  ;;  %vm1488_vm1 = vcmask 130048  }
 0x45e   :  { %1900 = vmatmul.mubr.msk.bf16.gmra.mrb[104].mxu1 %vm98_vm2, %v2871_v58 }
 0x474   :  { %v1368_v33 = vpop.permute.xlu0 %1367 }
 0x475   :  { %v1385_v11 = vsel %vm322_vm3, %v2355_v55, %v1368_v33 }
 0x476   :  { %1482 = vst.msk [vmem:[%s2857_s14] sm:$0xff] %vm1481_vm0, %v1385_v11 }
 0x478   :  { %v1370_v23 = vpop.permute.xlu0 %1369 }
 0x479   :  { %v1386_v19 = vsel %vm322_vm3, %v2361_v60, %v1370_v23 }
 0x47a   :  { %1483 = vst.msk [vmem:[%s2857_s14 + $0x8] sm:$0xff] %vm1481_vm0, %v1386_v19 }
 0x47c   :  { %v1372_v35 = vpop.permute.xlu1 %1371 }
 0x47d   :  { %v1387_v40 = vsel %vm322_vm3, %v2370_v3, %v1372_v35 }
 0x47e   :  { %1484 = vst.msk [vmem:[%s2857_s14 + $0x10] sm:$0xff] %vm1481_vm0, %v1387_v40 }
 0x480   :  { %v1374_v55 = vpop.permute.xlu1 %1373 }
 0x481   :  { %v1388_v7 = vsel %vm322_vm3, %v2374_v8, %v1374_v55  ;;  %v1570_v8 = vld [vmem:[%s2858_s12] ss:$0 sm:$0xff]  ;;  %s2008_s12 = smov 8  }
 0x482   :  { %1485 = vst.msk [vmem:[%s2857_s14 + $0x18] sm:$0xff] %vm1481_vm0, %v1388_v7 }
 0x484   :  { %v1376_v60 = vpop.permute.xlu0 %1375 }
 0x485   :  { %v1389_v15 = vsel %vm322_vm3, %v2382_v46, %v1376_v60 }
 0x486   :  { %1486 = vst.msk [vmem:[%s2857_s14 + $0x20] sm:$0xff] %vm1481_vm0, %v1389_v15  ;;  %v1378_v3 = vpop.permute.xlu1 %1377 }
 0x487   :  { %v1390_v30 = vsel %vm322_vm3, %v2385_v27, %v1378_v3 }
 0x488   :  { %1487 = vst.msk [vmem:[%s2857_s14 + $0x28] sm:$0xff] %vm1481_vm0, %v1390_v30 }
 0x4d9   :  { %v1140_v4 = vpop.f32.mrb[60].mxu1 }
 0x4da   :  { %v1141_v46 = vadd.f32 %v1570_v8, %v1140_v4  ;;  %v1855_v44 = vpop.f32.mrb[61].mxu1 }
 0x4db   :  { %v1143_v37 = vpop.f32.mrb[62].mxu1 }
 0x4dc   :  { %v1576_v50 = vmul.f32 -1.442695, %v1141_v46  ;;  %v1144_v62 = vadd.f32 %v1570_v8, %v1143_v37  ;;  %v1856_v9 = vpop.f32.mrb[63].mxu1 }
 0x4de   :  { %1981 = vpow2.f32 %v1576_v50  ;;  %v1577_v20 = vmul.f32 -1.442695, %v1144_v62 }
 0x4e0   :  { %1983 = vpow2.f32 %v1577_v20 }
 0x4e1   :  { %v1148_v27 = vpop.f32.mrb[64].mxu1 }
 0x4e2   :  { %v1149_v5 = vadd.f32 %v1570_v8, %v1148_v27  ;;  %v1859_v12 = vpop.f32.mrb[65].mxu1 }
 0x4e3   :  { %v1151_v49 = vpop.f32.mrb[66].mxu1 }
 0x4e4   :  { %v1578_v24 = vmul.f32 -1.442695, %v1149_v5  ;;  %v1152_v52 = vadd.f32 %v1570_v8, %v1151_v49  ;;  %v1860_v34 = vpop.f32.mrb[67].mxu1 }
 0x4e6   :  { %1985 = vpow2.f32 %v1578_v24  ;;  %v1579_v43 = vmul.f32 -1.442695, %v1152_v52 }
 0x4e8   :  { %v1982_v38 = vpop.eup %1981  ;;  %1987 = vpow2.f32 %v1579_v43 }
 0x4e9   :  { %v1181_v32 = vadd.f32 1.0, %v1982_v38  ;;  %v1156_v0 = vpop.f32.mrb[68].mxu1 }
 0x4ea   :  { %v1984_v16 = vpop.eup %1983  ;;  %v1157_v45 = vadd.f32 %v1570_v8, %v1156_v0  ;;  %v1863_v36 = vpop.f32.mrb[69].mxu1 }
 0x4eb   :  { %1989 = vrcp.f32 %v1181_v32  ;;  %v1182_v18 = vadd.f32 1.0, %v1984_v16  ;;  %v1159_v22 = vpop.f32.mrb[70].mxu1 }
 0x4ec   :  { %v1580_v47 = vmul.f32 -1.442695, %v1157_v45  ;;  %v1160_v17 = vadd.f32 %v1570_v8, %v1159_v22  ;;  %v1864_v14 = vpop.f32.mrb[71].mxu1 }
 0x4ed   :  { %1991 = vrcp.f32 %v1182_v18 }
 0x4ee   :  { %1993 = vpow2.f32 %v1580_v47  ;;  %v1581_v51 = vmul.f32 -1.442695, %v1160_v17 }
 0x4f0   :  { %v1986_v13 = vpop.eup %1985  ;;  %1995 = vpow2.f32 %v1581_v51 }
 0x4f1   :  { %v1183_v2 = vadd.f32 1.0, %v1986_v13  ;;  %v1272_v39 = vpop.f32.mrb[72].mxu1 }
 0x4f2   :  { %v1988_v57 = vpop.eup %1987  ;;  %v1869_v58 = vpop.f32.mrb[73].mxu1 }
 0x4f3   :  { %1997 = vrcp.f32 %v1183_v2  ;;  %v1184_v33 = vadd.f32 1.0, %v1988_v57  ;;  %v1275_v11 = vpop.f32.mrb[74].mxu1 }
 0x4f4   :  { %v1870_v23 = vpop.f32.mrb[75].mxu1 }
 0x4f5   :  { %v1990_v19 = vpop.eup %1989  ;;  %1999 = vrcp.f32 %v1184_v33 }
 0x4f6   :  { %v1343_v35 = vmul.f32 %v1990_v19, %v1272_v39 }
 0x4f7   :  { %v1992_v40 = vpop.eup %1991 }
 0x4f8   :  { %v1994_v55 = vpop.eup %1993  ;;  %v1344_v7 = vmul.f32 %v1992_v40, %v1275_v11  ;;  %1409 = vrot.lane.b32.xlu0 %v1343_v35, %s2008_s12 }
 0x4f9   :  { %v1185_v60 = vadd.f32 1.0, %v1994_v55  ;;  %v1280_v15 = vpop.f32.mrb[76].mxu1 }
 0x4fa   :  { %v1996_v3 = vpop.eup %1995  ;;  %1411 = vrot.lane.b32.xlu1 %v1344_v7, %s2008_s12  ;;  %v1873_v30 = vpop.f32.mrb[77].mxu1 }
 0x4fb   :  { %2001 = vrcp.f32 %v1185_v60  ;;  %v1186_v8 = vadd.f32 1.0, %v1996_v3  ;;  %v1283_v4 = vpop.f32.mrb[78].mxu1 }
 0x4fc   :  { %v1874_v46 = vpop.f32.mrb[79].mxu1 }
 0x4fd   :  { %v1998_v44 = vpop.eup %1997  ;;  %2003 = vrcp.f32 %v1186_v8 }
 0x4fe   :  { %v1345_v37 = vmul.f32 %v1998_v44, %v1280_v15 }
 0x4ff   :  { %v2000_v50 = vpop.eup %1999 }
 0x500   :  { %v1346_v62 = vmul.f32 %v2000_v50, %v1283_v4  ;;  %1413 = vrot.lane.b32.xlu0 %v1345_v37, %s2008_s12 }
 0x501   :  { %v1288_v9 = vpop.f32.mrb[80].mxu1 }
 0x502   :  { %1415 = vrot.lane.b32.xlu1 %v1346_v62, %s2008_s12  ;;  %v1877_v20 = vpop.f32.mrb[81].mxu1 }
 0x503   :  { %v1291_v27 = vpop.f32.mrb[82].mxu1 }
 0x504   :  { %v1878_v5 = vpop.f32.mrb[83].mxu1 }
 0x505   :  { %v2002_v12 = vpop.eup %2001 }
 0x506   :  { %v1347_v49 = vmul.f32 %v2002_v12, %v1288_v9 }
 0x507   :  { %v2004_v24 = vpop.eup %2003 }
 0x508   :  { %v1348_v52 = vmul.f32 %v2004_v24, %v1291_v27  ;;  %1417 = vrot.lane.b32.xlu0 %v1347_v49, %s2008_s12 }
 0x509   :  { %v1296_v34 = vpop.f32.mrb[84].mxu1 }
 0x50a   :  { %v1349_v43 = vmul.f32 %v1990_v19, %v1296_v34  ;;  %1419 = vrot.lane.b32.xlu1 %v1348_v52, %s2008_s12  ;;  %v1881_v38 = vpop.f32.mrb[85].mxu1 }
 0x50b   :  { %v1299_v32 = vpop.f32.mrb[86].mxu1 }
 0x50c   :  { %v1350_v0 = vmul.f32 %v1992_v40, %v1299_v32  ;;  %1421 = vrot.lane.b32.xlu0 %v1349_v43, %s2008_s12  ;;  %v1882_v16 = vpop.f32.mrb[87].mxu1 }
 0x50e   :  { %1423 = vrot.lane.b32.xlu1 %v1350_v0, %s2008_s12 }
 0x511   :  { %v1304_v45 = vpop.f32.mrb[88].mxu1 }
 0x512   :  { %v1351_v36 = vmul.f32 %v1998_v44, %v1304_v45  ;;  %v1885_v18 = vpop.f32.mrb[89].mxu1 }
 0x513   :  { %v1307_v22 = vpop.f32.mrb[90].mxu1 }
 0x514   :  { %v1352_v47 = vmul.f32 %v2000_v50, %v1307_v22  ;;  %1425 = vrot.lane.b32.xlu0 %v1351_v36, %s2008_s12  ;;  %v1886_v17 = vpop.f32.mrb[91].mxu1 }
 0x516   :  { %1427 = vrot.lane.b32.xlu1 %v1352_v47, %s2008_s12 }
 0x519   :  { %v1312_v14 = vpop.f32.mrb[92].mxu1 }
 0x51a   :  { %v1353_v51 = vmul.f32 %v2002_v12, %v1312_v14  ;;  %v1889_v13 = vpop.f32.mrb[93].mxu1 }
 0x51b   :  { %v1315_v2 = vpop.f32.mrb[94].mxu1 }
 0x51c   :  { %v1354_v39 = vmul.f32 %v2004_v24, %v1315_v2  ;;  %1429 = vrot.lane.b32.xlu0 %v1353_v51, %s2008_s12  ;;  %v1890_v57 = vpop.f32.mrb[95].mxu1 }
 0x51e   :  { %1431 = vrot.lane.b32.xlu1 %v1354_v39, %s2008_s12 }
 0x521   :  { %v1320_v58 = vpop.f32.mrb[96].mxu1 }
 0x522   :  { %v1355_v33 = vmul.f32 %v1990_v19, %v1320_v58  ;;  %v1893_v11 = vpop.f32.mrb[97].mxu1 }
 0x523   :  { %v1323_v23 = vpop.f32.mrb[98].mxu1 }
 0x524   :  { %v1356_v35 = vmul.f32 %v1992_v40, %v1323_v23  ;;  %1433 = vrot.lane.b32.xlu0 %v1355_v33, %s2008_s12  ;;  %v1894_v55 = vpop.f32.mrb[99].mxu1 }
 0x526   :  { %1435 = vrot.lane.b32.xlu1 %v1356_v35, %s2008_s12 }
 0x529   :  { %v1328_v7 = vpop.f32.mrb[100].mxu1 }
 0x52a   :  { %v1357_v60 = vmul.f32 %v1998_v44, %v1328_v7  ;;  %v1897_v15 = vpop.f32.mrb[101].mxu1 }
 0x52b   :  { %v1331_v3 = vpop.f32.mrb[102].mxu1 }
 0x52c   :  { %v1358_v30 = vmul.f32 %v2000_v50, %v1331_v3  ;;  %1437 = vrot.lane.b32.xlu0 %v1357_v60, %s2008_s12  ;;  %v1898_v8 = vpop.f32.mrb[103].mxu1 }
 0x52e   :  { %1439 = vrot.lane.b32.xlu1 %v1358_v30, %s2008_s12 }
 0x531   :  { %v1336_v4 = vpop.f32.mrb[104].mxu1 }
 0x532   :  { %v1359_v19 = vmul.f32 %v2002_v12, %v1336_v4  ;;  %v1901_v46 = vpop.f32.mrb[105].mxu1 }
 0x533   :  { %v1339_v37 = vpop.f32.mrb[106].mxu1 }
 0x534   :  { %v1360_v40 = vmul.f32 %v2004_v24, %v1339_v37  ;;  %1441 = vrot.lane.b32.xlu0 %v1359_v19, %s2008_s12  ;;  %v1902_v62 = vpop.f32.mrb[107].mxu1 }
 0x536   :  { %1443 = vrot.lane.b32.xlu1 %v1360_v40, %s2008_s12 }
 0x56a   :  { %v1410_v44 = vpop.permute.xlu0 %1409 }
 0x56b   :  { %v1463_v50 = vsel %vm98_vm2, %v2470_v25, %v1410_v44 }
 0x56c   :  { %1489 = vst.msk [vmem:[%s2859_s15] sm:$0xff] %vm1488_vm1, %v1463_v50  ;;  %v1412_v9 = vpop.permute.xlu1 %1411 }
 0x56d   :  { %v1464_v20 = vsel %vm98_vm2, %v2479_v41, %v1412_v9 }
 0x56e   :  { %1490 = vst.msk [vmem:[%s2859_s15 + $0x8] sm:$0xff] %vm1488_vm1, %v1464_v20 }
 0x572   :  { %v1414_v27 = vpop.permute.xlu0 %1413 }
 0x573   :  { %v1465_v5 = vsel %vm98_vm2, %v2494_v21, %v1414_v27 }
 0x574   :  { %1491 = vst.msk [vmem:[%s2859_s15 + $0x10] sm:$0xff] %vm1488_vm1, %v1465_v5  ;;  %v1416_v25 = vpop.permute.xlu1 %1415 }
 0x575   :  { %v1466_v12 = vsel %vm98_vm2, %v2503_v53, %v1416_v25 }
 0x576   :  { %1492 = vst.msk [vmem:[%s2859_s15 + $0x18] sm:$0xff] %vm1488_vm1, %v1466_v12 }
 0x57a   :  { %v1418_v41 = vpop.permute.xlu0 %1417 }
 0x57b   :  { %v1467_v49 = vsel %vm98_vm2, %v2518_v63, %v1418_v41 }
 0x57c   :  { %1493 = vst.msk [vmem:[%s2859_s15 + $0x20] sm:$0xff] %vm1488_vm1, %v1467_v49  ;;  %v1420_v21 = vpop.permute.xlu1 %1419 }
 0x57d   :  { %v1468_v24 = vsel %vm98_vm2, %v2527_v1, %v1420_v21 }
 0x57e   :  { %1494 = vst.msk [vmem:[%s2859_s15 + $0x28] sm:$0xff] %vm1488_vm1, %v1468_v24  ;;  %v1422_v53 = vpop.permute.xlu0 %1421 }
 0x57f   :  { %v1469_v52 = vsel %vm98_vm2, %v2473_v28, %v1422_v53 }
 0x580   :  { %1495 = vst.msk [vmem:[%s2859_s15 + $0x30] sm:$0xff] %vm1488_vm1, %v1469_v52  ;;  %v1424_v63 = vpop.permute.xlu1 %1423 }
 0x581   :  { %v1470_v34 = vsel %vm98_vm2, %v2482_v59, %v1424_v63 }
 0x582   :  { %1496 = vst.msk [vmem:[%s2859_s15 + $0x38] sm:$0xff] %vm1488_vm1, %v1470_v34 }
 0x586   :  { %v1426_v1 = vpop.permute.xlu0 %1425 }
 0x587   :  { %v1471_v43 = vsel %vm98_vm2, %v2497_v42, %v1426_v1 }
 0x588   :  { %1497 = vst.msk [vmem:[%s2859_s15 + $0x40] sm:$0xff] %vm1488_vm1, %v1471_v43  ;;  %v1428_v28 = vpop.permute.xlu1 %1427 }
 0x589   :  { %v1472_v38 = vsel %vm98_vm2, %v2506_v54, %v1428_v28 }
 0x58a   :  { %1498 = vst.msk [vmem:[%s2859_s15 + $0x48] sm:$0xff] %vm1488_vm1, %v1472_v38 }
 0x58e   :  { %v1430_v59 = vpop.permute.xlu0 %1429 }
 0x58f   :  { %v1473_v32 = vsel %vm98_vm2, %v2521_v10, %v1430_v59 }
 0x590   :  { %1499 = vst.msk [vmem:[%s2859_s15 + $0x50] sm:$0xff] %vm1488_vm1, %v1473_v32  ;;  %v1432_v42 = vpop.permute.xlu1 %1431 }
 0x591   :  { %v1474_v0 = vsel %vm98_vm2, %v2530_v26, %v1432_v42 }
 0x592   :  { %1500 = vst.msk [vmem:[%s2859_s15 + $0x58] sm:$0xff] %vm1488_vm1, %v1474_v0 }
 0x596   :  { %v1434_v54 = vpop.permute.xlu0 %1433 }
 0x597   :  { %v1475_v16 = vsel %vm98_vm2, %v2476_v31, %v1434_v54 }
 0x598   :  { %1501 = vst.msk [vmem:[%s2859_s15 + $0x60] sm:$0xff] %vm1488_vm1, %v1475_v16  ;;  %v1436_v10 = vpop.permute.xlu1 %1435 }
 0x599   :  { %v1476_v45 = vsel %vm98_vm2, %v2485_v61, %v1436_v10 }
 0x59a   :  { %1502 = vst.msk [vmem:[%s2859_s15 + $0x68] sm:$0xff] %vm1488_vm1, %v1476_v45 }
 0x59e   :  { %v1438_v26 = vpop.permute.xlu0 %1437 }
 0x59f   :  { %v1477_v36 = vsel %vm98_vm2, %v2500_v48, %v1438_v26 }
 0x5a0   :  { %1503 = vst.msk [vmem:[%s2859_s15 + $0x70] sm:$0xff] %vm1488_vm1, %v1477_v36  ;;  %v1440_v31 = vpop.permute.xlu1 %1439 }
 0x5a1   :  { %v1478_v18 = vsel %vm98_vm2, %v2509_v56, %v1440_v31 }
 0x5a2   :  { %1504 = vst.msk [vmem:[%s2859_s15 + $0x78] sm:$0xff] %vm1488_vm1, %v1478_v18 }
 0x5a6   :  { %v1442_v61 = vpop.permute.xlu0 %1441 }
 0x5a7   :  { %v1479_v22 = vsel %vm98_vm2, %v2524_v29, %v1442_v61 }
 0x5a8   :  { %1505 = vst.msk [vmem:[%s2859_s15 + $0x80] sm:$0xff] %vm1488_vm1, %v1479_v22  ;;  %v1444_v48 = vpop.permute.xlu1 %1443 }
 0x5a9   :  { %v1480_v47 = vsel %vm98_vm2, %v2533_v6, %v1444_v48 }
 0x5aa   :  { %1506 = vst.msk [vmem:[%s2859_s15 + $0x88] sm:$0xff] %vm1488_vm1, %v1480_v47 }

// kernel: _lambda_.8
= control target key start
LH: loop header
LB: loop body
LE: loop exit
PB: predicated region body
PF: predicated region fallthrough
CT: control target
= control target key end

     0   :  { %vm108_vm0 = vcmask 1043456   ;;  %v1007_v0 = vmov 0.0   ;;  %vm1008_vm1 = vmmov 0   ;;  %vm80_vm2 = vcmask 64512   ;;  %s1460_s2 = inlined_call_operand.vmem [shape: bf16[8,8], index: 2, kind: input, shape index: {}]   ;;  %s1461_s1 = inlined_call_operand.vmem [shape: f32[3,48,8], index: 1, kind: input, shape index: {}]   ;;  %s1462_s4 = inlined_call_operand.vmem [shape: bf16[32,32], index: 4, kind: input, shape index: {}]   ;;  %s1463_s7 = inlined_call_operand.vmem [shape: bf16[8,8], index: 7, kind: input, shape index: {}]   ;;  %s1464_s0 = inlined_call_operand.vmem [shape: f32[48,32], index: 0, kind: input, shape index: {}]   ;;  %s1465_s3 = inlined_call_operand.vmem [shape: bf16[8,32], index: 3, kind: input, shape index: {}]   ;;  %s1466_s5 = inlined_call_operand.vmem [shape: bf16[32,8], index: 5, kind: input, shape index: {}]   ;;  %s1467_s8 = inlined_call_operand.vmem [shape: f32[48,32], index: 8, kind: output, shape index: {0}]   ;;  %s1468_s6 = inlined_call_operand.vmem [shape: f32[1,8], index: 6, kind: input, shape index: {}]   ;;  %s1469_s9 = inlined_call_operand.vmem [shape: f32[3,48,8], index: 9, kind: output, shape index: {1}]  }
   0x1   :  { %829 = vmatprep.subr.bf16.mxu0 %v1007_v0  ;;  %951 = vmatprep.subr.bf16.mxu1 %v1007_v0  ;;  %v68_v1 = vld [vmem:[%s1460_s2] sm:$0xf]  ;;  %v39_v3 = vld [vmem:[%s1461_s1 + $0x8] sm:$0xff]  ;;  %v48_v6 = vld [vmem:[%s1461_s1 + $0x50] sm:$0xff]  ;;  %vm304_vm3 = vcmask 261120  }
   0x2   :  { %v38_v2 = vld [vmem:[%s1461_s1] sm:$0xff]  ;;  %v110_v4 = vsel %vm108_vm0, %v68_v1, 0  ;;  %831 = vmatprep.mubr.msk.bf16.mxu0 %vm1008_vm1, %v1007_v0  ;;  %851 = vmatprep.mubr.msk.bf16.mxu1 %vm1008_vm1, %v1007_v0  ;;  %v49_v7 = vld [vmem:[%s1461_s1 + $0x58] sm:$0xff]  ;;  %v40_v9 = vld [vmem:[%s1461_s1 + $0x10] sm:$0xff] }
   0x3   :  { %v59_v5 = vpack.c.bf16 %v39_v3, %v38_v2  ;;  %830 = vmatpush3.bf16.msra.mxu0 %v110_v4  ;;  %952 = vmatpush3.bf16.msra.mxu1 %v110_v4  ;;  %v64_v8 = vpack.c.bf16 %v49_v7, %v48_v6  ;;  %v41_v10 = vld [vmem:[%s1461_s1 + $0x18] sm:$0xff]  ;;  %v50_v11 = vld [vmem:[%s1461_s1 + $0x60] sm:$0xff]  ;;  %v51_v12 = vld [vmem:[%s1461_s1 + $0x68] sm:$0xff] }
   0x4   :  { %867 = vmatprep.subr.bf16.mxu1 %v1007_v0  ;;  %913 = vmatprep.subr.bf16.mxu0 %v1007_v0  ;;  %v967_v13 = vld [vmem:[%s1462_s4] sm:$0xff]   ;;  %v60_v14 = vpack.c.bf16 %v41_v10, %v40_v9  ;;  %v65_v15 = vpack.c.bf16 %v51_v12, %v50_v11  ;;  %v43_v17 = vld [vmem:[%s1461_s1 + $0x28] sm:$0xff]  ;;  %v52_v18 = vld [vmem:[%s1461_s1 + $0x70] sm:$0xff] }
   0x5   :  { %v42_v16 = vld [vmem:[%s1461_s1 + $0x20] sm:$0xff]  ;;  %v53_v19 = vld [vmem:[%s1461_s1 + $0x78] sm:$0xff]  ;;  %v44_v22 = vld [vmem:[%s1461_s1 + $0x30] sm:$0xff] }
   0x6   :  { %832 = vmatmul.mubr.msk.bf16.vlgmr.msra.gmra.mrb[0].mxu0 %vm80_vm2, %v59_v5  ;;  %852 = vmatmul.mubr.msk.bf16.vlgmr.msra.gmra.mrb[0].mxu1 %vm80_vm2, %v64_v8  ;;  %v61_v20 = vpack.c.bf16 %v43_v17, %v42_v16  ;;  %v66_v21 = vpack.c.bf16 %v53_v19, %v52_v18  ;;  %v45_v23 = vld [vmem:[%s1461_s1 + $0x38] sm:$0xff]  ;;  %v54_v24 = vld [vmem:[%s1461_s1 + $0x80] sm:$0xff]  ;;  %v55_v25 = vld [vmem:[%s1461_s1 + $0x88] sm:$0xff] }
   0x7   :  { %835 = vmatprep.mubr.msk.bf16.mxu0 %vm1008_vm1, %v1007_v0  ;;  %855 = vmatprep.mubr.msk.bf16.mxu1 %vm1008_vm1, %v1007_v0  ;;  %v62_v26 = vpack.c.bf16 %v45_v23, %v44_v22  ;;  %v67_v27 = vpack.c.bf16 %v55_v25, %v54_v24  ;;  %v46_v28 = vld [vmem:[%s1461_s1 + $0x40] sm:$0xff]  ;;  %v47_v29 = vld [vmem:[%s1461_s1 + $0x48] sm:$0xff]  ;;  %v34_v37 = vld [vmem:[%s1464_s0 + $0x10] sm:$0xff] }
   0x8   :  { %868 = vmatpush3.bf16.msra.mxu1 %v967_v13  ;;  %v63_v30 = vpack.c.bf16 %v47_v29, %v46_v28  ;;  %v79_v31 = vld [vmem:[%s1463_s7] sm:$0xf]  ;;  %v968_v33 = vld [vmem:[%s1462_s4 + $0x8] sm:$0xff]   ;;  %v35_v38 = vld [vmem:[%s1464_s0 + $0x18] sm:$0xff] }
   0x9   :  { %869 = vmatprep.subr.bf16.mxu1 %v1007_v0  ;;  %v600_v32 = vsel %vm108_vm0, %v79_v31, 0  ;;  %v32_v34 = vld [vmem:[%s1464_s0] sm:$0xff]  ;;  %v33_v35 = vld [vmem:[%s1464_s0 + $0x8] sm:$0xff]  ;;  %v57_v39 = vpack.c.bf16 %v35_v38, %v34_v37 }
   0xa   :  { %914 = vmatpush3.bf16.msra.mxu0 %v600_v32  ;;  %v56_v36 = vpack.c.bf16 %v33_v35, %v32_v34  ;;  %v36_v40 = vld [vmem:[%s1464_s0 + $0x20] sm:$0xff]  ;;  %v37_v41 = vld [vmem:[%s1464_s0 + $0x28] sm:$0xff] }
   0xb   :  { %v58_v42 = vpack.c.bf16 %v37_v41, %v36_v40  ;;  %v69_v43 = vld [vmem:[%s1465_s3] sm:$0xf] }
   0xc   :  { %870 = vmatpush3.bf16.msra.mxu1 %v968_v33  ;;  %v381_v44 = vsel %vm108_vm0, %v69_v43, 0 }
   0xd   :  { %883 = vmatprep.subr.bf16.mxu1 %v1007_v0 }
   0xe   :  { %836 = vmatmul.mubr.msk.bf16.gmra.mrb[4].mxu0 %vm80_vm2, %v60_v14  ;;  %856 = vmatmul.mubr.msk.bf16.gmra.mrb[4].mxu1 %vm80_vm2, %v65_v15 }
   0xf   :  { %839 = vmatprep.mubr.msk.bf16.mxu0 %vm1008_vm1, %v1007_v0  ;;  %859 = vmatprep.mubr.msk.bf16.mxu1 %vm1008_vm1, %v1007_v0 }
  0x16   :  { %840 = vmatmul.mubr.msk.bf16.gmra.mrb[8].mxu0 %vm80_vm2, %v61_v20  ;;  %860 = vmatmul.mubr.msk.bf16.gmra.mrb[8].mxu1 %vm80_vm2, %v66_v21 }
  0x17   :  { %843 = vmatprep.mubr.msk.bf16.mxu0 %vm1008_vm1, %v1007_v0  ;;  %863 = vmatprep.mubr.msk.bf16.mxu1 %vm1008_vm1, %v1007_v0 }
  0x1e   :  { %844 = vmatmul.mubr.msk.bf16.gmra.mrb[12].mxu0 %vm80_vm2, %v62_v26  ;;  %864 = vmatmul.mubr.msk.bf16.gmra.mrb[12].mxu1 %vm80_vm2, %v67_v27 }
  0x1f   :  { %847 = vmatprep.mubr.msk.bf16.mxu0 %vm1008_vm1, %v1007_v0  ;;  %871 = vmatprep.mubr.msk.bf16.mxu1 %vm1008_vm1, %v1007_v0 }
  0x26   :  { %848 = vmatmul.mubr.msk.bf16.gmra.mrb[16].mxu0 %vm80_vm2, %v63_v30  ;;  %872 = vmatmul.mubr.msk.bf16.vlgmr.msra.gmra.mrb[16].mxu1 %vm304_vm3, %v56_v36 }
  0x27   :  { %915 = vmatprep.mubr.msk.bf16.mxu0 %vm1008_vm1, %v1007_v0  ;;  %875 = vmatprep.mubr.msk.bf16.mxu1 %vm1008_vm1, %v1007_v0 }
  0x28   :  { %884 = vmatpush3.bf16.msra.mxu1 %v381_v44 }
  0x29   :  { %897 = vmatprep.subr.bf16.mxu1 %v1007_v0 }
  0x2e   :  { %876 = vmatmul.mubr.msk.bf16.gmra.mrb[20].mxu1 %vm304_vm3, %v57_v39 }
  0x2f   :  { %879 = vmatprep.mubr.msk.bf16.mxu1 %vm1008_vm1, %v1007_v0 }
  0x36   :  { %880 = vmatmul.mubr.msk.bf16.gmra.mrb[24].mxu1 %vm304_vm3, %v58_v42 }
  0x37   :  { %885 = vmatprep.mubr.msk.bf16.mxu1 %vm1008_vm1, %v1007_v0 }
  0xd9   :  { %v146_v45 = vpop.f32.mrb[0].mxu0  ;;  %v1196_v46 = vpop.f32.mrb[0].mxu1 }
  0xda   :  { %v833_v47 = vpop.f32.mrb[1].mxu0  ;;  %v853_v48 = vpop.f32.mrb[1].mxu1  ;;  %v227_v2 = vmul.f32 %v1196_v46, %v1196_v46  ;;  %v217_v20 = vmul.f32 %v146_v45, %v146_v45 }
  0xdb   :  { %v149_v49 = vpop.f32.mrb[2].mxu0  ;;  %v1198_v50 = vpop.f32.mrb[2].mxu1 }
  0xdc   :  { %v563_v51 = vpack.c.bf16 %v149_v49, %v146_v45  ;;  %v834_v52 = vpop.f32.mrb[3].mxu0  ;;  %v568_v53 = vpack.c.bf16 %v1198_v50, %v1196_v46  ;;  %v854_v54 = vpop.f32.mrb[3].mxu1  ;;  %v228_v5 = vmul.f32 %v1198_v50, %v1198_v50  ;;  %v218_v26 = vmul.f32 %v149_v49, %v149_v49 }
  0xde   :  { %916 = vmatmul.mubr.msk.bf16.vlgmr.msra.gmra.mrb[20].mxu0 %vm80_vm2, %v563_v51 }
  0xdf   :  { %919 = vmatprep.mubr.msk.bf16.mxu0 %vm1008_vm1, %v1007_v0 }
  0xe1   :  { %v154_v55 = vpop.f32.mrb[4].mxu0  ;;  %v1205_v56 = vpop.f32.mrb[4].mxu1 }
  0xe2   :  { %v837_v57 = vpop.f32.mrb[5].mxu0  ;;  %v857_v58 = vpop.f32.mrb[5].mxu1  ;;  %v235_v21 = vmul.f32 %v1205_v56, %v1205_v56  ;;  %v219_v43 = vmul.f32 %v154_v55, %v154_v55 }
  0xe3   :  { %v157_v59 = vpop.f32.mrb[6].mxu0  ;;  %v1207_v60 = vpop.f32.mrb[6].mxu1 }
  0xe4   :  { %v564_v61 = vpack.c.bf16 %v157_v59, %v154_v55  ;;  %v838_v62 = vpop.f32.mrb[7].mxu0  ;;  %v569_v63 = vpack.c.bf16 %v1207_v60, %v1205_v56  ;;  %v858_v1 = vpop.f32.mrb[7].mxu1  ;;  %v236_v37 = vmul.f32 %v1207_v60, %v1207_v60  ;;  %v220_v49 = vmul.f32 %v157_v59, %v157_v59  ;;  %v969_v56 = vld [vmem:[%s1466_s5] sm:$0xff]   ;;  %v970_v60 = vld [vmem:[%s1466_s5 + $0x8] sm:$0xff]  }
  0xe6   :  { %920 = vmatmul.mubr.msk.bf16.gmra.mrb[24].mxu0 %vm80_vm2, %v564_v61 }
  0xe7   :  { %923 = vmatprep.mubr.msk.bf16.mxu0 %vm1008_vm1, %v1007_v0 }
  0xe9   :  { %v162_v3 = vpop.f32.mrb[8].mxu0  ;;  %v1216_v4 = vpop.f32.mrb[8].mxu1 }
  0xea   :  { %v221_v6 = vmul.f32 %v162_v3, %v162_v3  ;;  %v841_v7 = vpop.f32.mrb[9].mxu0  ;;  %v861_v8 = vpop.f32.mrb[9].mxu1  ;;  %v237_v44 = vmul.f32 %v1216_v4, %v1216_v4 }
  0xeb   :  { %v165_v9 = vpop.f32.mrb[10].mxu0  ;;  %v1220_v10 = vpop.f32.mrb[10].mxu1 }
  0xec   :  { %v233_v11 = vadd.f32 %v227_v2, %v221_v6  ;;  %v222_v12 = vmul.f32 %v165_v9, %v165_v9  ;;  %v565_v13 = vpack.c.bf16 %v165_v9, %v162_v3  ;;  %v842_v14 = vpop.f32.mrb[11].mxu0  ;;  %v862_v15 = vpop.f32.mrb[11].mxu1  ;;  %v570_v16 = vpack.c.bf16 %v1220_v10, %v1216_v4 }
  0xed   :  { %v238_v58 = vmul.f32 %v1220_v10, %v1220_v10 }
  0xee   :  { %v234_v17 = vadd.f32 %v228_v5, %v222_v12  ;;  %924 = vmatmul.mubr.msk.bf16.gmra.mrb[28].mxu0 %vm80_vm2, %v565_v13 }
  0xef   :  { %927 = vmatprep.mubr.msk.bf16.mxu0 %vm1008_vm1, %v1007_v0 }
  0xf1   :  { %v170_v18 = vpop.f32.mrb[12].mxu0  ;;  %v1227_v19 = vpop.f32.mrb[12].mxu1 }
  0xf2   :  { %v223_v22 = vmul.f32 %v170_v18, %v170_v18  ;;  %v239_v23 = vmul.f32 %v1227_v19, %v1227_v19  ;;  %v845_v24 = vpop.f32.mrb[13].mxu0  ;;  %v865_v25 = vpop.f32.mrb[13].mxu1 }
  0xf3   :  { %v173_v27 = vpop.f32.mrb[14].mxu0  ;;  %v1233_v28 = vpop.f32.mrb[14].mxu1 }
  0xf4   :  { %v229_v29 = vadd.f32 %v223_v22, %v217_v20  ;;  %v1235_v30 = vadd.f32 %v239_v23, %v233_v11  ;;  %v224_v31 = vmul.f32 %v173_v27, %v173_v27  ;;  %v566_v32 = vpack.c.bf16 %v173_v27, %v170_v18  ;;  %v846_v33 = vpop.f32.mrb[15].mxu0  ;;  %v866_v34 = vpop.f32.mrb[15].mxu1 }
  0xf5   :  { %v240_v35 = vmul.f32 %v1233_v28, %v1233_v28  ;;  %v571_v36 = vpack.c.bf16 %v1233_v28, %v1227_v19 }
  0xf6   :  { %v241_v38 = vadd.f32 %v235_v21, %v229_v29  ;;  %971 = vrsqrt.f32 %v1235_v30  ;;  %v230_v39 = vadd.f32 %v224_v31, %v218_v26  ;;  %928 = vmatmul.mubr.msk.bf16.gmra.mrb[32].mxu0 %vm80_vm2, %v566_v32  ;;  %vm277_vm4 = vcmp.eq.f32.partialorder %v1235_v30, inf }
  0xf7   :  { %v246_v40 = vadd.f32 %v240_v35, %v234_v17  ;;  %931 = vmatprep.mubr.msk.bf16.mxu0 %vm1008_vm1, %v1007_v0  ;;  %vm279_vm6 = vcmp.eq.f32.partialorder %v1235_v30, 0.0  ;;  %v280_v6 = vand.u32 2147483648, %v1235_v30 }
  0xf8   :  { %973 = vrsqrt.f32 %v241_v38  ;;  %v242_v41 = vadd.f32 %v236_v37, %v230_v39  ;;  %vm249_vm5 = vcmp.eq.f32.partialorder %v241_v38, inf  ;;  %vm251_vm7 = vcmp.eq.f32.partialorder %v241_v38, 0.0 }
  0xf9   :  { %975 = vrsqrt.f32 %v246_v40  ;;  %v178_v42 = vpop.f32.mrb[16].mxu0  ;;  %v252_v8 = vand.u32 2147483648, %v241_v38  ;;  %vm284_vm8 = vcmp.eq.f32.partialorder %v246_v40, inf  ;;  %v287_v14 = vand.u32 2147483648, %v246_v40 }
  0xfa   :  { %977 = vrsqrt.f32 %v242_v41  ;;  %v225_v45 = vmul.f32 %v178_v42, %v178_v42  ;;  %v849_v47 = vpop.f32.mrb[17].mxu0  ;;  %vm256_vm9 = vcmp.eq.f32.partialorder %v242_v41, inf  ;;  %v259_v15 = vand.u32 2147483648, %v242_v41 }
  0xfb   :  { %v181_v48 = vpop.f32.mrb[18].mxu0  ;;  %vm286_vm10 = vcmp.eq.f32.partialorder %v246_v40, 0.0  ;;  %vm258_vm11 = vcmp.eq.f32.partialorder %v242_v41, 0.0 }
  0xfc   :  { %v231_v51 = vadd.f32 %v225_v45, %v219_v43  ;;  %v226_v52 = vmul.f32 %v181_v48, %v181_v48  ;;  %v567_v54 = vpack.c.bf16 %v181_v48, %v178_v42  ;;  %v850_v57 = vpop.f32.mrb[19].mxu0 }
  0xfe   :  { %v243_v61 = vadd.f32 %v237_v44, %v231_v51  ;;  %v232_v62 = vadd.f32 %v226_v52, %v220_v49  ;;  %932 = vmatmul.mubr.msk.bf16.gmra.mrb[36].mxu0 %vm80_vm2, %v567_v54 }
  0xff   :  { %935 = vmatprep.mubr.msk.bf16.mxu0 %vm1008_vm1, %v1007_v0 }
 0x100   :  { %v972_v55 = vpop.eup %971  ;;  %979 = vrsqrt.f32 %v243_v61  ;;  %v244_v1 = vadd.f32 %v238_v58, %v232_v62  ;;  %vm263_vm12 = vcmp.eq.f32.partialorder %v243_v61, inf  ;;  %v266_v29 = vand.u32 2147483648, %v243_v61 }
 0x101   :  { %v276_v2 = vmul.f32 %v972_v55, %v1235_v30  ;;  %vm265_vm14 = vcmp.eq.f32.partialorder %v243_v61, 0.0 }
 0x102   :  { %v974_v59 = vpop.eup %973  ;;  %981 = vrsqrt.f32 %v244_v1  ;;  %vm270_vm13 = vcmp.eq.f32.partialorder %v244_v1, inf  ;;  %vm272_vm15 = vcmp.eq.f32.partialorder %v244_v1, 0.0 }
 0x103   :  { %v976_v3 = vpop.eup %975  ;;  %v248_v5 = vmul.f32 %v974_v59, %v241_v38  ;;  %v278_v9 = vsel %vm277_vm4, %v1235_v30, %v276_v2  ;;  %v273_v30 = vand.u32 2147483648, %v244_v1 }
 0x104   :  { %v978_v7 = vpop.eup %977  ;;  %v283_v11 = vmul.f32 %v976_v3, %v246_v40  ;;  %v281_v20 = vsel %vm279_vm6, %v280_v6, %v278_v9 }
 0x105   :  { %v255_v12 = vmul.f32 %v978_v7, %v242_v41  ;;  %v250_v13 = vsel %vm249_vm5, %v241_v38, %v248_v5 }
 0x106   :  { %936 = vmatmul.mubr.msk.bf16.gmra.mrb[40].mxu0 %vm80_vm2, %v568_v53  ;;  %v285_v17 = vsel %vm284_vm8, %v246_v40, %v283_v11  ;;  %v253_v22 = vsel %vm251_vm7, %v252_v8, %v250_v13 }
 0x107   :  { %v257_v18 = vsel %vm256_vm9, %v242_v41, %v255_v12  ;;  %939 = vmatprep.mubr.msk.bf16.mxu0 %vm1008_vm1, %v1007_v0  ;;  %v288_v21 = vsel %vm286_vm10, %v287_v14, %v285_v17 }
 0x108   :  { %v260_v23 = vsel %vm258_vm11, %v259_v15, %v257_v18  ;;  %v291_v24 = vpack.c.bf16 %v288_v21, %v281_v20 }
 0x109   :  { %v289_v46 = vpack.c.bf16 %v260_v23, %v253_v22 }
 0x10a   :  { %v980_v50 = vpop.eup %979 }
 0x10b   :  { %886 = vmatmul.mubr.msk.bf16.vlgmr.msra.gmra.mrb[16].mxu1 %vm80_vm2, %v289_v46  ;;  %v262_v53 = vmul.f32 %v980_v50, %v243_v61  ;;  %v774_v50 = vld [vmem:[%s1468_s6] ss:$0 sm:$0xff] }
 0x10c   :  { %v982_v25 = vpop.eup %981  ;;  %889 = vmatprep.mubr.msk.bf16.mxu1 %vm1008_vm1, %v1007_v0  ;;  %898 = vmatpush3.bf16.msra.mxu1 %v969_v56 }
 0x10d   :  { %v264_v26 = vsel %vm263_vm12, %v243_v61, %v262_v53  ;;  %v269_v27 = vmul.f32 %v982_v25, %v244_v1  ;;  %899 = vmatprep.subr.bf16.mxu1 %v1007_v0 }
 0x10e   :  { %940 = vmatmul.mubr.msk.bf16.gmra.mrb[44].mxu0 %vm80_vm2, %v569_v63  ;;  %v267_v32 = vsel %vm265_vm14, %v266_v29, %v264_v26 }
 0x10f   :  { %v271_v31 = vsel %vm270_vm13, %v244_v1, %v269_v27  ;;  %943 = vmatprep.mubr.msk.bf16.mxu0 %vm1008_vm1, %v1007_v0 }
 0x110   :  { %v274_v33 = vsel %vm272_vm15, %v273_v30, %v271_v31  ;;  %900 = vmatpush3.bf16.msra.mxu1 %v970_v60 }
 0x111   :  { %v290_v34 = vpack.c.bf16 %v274_v33, %v267_v32 }
 0x113   :  { %890 = vmatmul.mubr.msk.bf16.gmra.mrb[20].mxu1 %vm80_vm2, %v290_v34 }
 0x114   :  { %893 = vmatprep.mubr.msk.bf16.mxu1 %vm1008_vm1, %v1007_v0 }
 0x116   :  { %944 = vmatmul.mubr.msk.bf16.gmra.mrb[48].mxu0 %vm80_vm2, %v570_v16 }
 0x117   :  { %947 = vmatprep.mubr.msk.bf16.mxu0 %vm1008_vm1, %v1007_v0 }
 0x11b   :  { %894 = vmatmul.mubr.msk.bf16.gmra.mrb[24].mxu1 %vm80_vm2, %v291_v24 }
 0x11c   :  { %901 = vmatprep.mubr.msk.bf16.mxu1 %vm1008_vm1, %v1007_v0 }
 0x11e   :  { %948 = vmatmul.mubr.msk.bf16.gmra.mrb[52].mxu0 %vm80_vm2, %v571_v36 }
 0x1b1   :  { %v1300_v63 = vpop.f32.mrb[20].mxu0 }
 0x1b2   :  { %v917_v4 = vpop.f32.mrb[21].mxu0 }
 0x1b3   :  { %v1302_v10 = vpop.f32.mrb[22].mxu0 }
 0x1b4   :  { %v918_v16 = vpop.f32.mrb[23].mxu0 }
 0x1b9   :  { %v1304_v19 = vpop.f32.mrb[24].mxu0 }
 0x1ba   :  { %v921_v28 = vpop.f32.mrb[25].mxu0 }
 0x1bb   :  { %v1306_v35 = vpop.f32.mrb[26].mxu0 }
 0x1bc   :  { %v922_v36 = vpop.f32.mrb[27].mxu0 }
 0x1c1   :  { %v1308_v37 = vpop.f32.mrb[28].mxu0 }
 0x1c2   :  { %v925_v38 = vpop.f32.mrb[29].mxu0 }
 0x1c3   :  { %v1310_v39 = vpop.f32.mrb[30].mxu0 }
 0x1c4   :  { %v926_v40 = vpop.f32.mrb[31].mxu0 }
 0x1c9   :  { %v1312_v41 = vpop.f32.mrb[32].mxu0 }
 0x1ca   :  { %v929_v42 = vpop.f32.mrb[33].mxu0 }
 0x1cb   :  { %v1314_v43 = vpop.f32.mrb[34].mxu0 }
 0x1cc   :  { %v930_v44 = vpop.f32.mrb[35].mxu0 }
 0x1d1   :  { %v1316_v45 = vpop.f32.mrb[36].mxu0 }
 0x1d2   :  { %v933_v47 = vpop.f32.mrb[37].mxu0 }
 0x1d3   :  { %v1318_v48 = vpop.f32.mrb[38].mxu0 }
 0x1d4   :  { %v934_v49 = vpop.f32.mrb[39].mxu0 }
 0x1d9   :  { %v1320_v51 = vpop.f32.mrb[40].mxu0 }
 0x1da   :  { %v937_v52 = vpop.f32.mrb[41].mxu0 }
 0x1db   :  { %v1322_v54 = vpop.f32.mrb[42].mxu0 }
 0x1dc   :  { %v938_v57 = vpop.f32.mrb[43].mxu0 }
 0x1de   :  { %v417_v58 = vpop.f32.mrb[16].mxu1 }
 0x1df   :  { %725 = vst.msk [vmem:[%s1467_s8] sm:$0xff] %vm304_vm3, %v417_v58  ;;  %v887_v61 = vpop.f32.mrb[17].mxu1 }
 0x1e0   :  { %v420_v62 = vpop.f32.mrb[18].mxu1 }
 0x1e1   :  { %v440_v55 = vpack.c.bf16 %v420_v62, %v417_v58  ;;  %726 = vst.msk [vmem:[%s1467_s8 + $0x8] sm:$0xff] %vm304_vm3, %v420_v62  ;;  %v888_v1 = vpop.f32.mrb[19].mxu1  ;;  %v1332_v2 = vpop.f32.mrb[44].mxu0 }
 0x1e2   :  { %v941_v59 = vpop.f32.mrb[45].mxu0 }
 0x1e3   :  { %902 = vmatmul.mubr.msk.bf16.vlgmr.msra.gmra.mrb[28].mxu1 %vm304_vm3, %v440_v55  ;;  %v1335_v3 = vpop.f32.mrb[46].mxu0 }
 0x1e4   :  { %v942_v5 = vpop.f32.mrb[47].mxu0  ;;  %905 = vmatprep.mubr.msk.bf16.mxu1 %vm1008_vm1, %v1007_v0 }
 0x1e6   :  { %v425_v6 = vpop.f32.mrb[20].mxu1 }
 0x1e7   :  { %727 = vst.msk [vmem:[%s1467_s8 + $0x10] sm:$0xff] %vm304_vm3, %v425_v6  ;;  %v891_v7 = vpop.f32.mrb[21].mxu1 }
 0x1e8   :  { %v428_v8 = vpop.f32.mrb[22].mxu1 }
 0x1e9   :  { %v441_v9 = vpack.c.bf16 %v428_v8, %v425_v6  ;;  %728 = vst.msk [vmem:[%s1467_s8 + $0x18] sm:$0xff] %vm304_vm3, %v428_v8  ;;  %v892_v11 = vpop.f32.mrb[23].mxu1  ;;  %v1347_v12 = vpop.f32.mrb[48].mxu0 }
 0x1ea   :  { %v945_v13 = vpop.f32.mrb[49].mxu0 }
 0x1eb   :  { %906 = vmatmul.mubr.msk.bf16.gmra.mrb[32].mxu1 %vm304_vm3, %v441_v9  ;;  %v1350_v14 = vpop.f32.mrb[50].mxu0 }
 0x1ec   :  { %v946_v15 = vpop.f32.mrb[51].mxu0  ;;  %909 = vmatprep.mubr.msk.bf16.mxu1 %vm1008_vm1, %v1007_v0 }
 0x1ee   :  { %v433_v17 = vpop.f32.mrb[24].mxu1 }
 0x1ef   :  { %729 = vst.msk [vmem:[%s1467_s8 + $0x20] sm:$0xff] %vm304_vm3, %v433_v17  ;;  %v895_v18 = vpop.f32.mrb[25].mxu1 }
 0x1f0   :  { %v436_v20 = vpop.f32.mrb[26].mxu1 }
 0x1f1   :  { %v442_v21 = vpack.c.bf16 %v436_v20, %v433_v17  ;;  %730 = vst.msk [vmem:[%s1467_s8 + $0x28] sm:$0xff] %vm304_vm3, %v436_v20  ;;  %v896_v22 = vpop.f32.mrb[27].mxu1  ;;  %v1362_v23 = vpop.f32.mrb[52].mxu0 }
 0x1f2   :  { %v949_v24 = vpop.f32.mrb[53].mxu0 }
 0x1f3   :  { %910 = vmatmul.mubr.msk.bf16.gmra.mrb[36].mxu1 %vm304_vm3, %v442_v21  ;;  %v1365_v0 = vpop.f32.mrb[54].mxu0 }
 0x1f4   :  { %v950_v46 = vpop.f32.mrb[55].mxu0 }
 0x2b6   :  { %v504_v53 = vpop.f32.mrb[28].mxu1 }
 0x2b7   :  { %v505_v25 = vadd.f32 %v774_v50, %v504_v53  ;;  %v903_v26 = vpop.f32.mrb[29].mxu1 }
 0x2b8   :  { %v507_v27 = vpop.f32.mrb[30].mxu1 }
 0x2b9   :  { %v780_v29 = vmul.f32 -1.442695, %v505_v25  ;;  %v508_v30 = vadd.f32 %v774_v50, %v507_v27  ;;  %v904_v31 = vpop.f32.mrb[31].mxu1 }
 0x2bb   :  { %983 = vpow2.f32 %v780_v29  ;;  %v781_v32 = vmul.f32 -1.442695, %v508_v30 }
 0x2bd   :  { %985 = vpow2.f32 %v781_v32 }
 0x2be   :  { %v512_v33 = vpop.f32.mrb[32].mxu1 }
 0x2bf   :  { %v513_v34 = vadd.f32 %v774_v50, %v512_v33  ;;  %v907_v56 = vpop.f32.mrb[33].mxu1 }
 0x2c0   :  { %v515_v60 = vpop.f32.mrb[34].mxu1 }
 0x2c1   :  { %v782_v4 = vmul.f32 -1.442695, %v513_v34  ;;  %v516_v16 = vadd.f32 %v774_v50, %v515_v60  ;;  %v908_v28 = vpop.f32.mrb[35].mxu1 }
 0x2c3   :  { %987 = vpow2.f32 %v782_v4  ;;  %v783_v36 = vmul.f32 -1.442695, %v516_v16 }
 0x2c5   :  { %v984_v38 = vpop.eup %983  ;;  %989 = vpow2.f32 %v783_v36 }
 0x2c6   :  { %v545_v40 = vadd.f32 1.0, %v984_v38  ;;  %v520_v42 = vpop.f32.mrb[36].mxu1 }
 0x2c7   :  { %v986_v44 = vpop.eup %985  ;;  %v521_v47 = vadd.f32 %v774_v50, %v520_v42  ;;  %v911_v49 = vpop.f32.mrb[37].mxu1 }
 0x2c8   :  { %991 = vrcp.f32 %v545_v40  ;;  %v546_v52 = vadd.f32 1.0, %v986_v44  ;;  %v523_v57 = vpop.f32.mrb[38].mxu1 }
 0x2c9   :  { %v784_v58 = vmul.f32 -1.442695, %v521_v47  ;;  %v524_v61 = vadd.f32 %v774_v50, %v523_v57  ;;  %v912_v62 = vpop.f32.mrb[39].mxu1 }
 0x2ca   :  { %993 = vrcp.f32 %v546_v52 }
 0x2cb   :  { %995 = vpow2.f32 %v784_v58  ;;  %v785_v55 = vmul.f32 -1.442695, %v524_v61 }
 0x2cd   :  { %v988_v1 = vpop.eup %987  ;;  %997 = vpow2.f32 %v785_v55 }
 0x2ce   :  { %v547_v59 = vadd.f32 1.0, %v988_v1 }
 0x2cf   :  { %v990_v5 = vpop.eup %989 }
 0x2d0   :  { %999 = vrcp.f32 %v547_v59  ;;  %v548_v6 = vadd.f32 1.0, %v990_v5 }
 0x2d2   :  { %v992_v7 = vpop.eup %991  ;;  %1001 = vrcp.f32 %v548_v6 }
 0x2d3   :  { %v707_v8 = vmul.f32 %v992_v7, %v1300_v63  ;;  %v713_v9 = vmul.f32 %v992_v7, %v1312_v41  ;;  %v719_v11 = vmul.f32 %v992_v7, %v1332_v2 }
 0x2d4   :  { %v994_v13 = vpop.eup %993 }
 0x2d5   :  { %v996_v15 = vpop.eup %995  ;;  %731 = vst.msk [vmem:[%s1469_s9] sm:$0xff] %vm80_vm2, %v707_v8  ;;  %737 = vst.msk [vmem:[%s1469_s9 + $0x30] sm:$0xff] %vm80_vm2, %v713_v9  ;;  %v708_v63 = vmul.f32 %v994_v13, %v1302_v10  ;;  %v714_v41 = vmul.f32 %v994_v13, %v1314_v43  ;;  %v720_v2 = vmul.f32 %v994_v13, %v1335_v3 }
 0x2d6   :  { %743 = vst.msk [vmem:[%s1469_s9 + $0x60] sm:$0xff] %vm80_vm2, %v719_v11  ;;  %v549_v17 = vadd.f32 1.0, %v996_v15 }
 0x2d7   :  { %v998_v18 = vpop.eup %997  ;;  %732 = vst.msk [vmem:[%s1469_s9 + $0x8] sm:$0xff] %vm80_vm2, %v708_v63  ;;  %738 = vst.msk [vmem:[%s1469_s9 + $0x38] sm:$0xff] %vm80_vm2, %v714_v41 }
 0x2d8   :  { %744 = vst.msk [vmem:[%s1469_s9 + $0x68] sm:$0xff] %vm80_vm2, %v720_v2  ;;  %1003 = vrcp.f32 %v549_v17  ;;  %v550_v10 = vadd.f32 1.0, %v998_v18 }
 0x2da   :  { %v1000_v43 = vpop.eup %999  ;;  %1005 = vrcp.f32 %v550_v10 }
 0x2db   :  { %v709_v3 = vmul.f32 %v1000_v43, %v1304_v19  ;;  %v715_v20 = vmul.f32 %v1000_v43, %v1316_v45  ;;  %v721_v21 = vmul.f32 %v1000_v43, %v1347_v12 }
 0x2dc   :  { %v1002_v22 = vpop.eup %1001 }
 0x2dd   :  { %733 = vst.msk [vmem:[%s1469_s9 + $0x10] sm:$0xff] %vm80_vm2, %v709_v3  ;;  %739 = vst.msk [vmem:[%s1469_s9 + $0x40] sm:$0xff] %vm80_vm2, %v715_v20  ;;  %v710_v19 = vmul.f32 %v1002_v22, %v1306_v35  ;;  %v716_v45 = vmul.f32 %v1002_v22, %v1318_v48  ;;  %v722_v12 = vmul.f32 %v1002_v22, %v1350_v14 }
 0x2de   :  { %745 = vst.msk [vmem:[%s1469_s9 + $0x70] sm:$0xff] %vm80_vm2, %v721_v21 }
 0x2df   :  { %734 = vst.msk [vmem:[%s1469_s9 + $0x18] sm:$0xff] %vm80_vm2, %v710_v19  ;;  %740 = vst.msk [vmem:[%s1469_s9 + $0x48] sm:$0xff] %vm80_vm2, %v716_v45 }
 0x2e0   :  { %746 = vst.msk [vmem:[%s1469_s9 + $0x78] sm:$0xff] %vm80_vm2, %v722_v12 }
 0x2e2   :  { %v1004_v35 = vpop.eup %1003 }
 0x2e3   :  { %v711_v48 = vmul.f32 %v1004_v35, %v1308_v37  ;;  %v717_v14 = vmul.f32 %v1004_v35, %v1320_v51  ;;  %v723_v24 = vmul.f32 %v1004_v35, %v1362_v23 }
 0x2e4   :  { %v1006_v46 = vpop.eup %1005 }
 0x2e5   :  { %735 = vst.msk [vmem:[%s1469_s9 + $0x20] sm:$0xff] %vm80_vm2, %v711_v48  ;;  %741 = vst.msk [vmem:[%s1469_s9 + $0x50] sm:$0xff] %vm80_vm2, %v717_v14  ;;  %v712_v37 = vmul.f32 %v1006_v46, %v1310_v39  ;;  %v718_v51 = vmul.f32 %v1006_v46, %v1322_v54  ;;  %v724_v23 = vmul.f32 %v1006_v46, %v1365_v0 }
 0x2e6   :  { %747 = vst.msk [vmem:[%s1469_s9 + $0x80] sm:$0xff] %vm80_vm2, %v723_v24 }
 0x2e7   :  { %736 = vst.msk [vmem:[%s1469_s9 + $0x28] sm:$0xff] %vm80_vm2, %v712_v37  ;;  %742 = vst.msk [vmem:[%s1469_s9 + $0x58] sm:$0xff] %vm80_vm2, %v718_v51 }
 0x2e8   :  { %748 = vst.msk [vmem:[%s1469_s9 + $0x88] sm:$0xff] %vm80_vm2, %v724_v23 }

</bundles_post_ra>
